<compile_context>
chip_gen: v5e
topology: v5e:2x2
jax: 0.10.0
libtpu: 0.0.40
codegen_flags: <defaults>
</compile_context>

<pallas_src>
import functools

import jax
import jax.numpy as jnp
from jax.experimental import pallas as pl
from jax.experimental.pallas import tpu as pltpu

F32 = jnp.float32
BF16 = jnp.bfloat16


def _shared(shape):
    """Full-array BlockSpec with a constant index map: operand is DMA'd once
    and stays VMEM-resident across all grid steps."""
    nd = len(shape)
    return pl.BlockSpec(shape, lambda *_: (0,) * nd)


# ----------------------------------------------------------------------------
# Kernel 1: fused temporal attention (TATT_0) + spatial attention (SATT_0)
#           + previous block's BN affine + temporal re-weighting of x
# ----------------------------------------------------------------------------
def _make_attention_kernel(C, T):
    def kernel(x_ref, sc_ref, sh_ref,
               tw1_ref, tw2_ref, tw_ref, tb_ref, tv_ref,
               sw1_ref, sw2_ref, sw_ref, sb_ref, sv_ref,
               tadj_ref, scoef_ref, xta_ref):
        # previous block's BatchNorm affine folded in (identity for block 1)
        x4 = x_ref[0] * sc_ref[...][:, :, None] + sh_ref[...][:, :, None]  # (C,N,T)

        def att_coefs(L):
            # reference normalization: subtract per-column max, softmax rows
            a = jnp.max(L, axis=0, keepdims=True)
            z = L - a
            z = z - jnp.max(z, axis=-1, keepdims=True)   # exact, stability only
            e = jnp.exp(z)
            return e / jnp.sum(e, axis=-1, keepdims=True)

        # --- temporal attention (TATT_0) ---
        f1 = jnp.sum(x4 * tw1_ref[...][:, :, None], axis=0)           # (N, T)
        f2 = jnp.sum(x4 * tw2_ref[...][None, :, :], axis=1)           # (C, T)
        g = jnp.dot(f1.T, tw_ref[...], preferred_element_type=F32)    # (T, C)
        e_t = jax.nn.sigmoid(jnp.dot(g, f2, preferred_element_type=F32)
                             + tb_ref[...])                           # (T, T)
        L_t = jnp.dot(tv_ref[...], e_t, preferred_element_type=F32)
        t_coef = att_coefs(L_t).T          # transposed T_coef (as used/returned)
        tadj_ref[0] = t_coef

        # --- spatial attention (SATT_0) ---
        f1s = jnp.sum(x4 * sw1_ref[...][:, :, None], axis=0)          # (N, T)
        f2s = jnp.sum(x4 * sw2_ref[...][None, :, :], axis=-1)         # (C, N)
        gs = jnp.dot(f1s, sw_ref[...], preferred_element_type=F32)    # (N, C)
        e_s = jax.nn.sigmoid(jnp.dot(gs, f2s, preferred_element_type=F32)
                             + sb_ref[...])                           # (N, N)
        L_s = jnp.dot(sv_ref[...], e_s, preferred_element_type=F32)
        scoef_ref[0] = att_coefs(L_s)

        # --- temporal re-weighting: x_TAt = einsum('bcnl,blq->bcnq', x, T_coef)
        tc16 = t_coef.astype(BF16)
        for c in range(C):                 # static loop, per-channel matmul
            xta_ref[0, c] = jnp.dot(x4[c].astype(BF16), tc16,
                                    preferred_element_type=F32)

    return kernel


def attention_forward(x_cmaj, scale_c, shift_c, tp, sp):
    """x_cmaj: (B, C, N, T) -> (T_coef (B,T,T), S_coef (B,N,N), x_TAt (B,C,N,T))."""
    B, C, N, T = x_cmaj.shape
    return pl.pallas_call(
        _make_attention_kernel(C, T),
        out_shape=(jax.ShapeDtypeStruct((B, T, T), F32),
                   jax.ShapeDtypeStruct((B, N, N), F32),
                   jax.ShapeDtypeStruct((B, C, N, T), F32)),
        grid=(B,),
        in_specs=[
            pl.BlockSpec((1, C, N, T), lambda b: (b, 0, 0, 0)),
            _shared((C, 1)), _shared((C, 1)),
            _shared((C, 1)), _shared((N, 1)), _shared((N, C)),
            _shared((T, T)), _shared((T, T)),
            _shared((C, 1)), _shared((1, T)), _shared((T, C)),
            _shared((N, N)), _shared((N, N)),
        ],
        out_specs=(pl.BlockSpec((1, T, T), lambda b: (b, 0, 0)),
                   pl.BlockSpec((1, N, N), lambda b: (b, 0, 0)),
                   pl.BlockSpec((1, C, N, T), lambda b: (b, 0, 0, 0))),
        compiler_params=pltpu.CompilerParams(dimension_semantics=("parallel",)),
    )(x_cmaj, scale_c, shift_c,
      tp["w1"].reshape(C, 1), tp["w2"].reshape(N, 1), tp["w"], tp["b"], tp["v"],
      sp["w1"].reshape(C, 1), sp["w2"].reshape(1, T), sp["w"], sp["b"], sp["v"])


# ----------------------------------------------------------------------------
# Kernel 2: fused ST-block core (per batch; node-major (N, C*T) layout)
#   dynamic Chebyshev graph conv (K taps) -> 1x1 conv -> relu -> temporal conv
#   -> + residual 1x1 conv (previous BN folded in) -> relu -> BN statistics
# ----------------------------------------------------------------------------
def _make_core_kernel(K):
    def kernel(xta_ref, xres_ref, s_ref, L_ref, A_ref, bc_ref, Bt_ref, bt_ref,
               A1_ref, b1_ref, sg_ref, z_ref, st_ref):
        xta = xta_ref[0].astype(BF16)      # (N, C*T)  BN'd + temporally re-weighted
        xres = xres_ref[0].astype(BF16)    # (N, C*T)  raw block input (residual)
        ds = s_ref[0]                      # (N, N)    dynamic spatial attention

        acc = jnp.zeros(z_ref.shape[1:], dtype=F32)
        for k in range(K):                 # static K-loop, no HBM replication
            Ld = (ds * L_ref[k]).astype(BF16)                          # T_k(L).S
            G = jnp.dot(Ld, xta, preferred_element_type=F32)           # (N, C*T)
            acc = acc + jnp.dot(G.astype(BF16), A_ref[k],
                                preferred_element_type=F32)            # (N, OT)
        sgcn = jnp.maximum(acc + bc_ref[...], 0.0)                     # relu
        tco = jnp.dot(sgcn.astype(BF16), Bt_ref[...],
                      preferred_element_type=F32) + bt_ref[...]        # (1,Kt) conv
        xin = jnp.dot(xres, A1_ref[...], preferred_element_type=F32) + b1_ref[...]
        z = jnp.maximum(tco + xin, 0.0)                                # pre-BN out
        z_ref[0] = z

        # per-batch BatchNorm statistics (per-channel sum / sum-of-squares)
        srow = jnp.sum(z, axis=0, keepdims=True)                       # (1, OT)
        ssrow = jnp.sum(z * z, axis=0, keepdims=True)
        st_ref[0, 0:1, :] = jnp.dot(srow, sg_ref[...], preferred_element_type=F32)
        st_ref[0, 1:2, :] = jnp.dot(ssrow, sg_ref[...], preferred_element_type=F32)

    return kernel


def st_core_forward(xta_n, xres_n, s_coef, Lstack, A_cheb, bc_row, Bt, bt_row,
                    A1, b1_row, Sgrp, c_out, T):
    B, N, CT = xta_n.shape
    OT = c_out * T
    K = Lstack.shape[0]
    z, stats = pl.pallas_call(
        _make_core_kernel(K),
        out_shape=(jax.ShapeDtypeStruct((B, N, OT), F32),
                   jax.ShapeDtypeStruct((B, 2, c_out), F32)),
        grid=(B,),
        in_specs=[
            pl.BlockSpec((1, N, CT), lambda b: (b, 0, 0)),
            pl.BlockSpec((1, N, CT), lambda b: (b, 0, 0)),
            pl.BlockSpec((1, N, N), lambda b: (b, 0, 0)),
            _shared((K, N, N)),
            _shared((K, CT, OT)),
            _shared((1, OT)),
            _shared((OT, OT)),
            _shared((1, OT)),
            _shared((CT, OT)),
            _shared((1, OT)),
            _shared((OT, c_out)),
        ],
        out_specs=(pl.BlockSpec((1, N, OT), lambda b: (b, 0, 0)),
                   pl.BlockSpec((1, 2, c_out), lambda b: (b, 0, 0))),
        compiler_params=pltpu.CompilerParams(dimension_semantics=("parallel",)),
    )(xta_n, xres_n, s_coef, Lstack, A_cheb, bc_row, Bt, bt_row, A1, b1_row, Sgrp)
    return z, stats


# ----------------------------------------------------------------------------
# Kernel 3: block2 BatchNorm affine + final_conv(T,12,(1,c_out)) + bias + gate
# ----------------------------------------------------------------------------
def _final_kernel(z_ref, sc_ref, sh_ref, wf_ref, bf_ref, w_ref, o_ref):
    y = z_ref[0] * sc_ref[...] + sh_ref[...]            # block2 BN affine
    acc = jnp.dot(y.astype(BF16), wf_ref[...], preferred_element_type=F32)
    o_ref[0] = (acc + bf_ref[...]) * w_ref[...]


def final_forward(z2, scale_row, shift_row, Wf2T, bf_row, w_gate):
    B, N, OT = z2.shape
    O = w_gate.shape[1]
    return pl.pallas_call(
        _final_kernel,
        out_shape=jax.ShapeDtypeStruct((B, N, O), F32),
        grid=(B,),
        in_specs=[pl.BlockSpec((1, N, OT), lambda b: (b, 0, 0)),
                  _shared((1, OT)), _shared((1, OT)),
                  _shared((OT, O)), _shared((1, O)), _shared((N, O))],
        out_specs=pl.BlockSpec((1, N, O), lambda b: (b, 0, 0)),
        compiler_params=pltpu.CompilerParams(dimension_semantics=("parallel",)),
    )(z2, scale_row, shift_row, Wf2T, bf_row, w_gate)


# ----------------------------------------------------------------------------
# Weight-sized XLA glue (built once per call)
# ----------------------------------------------------------------------------
def _cheb_basis(supports, K):
    N = supports.shape[0]
    I = jnp.eye(N, dtype=F32)
    Ls = [I, supports]
    L0, L1 = I, supports
    for _ in range(2, K):
        L2 = 2.0 * (supports @ L1) - L0
        L0, L1 = L1, L2
        Ls.append(L2)
    return jnp.stack(Ls, axis=0)                        # (K, N, N)


def _temporal_band(Wt, Kt, T):
    """(1, Kt) temporal conv with padding (0, 1) as one banded (OT, OT) matmul."""
    c_out = Wt.shape[0]
    tau = jnp.arange(T)[:, None]
    tt = jnp.arange(T)[None, :]
    r = tau - tt + 1
    valid = ((r >= 0) & (r < Kt)).astype(F32)
    rcl = jnp.clip(r, 0, Kt - 1)
    gb = jnp.take(Wt, rcl.reshape(-1), axis=2).reshape(c_out, c_out, T, T)
    gb = gb * valid[None, None, :, :]
    return gb.transpose(1, 2, 0, 3).reshape(c_out * T, c_out * T)


# ----------------------------------------------------------------------------
# ST_BLOCK_0 forward
# ----------------------------------------------------------------------------
def st_block_forward(x_cmaj, x_node, scale_c, shift_c, Lstack, p, Kt, c_out,
                     eps=1e-5):
    """One ST_BLOCK_0 with the previous block's BN affine folded in.
    x_cmaj: (B, C, N, T) channel-major input (pre-BN of previous block);
    x_node: (B, N, C*T) node-major view of the same values.
    Returns (z pre-BN node-major, this block's BN scale/shift, S_coef, T_coef)."""
    B, C, N, T = x_cmaj.shape
    K = Lstack.shape[0]
    eyeT = jnp.eye(T, dtype=F32)
    # NOTE: the residual add requires the (1, Kt), padding (0,1) temporal conv
    # to be length preserving, i.e. Kt == 3 (same constraint as the torch code).

    # fused attention (+ folded BN) + temporal re-weighting
    t_adj, s_coef, x_ta = attention_forward(x_cmaj, scale_c, shift_c,
                                            p["tatt"], p["satt"])
    xta_n = x_ta.transpose(0, 2, 1, 3).reshape(B, N, C * T)   # node-major

    # Chebyshev 1x1 conv, per tap k: kron(Wk^T, I_T)  (weight-only, built once)
    Wc = p["cheb"]["w"].reshape(c_out, C, K)            # W[o, c*K+k] -> [o, c, k]
    A_cheb = jnp.stack([jnp.kron(Wc[:, :, k].T, eyeT) for k in range(K)],
                       axis=0).astype(BF16)             # (K, C*T, c_out*T)
    bc_row = jnp.repeat(p["cheb"]["b"], T)[None, :]

    Bt = _temporal_band(p["time_w"], Kt, T).astype(BF16)
    bt_row = jnp.repeat(p["time_b"], T)[None, :]

    # residual 1x1 conv with the previous block's BN affine folded into it
    A1 = jnp.kron(p["conv1_w"].T, eyeT)                 # (C*T, c_out*T)
    scale_rep = jnp.repeat(scale_c.reshape(-1), T)
    shift_rep = jnp.repeat(shift_c.reshape(-1), T)
    b1_row = (jnp.repeat(p["conv1_b"], T) + shift_rep @ A1)[None, :]
    A1 = (scale_rep[:, None] * A1).astype(BF16)

    # per-channel group-sum matrix for in-kernel BN statistics
    Sgrp = jnp.kron(jnp.eye(c_out, dtype=F32), jnp.ones((T, 1), F32))

    z, stats = st_core_forward(xta_n, x_node, s_coef, Lstack, A_cheb, bc_row,
                               Bt, bt_row, A1, b1_row, Sgrp, c_out, T)

    # BatchNorm2d (training-mode batch stats); tiny finalize in glue
    s = jnp.sum(stats, axis=0)                          # (2, c_out)
    cnt = float(B * N * T)
    mean = s[0] / cnt
    var = jnp.maximum(s[1] / cnt - mean * mean, 0.0)
    scale = p["bn_g"] * jax.lax.rsqrt(var + eps)
    shift = p["bn_b"] - mean * scale
    return z, scale, shift, s_coef, t_adj


def astgcn_block_forward(x, supports, params, K, Kt):
    B, c_in, N, T = x.shape
    c_out = params["block1"]["conv1_w"].shape[0]

    # static Chebyshev basis (tiny N x N), shared by both blocks
    Lstack = _cheb_basis(supports, K)

    # Block 1: input arrives channel-major; build the node-major view once.
    x_node = x.transpose(0, 2, 1, 3).reshape(B, N, c_in * T)
    one_c = jnp.ones((c_in, 1), F32)
    zero_c = jnp.zeros((c_in, 1), F32)
    z1, sc1, sh1, _, _ = st_block_forward(x, x_node, one_c, zero_c, Lstack,
                                          params["block1"], Kt, c_out)

    # Block 2 consumes block1's pre-BN output; block1's BN affine is folded
    # into block2's attention kernel + residual-conv weights (no BN-apply pass).
    x2_cmaj = z1.reshape(B, N, c_out, T).transpose(0, 2, 1, 3)
    z2, sc2, sh2, d_adj, t_adj = st_block_forward(
        x2_cmaj, z1, sc1.reshape(c_out, 1), sh1.reshape(c_out, 1), Lstack,
        params["block2"], Kt, c_out)

    # final_conv + squeeze + permute + node gate, with block2's BN fused in.
    O = params["final_w"].shape[0]
    Wf2T = params["final_w"].transpose(0, 2, 1).reshape(O, c_out * T).T.astype(BF16)
    out = final_forward(z2, jnp.repeat(sc2, T)[None, :], jnp.repeat(sh2, T)[None, :],
                        Wf2T, params["final_b"][None, :], params["w"])
    return out, d_adj, t_adj


# ----------------------------------------------------------------------------
# Deterministic parameter init (shapes follow the torch module's __init__)
# ----------------------------------------------------------------------------
def init_params(key, c_in, c_out, num_nodes, tem_size, K, Kt):
    keys = iter(jax.random.split(key, 64))

    def u(shape, scale=0.1):
        return jax.random.uniform(next(keys), shape, F32, -scale, scale)

    def block(ci):
        return dict(
            conv1_w=u((c_out, ci)), conv1_b=u((c_out,)),
            tatt=dict(w1=u((1, ci)), w2=u((1, num_nodes)), w=u((num_nodes, ci)),
                      b=u((tem_size, tem_size)), v=u((tem_size, tem_size))),
            satt=dict(w1=u((1, ci)), w2=u((1, tem_size)), w=u((tem_size, ci)),
                      b=u((num_nodes, num_nodes)), v=u((num_nodes, num_nodes))),
            cheb=dict(w=u((c_out, K * ci)), b=u((c_out,))),
            time_w=u((c_out, c_out, Kt)), time_b=u((c_out,)),
            bn_g=jnp.ones((c_out,), F32),
            bn_b=jnp.zeros((c_out,), F32),
        )

    return dict(
        block1=block(c_in),
        block2=block(c_out),
        final_w=u((12, tem_size, c_out)),   # Conv2d(tem_size, 12, (1, c_out))
        final_b=u((12,)),
        w=u((num_nodes, 12)),
    )


if __name__ == "__main__":
    B, c_in, c_out, N, T, K, Kt = 2, 4, 8, 16, 8, 3, 3
    key = jax.random.PRNGKey(0)
    k1, k2, k3 = jax.random.split(key, 3)
    x = jax.random.normal(k1, (B, c_in, N, T), F32)
    supports = jax.nn.softmax(jax.random.normal(k2, (N, N), F32), axis=-1)
    params = init_params(k3, c_in, c_out, N, T, K, Kt)

    fwd = jax.jit(functools.partial(astgcn_block_forward, K=K, Kt=Kt))
    out, d_adj, t_adj = fwd(x, supports, params)
    jax.block_until_ready((out, d_adj, t_adj))

    assert out.shape == (B, N, 12)
    assert d_adj.shape == (B, N, N)
    assert t_adj.shape == (B, T, T)
    print("KERNEL_OK")
</pallas_src>

<mosaic_0001>
module attributes {stable_mosaic.version = 11 : i64} {
  func.func @kernel(%arg0: i32, %arg1: memref<1x4x16x8xf32, #tpu.memory_space<vmem>>, %arg2: memref<4x1xf32, #tpu.memory_space<vmem>>, %arg3: memref<4x1xf32, #tpu.memory_space<vmem>>, %arg4: memref<4x1xf32, #tpu.memory_space<vmem>>, %arg5: memref<16x1xf32, #tpu.memory_space<vmem>>, %arg6: memref<16x4xf32, #tpu.memory_space<vmem>>, %arg7: memref<8x8xf32, #tpu.memory_space<vmem>>, %arg8: memref<8x8xf32, #tpu.memory_space<vmem>>, %arg9: memref<4x1xf32, #tpu.memory_space<vmem>>, %arg10: memref<1x8xf32, #tpu.memory_space<vmem>>, %arg11: memref<8x4xf32, #tpu.memory_space<vmem>>, %arg12: memref<16x16xf32, #tpu.memory_space<vmem>>, %arg13: memref<16x16xf32, #tpu.memory_space<vmem>>, %arg14: memref<1x8x8xf32, #tpu.memory_space<vmem>>, %arg15: memref<1x16x16xf32, #tpu.memory_space<vmem>>, %arg16: memref<1x4x16x8xf32, #tpu.memory_space<vmem>>) attributes {dimension_semantics = [#tpu.dimension_semantics<parallel>], iteration_bounds = array<i64: 2>, scalar_prefetch = 0 : i64, scratch_operands = 0 : i64, tpu.core_type = #tpu.core_type<tc>, window_params = [{transform_indices = @transform_0, window_bounds = array<i64: 1, 4, 16, 8>}, {pipeline_mode = #tpu.pipeline_mode<synchronous>, transform_indices = @transform_1, window_bounds = array<i64: 4, 1>}, {pipeline_mode = #tpu.pipeline_mode<synchronous>, transform_indices = @transform_2, window_bounds = array<i64: 4, 1>}, {pipeline_mode = #tpu.pipeline_mode<synchronous>, transform_indices = @transform_3, window_bounds = array<i64: 4, 1>}, {pipeline_mode = #tpu.pipeline_mode<synchronous>, transform_indices = @transform_4, window_bounds = array<i64: 16, 1>}, {pipeline_mode = #tpu.pipeline_mode<synchronous>, transform_indices = @transform_5, window_bounds = array<i64: 16, 4>}, {pipeline_mode = #tpu.pipeline_mode<synchronous>, transform_indices = @transform_6, window_bounds = array<i64: 8, 8>}, {pipeline_mode = #tpu.pipeline_mode<synchronous>, transform_indices = @transform_7, window_bounds = array<i64: 8, 8>}, {pipeline_mode = #tpu.pipeline_mode<synchronous>, transform_indices = @transform_8, window_bounds = array<i64: 4, 1>}, {pipeline_mode = #tpu.pipeline_mode<synchronous>, transform_indices = @transform_9, window_bounds = array<i64: 1, 8>}, {pipeline_mode = #tpu.pipeline_mode<synchronous>, transform_indices = @transform_10, window_bounds = array<i64: 8, 4>}, {pipeline_mode = #tpu.pipeline_mode<synchronous>, transform_indices = @transform_11, window_bounds = array<i64: 16, 16>}, {pipeline_mode = #tpu.pipeline_mode<synchronous>, transform_indices = @transform_12, window_bounds = array<i64: 16, 16>}, {transform_indices = @transform_13, window_bounds = array<i64: 1, 8, 8>}, {transform_indices = @transform_14, window_bounds = array<i64: 1, 16, 16>}, {transform_indices = @transform_15, window_bounds = array<i64: 1, 4, 16, 8>}]} {
    %c0 = arith.constant 0 : index
    %c0_0 = arith.constant 0 : index
    %c0_1 = arith.constant 0 : index
    %c0_2 = arith.constant 0 : index
    %0 = vector.load %arg1[%c0, %c0_0, %c0_1, %c0_2] : memref<1x4x16x8xf32, #tpu.memory_space<vmem>>, vector<1x4x16x8xf32>
    %1 = vector.shape_cast %0 : vector<1x4x16x8xf32> to vector<4x16x8xf32>
    %c0_3 = arith.constant 0 : index
    %c0_4 = arith.constant 0 : index
    %2 = vector.load %arg2[%c0_3, %c0_4] : memref<4x1xf32, #tpu.memory_space<vmem>>, vector<4x1xf32>
    %3 = vector.shape_cast %2 : vector<4x1xf32> to vector<4x1x1xf32>
    %4 = vector.broadcast %3 : vector<4x1x1xf32> to vector<4x16x8xf32>
    %5 = arith.mulf %1, %4 : vector<4x16x8xf32>
    %c0_5 = arith.constant 0 : index
    %c0_6 = arith.constant 0 : index
    %6 = vector.load %arg3[%c0_5, %c0_6] : memref<4x1xf32, #tpu.memory_space<vmem>>, vector<4x1xf32>
    %7 = vector.shape_cast %6 : vector<4x1xf32> to vector<4x1x1xf32>
    %8 = vector.broadcast %7 : vector<4x1x1xf32> to vector<4x16x8xf32>
    %9 = arith.addf %5, %8 : vector<4x16x8xf32>
    %c0_7 = arith.constant 0 : index
    %c0_8 = arith.constant 0 : index
    %10 = vector.load %arg4[%c0_7, %c0_8] : memref<4x1xf32, #tpu.memory_space<vmem>>, vector<4x1xf32>
    %11 = vector.shape_cast %10 : vector<4x1xf32> to vector<4x1x1xf32>
    %12 = vector.broadcast %11 : vector<4x1x1xf32> to vector<4x16x8xf32>
    %13 = arith.mulf %9, %12 : vector<4x16x8xf32>
    %cst = arith.constant dense<0.000000e+00> : vector<16x8xf32>
    %14 = vector.multi_reduction <add>, %13, %cst [0] : vector<4x16x8xf32> to vector<16x8xf32>
    %c0_9 = arith.constant 0 : index
    %c0_10 = arith.constant 0 : index
    %15 = vector.load %arg5[%c0_9, %c0_10] : memref<16x1xf32, #tpu.memory_space<vmem>>, vector<16x1xf32>
    %16 = vector.shape_cast %15 : vector<16x1xf32> to vector<1x16x1xf32>
    %17 = vector.broadcast %16 : vector<1x16x1xf32> to vector<4x16x8xf32>
    %18 = arith.mulf %9, %17 : vector<4x16x8xf32>
    %cst_11 = arith.constant dense<0.000000e+00> : vector<4x8xf32>
    %19 = vector.multi_reduction <add>, %18, %cst_11 [1] : vector<4x16x8xf32> to vector<4x8xf32>
    %20 = tpu.transpose %14, [1, 0] : vector<16x8xf32> -> vector<8x16xf32>
    %c0_12 = arith.constant 0 : index
    %c0_13 = arith.constant 0 : index
    %21 = vector.load %arg6[%c0_12, %c0_13] : memref<16x4xf32, #tpu.memory_space<vmem>>, vector<16x4xf32>
    %cst_14 = arith.constant dense<0.000000e+00> : vector<8x4xf32>
    %22 = tpu.matmul %20, %21, %cst_14 {dimension_numbers = #tpu.dot_dimension_numbers<[1], [0], [0], [1], [0, 0, 1, 1], [], []>} : vector<8x16xf32>, vector<16x4xf32>, vector<8x4xf32> -> vector<8x4xf32>
    %cst_15 = arith.constant dense<0.000000e+00> : vector<8x8xf32>
    %23 = tpu.matmul %22, %19, %cst_15 {dimension_numbers = #tpu.dot_dimension_numbers<[1], [0], [0], [1], [0, 0, 1, 1], [], []>} : vector<8x4xf32>, vector<4x8xf32>, vector<8x8xf32> -> vector<8x8xf32>
    %c0_16 = arith.constant 0 : index
    %c0_17 = arith.constant 0 : index
    %24 = vector.load %arg7[%c0_16, %c0_17] : memref<8x8xf32, #tpu.memory_space<vmem>>, vector<8x8xf32>
    %25 = arith.addf %23, %24 : vector<8x8xf32>
    %26 = arith.negf %25 : vector<8x8xf32>
    %27 = math.exp %26 : vector<8x8xf32>
    %cst_18 = arith.constant 1.000000e+00 : f32
    %28 = vector.broadcast %cst_18 : f32 to vector<8x8xf32>
    %29 = arith.addf %28, %27 : vector<8x8xf32>
    %30 = arith.divf %28, %29 : vector<8x8xf32>
    %c0_19 = arith.constant 0 : index
    %c0_20 = arith.constant 0 : index
    %31 = vector.load %arg8[%c0_19, %c0_20] : memref<8x8xf32, #tpu.memory_space<vmem>>, vector<8x8xf32>
    %cst_21 = arith.constant dense<0.000000e+00> : vector<8x8xf32>
    %32 = tpu.matmul %31, %30, %cst_21 {dimension_numbers = #tpu.dot_dimension_numbers<[1], [0], [0], [1], [0, 0, 1, 1], [], []>} : vector<8x8xf32>, vector<8x8xf32>, vector<8x8xf32> -> vector<8x8xf32>
    %cst_22 = arith.constant dense<0xFF800000> : vector<8xf32>
    %33 = vector.multi_reduction <maximumf>, %32, %cst_22 [0] : vector<8x8xf32> to vector<8xf32>
    %34 = vector.shape_cast %33 : vector<8xf32> to vector<1x8xf32>
    %35 = vector.broadcast %34 : vector<1x8xf32> to vector<8x8xf32>
    %36 = arith.subf %32, %35 : vector<8x8xf32>
    %cst_23 = arith.constant dense<0xFF800000> : vector<8xf32>
    %37 = vector.multi_reduction <maximumf>, %36, %cst_23 [1] : vector<8x8xf32> to vector<8xf32>
    %38 = vector.shape_cast %37 : vector<8xf32> to vector<8x1xf32>
    %39 = vector.broadcast %38 : vector<8x1xf32> to vector<8x8xf32>
    %40 = arith.subf %36, %39 : vector<8x8xf32>
    %41 = math.exp %40 : vector<8x8xf32>
    %cst_24 = arith.constant dense<0.000000e+00> : vector<8xf32>
    %42 = vector.multi_reduction <add>, %41, %cst_24 [1] : vector<8x8xf32> to vector<8xf32>
    %43 = vector.shape_cast %42 : vector<8xf32> to vector<8x1xf32>
    %44 = vector.broadcast %43 : vector<8x1xf32> to vector<8x8xf32>
    %45 = arith.divf %41, %44 : vector<8x8xf32>
    %46 = tpu.transpose %45, [1, 0] : vector<8x8xf32> -> vector<8x8xf32>
    %c0_25 = arith.constant 0 : index
    %c0_26 = arith.constant 0 : index
    %c0_27 = arith.constant 0 : index
    %47 = vector.load %arg14[%c0_25, %c0_26, %c0_27] : memref<1x8x8xf32, #tpu.memory_space<vmem>>, vector<1x8x8xf32>
    %48 = vector.shape_cast %47 : vector<1x8x8xf32> to vector<8x8xf32>
    %49 = vector.shape_cast %46 : vector<8x8xf32> to vector<1x8x8xf32>
    tpu.vector_store %arg14[%c0_25, %c0_26, %c0_27], %49 {strides = array<i32>} : memref<1x8x8xf32, #tpu.memory_space<vmem>>, vector<1x8x8xf32>,
    %c0_28 = arith.constant 0 : index
    %c0_29 = arith.constant 0 : index
    %50 = vector.load %arg9[%c0_28, %c0_29] : memref<4x1xf32, #tpu.memory_space<vmem>>, vector<4x1xf32>
    %51 = vector.shape_cast %50 : vector<4x1xf32> to vector<4x1x1xf32>
    %52 = vector.broadcast %51 : vector<4x1x1xf32> to vector<4x16x8xf32>
    %53 = arith.mulf %9, %52 : vector<4x16x8xf32>
    %cst_30 = arith.constant dense<0.000000e+00> : vector<16x8xf32>
    %54 = vector.multi_reduction <add>, %53, %cst_30 [0] : vector<4x16x8xf32> to vector<16x8xf32>
    %c0_31 = arith.constant 0 : index
    %c0_32 = arith.constant 0 : index
    %55 = vector.load %arg10[%c0_31, %c0_32] : memref<1x8xf32, #tpu.memory_space<vmem>>, vector<1x8xf32>
    %56 = vector.shape_cast %55 : vector<1x8xf32> to vector<1x1x8xf32>
    %57 = vector.broadcast %56 : vector<1x1x8xf32> to vector<4x16x8xf32>
    %58 = arith.mulf %9, %57 : vector<4x16x8xf32>
    %cst_33 = arith.constant dense<0.000000e+00> : vector<4x16xf32>
    %59 = vector.multi_reduction <add>, %58, %cst_33 [2] : vector<4x16x8xf32> to vector<4x16xf32>
    %c0_34 = arith.constant 0 : index
    %c0_35 = arith.constant 0 : index
    %60 = vector.load %arg11[%c0_34, %c0_35] : memref<8x4xf32, #tpu.memory_space<vmem>>, vector<8x4xf32>
    %cst_36 = arith.constant dense<0.000000e+00> : vector<16x4xf32>
    %61 = tpu.matmul %54, %60, %cst_36 {dimension_numbers = #tpu.dot_dimension_numbers<[1], [0], [0], [1], [0, 0, 1, 1], [], []>} : vector<16x8xf32>, vector<8x4xf32>, vector<16x4xf32> -> vector<16x4xf32>
    %cst_37 = arith.constant dense<0.000000e+00> : vector<16x16xf32>
    %62 = tpu.matmul %61, %59, %cst_37 {dimension_numbers = #tpu.dot_dimension_numbers<[1], [0], [0], [1], [0, 0, 1, 1], [], []>} : vector<16x4xf32>, vector<4x16xf32>, vector<16x16xf32> -> vector<16x16xf32>
    %c0_38 = arith.constant 0 : index
    %c0_39 = arith.constant 0 : index
    %63 = vector.load %arg12[%c0_38, %c0_39] : memref<16x16xf32, #tpu.memory_space<vmem>>, vector<16x16xf32>
    %64 = arith.addf %62, %63 : vector<16x16xf32>
    %65 = arith.negf %64 : vector<16x16xf32>
    %66 = math.exp %65 : vector<16x16xf32>
    %cst_40 = arith.constant 1.000000e+00 : f32
    %67 = vector.broadcast %cst_40 : f32 to vector<16x16xf32>
    %68 = arith.addf %67, %66 : vector<16x16xf32>
    %69 = arith.divf %67, %68 : vector<16x16xf32>
    %c0_41 = arith.constant 0 : index
    %c0_42 = arith.constant 0 : index
    %70 = vector.load %arg13[%c0_41, %c0_42] : memref<16x16xf32, #tpu.memory_space<vmem>>, vector<16x16xf32>
    %cst_43 = arith.constant dense<0.000000e+00> : vector<16x16xf32>
    %71 = tpu.matmul %70, %69, %cst_43 {dimension_numbers = #tpu.dot_dimension_numbers<[1], [0], [0], [1], [0, 0, 1, 1], [], []>} : vector<16x16xf32>, vector<16x16xf32>, vector<16x16xf32> -> vector<16x16xf32>
    %cst_44 = arith.constant dense<0xFF800000> : vector<16xf32>
    %72 = vector.multi_reduction <maximumf>, %71, %cst_44 [0] : vector<16x16xf32> to vector<16xf32>
    %73 = vector.shape_cast %72 : vector<16xf32> to vector<1x16xf32>
    %74 = vector.broadcast %73 : vector<1x16xf32> to vector<16x16xf32>
    %75 = arith.subf %71, %74 : vector<16x16xf32>
    %cst_45 = arith.constant dense<0xFF800000> : vector<16xf32>
    %76 = vector.multi_reduction <maximumf>, %75, %cst_45 [1] : vector<16x16xf32> to vector<16xf32>
    %77 = vector.shape_cast %76 : vector<16xf32> to vector<16x1xf32>
    %78 = vector.broadcast %77 : vector<16x1xf32> to vector<16x16xf32>
    %79 = arith.subf %75, %78 : vector<16x16xf32>
    %80 = math.exp %79 : vector<16x16xf32>
    %cst_46 = arith.constant dense<0.000000e+00> : vector<16xf32>
    %81 = vector.multi_reduction <add>, %80, %cst_46 [1] : vector<16x16xf32> to vector<16xf32>
    %82 = vector.shape_cast %81 : vector<16xf32> to vector<16x1xf32>
    %83 = vector.broadcast %82 : vector<16x1xf32> to vector<16x16xf32>
    %84 = arith.divf %80, %83 : vector<16x16xf32>
    %c0_47 = arith.constant 0 : index
    %c0_48 = arith.constant 0 : index
    %c0_49 = arith.constant 0 : index
    %85 = vector.load %arg15[%c0_47, %c0_48, %c0_49] : memref<1x16x16xf32, #tpu.memory_space<vmem>>, vector<1x16x16xf32>
    %86 = vector.shape_cast %85 : vector<1x16x16xf32> to vector<16x16xf32>
    %87 = vector.shape_cast %84 : vector<16x16xf32> to vector<1x16x16xf32>
    tpu.vector_store %arg15[%c0_47, %c0_48, %c0_49], %87 {strides = array<i32>} : memref<1x16x16xf32, #tpu.memory_space<vmem>>, vector<1x16x16xf32>,
    %88 = arith.truncf %46 : vector<8x8xf32> to vector<8x8xbf16>
    %89 = vector.extract_strided_slice %9 {offsets = [0, 0, 0], sizes = [1, 16, 8], strides = [1, 1, 1]} : vector<4x16x8xf32> to vector<1x16x8xf32>
    %90 = vector.shape_cast %89 : vector<1x16x8xf32> to vector<16x8xf32>
    %91 = arith.truncf %90 : vector<16x8xf32> to vector<16x8xbf16>
    %cst_50 = arith.constant dense<0.000000e+00> : vector<16x8xf32>
    %92 = tpu.matmul %91, %88, %cst_50 {dimension_numbers = #tpu.dot_dimension_numbers<[1], [0], [0], [1], [0, 0, 1, 1], [], []>} : vector<16x8xbf16>, vector<8x8xbf16>, vector<16x8xf32> -> vector<16x8xf32>
    %c0_51 = arith.constant 0 : index
    %c0_52 = arith.constant 0 : index
    %c0_53 = arith.constant 0 : index
    %c0_54 = arith.constant 0 : index
    %93 = vector.load %arg16[%c0_51, %c0_52, %c0_53, %c0_54] : memref<1x4x16x8xf32, #tpu.memory_space<vmem>>, vector<1x1x16x8xf32>
    %94 = vector.shape_cast %93 : vector<1x1x16x8xf32> to vector<16x8xf32>
    %95 = vector.shape_cast %92 : vector<16x8xf32> to vector<1x1x16x8xf32>
    tpu.vector_store %arg16[%c0_51, %c0_52, %c0_53, %c0_54], %95 {strides = array<i32>} : memref<1x4x16x8xf32, #tpu.memory_space<vmem>>, vector<1x1x16x8xf32>,
    %96 = vector.extract_strided_slice %9 {offsets = [1, 0, 0], sizes = [1, 16, 8], strides = [1, 1, 1]} : vector<4x16x8xf32> to vector<1x16x8xf32>
    %97 = vector.shape_cast %96 : vector<1x16x8xf32> to vector<16x8xf32>
    %98 = arith.truncf %97 : vector<16x8xf32> to vector<16x8xbf16>
    %cst_55 = arith.constant dense<0.000000e+00> : vector<16x8xf32>
    %99 = tpu.matmul %98, %88, %cst_55 {dimension_numbers = #tpu.dot_dimension_numbers<[1], [0], [0], [1], [0, 0, 1, 1], [], []>} : vector<16x8xbf16>, vector<8x8xbf16>, vector<16x8xf32> -> vector<16x8xf32>
    %c0_56 = arith.constant 0 : index
    %c1 = arith.constant 1 : index
    %c0_57 = arith.constant 0 : index
    %c0_58 = arith.constant 0 : index
    %100 = vector.load %arg16[%c0_56, %c1, %c0_57, %c0_58] : memref<1x4x16x8xf32, #tpu.memory_space<vmem>>, vector<1x1x16x8xf32>
    %101 = vector.shape_cast %100 : vector<1x1x16x8xf32> to vector<16x8xf32>
    %102 = vector.shape_cast %99 : vector<16x8xf32> to vector<1x1x16x8xf32>
    tpu.vector_store %arg16[%c0_56, %c1, %c0_57, %c0_58], %102 {strides = array<i32>} : memref<1x4x16x8xf32, #tpu.memory_space<vmem>>, vector<1x1x16x8xf32>,
    %103 = vector.extract_strided_slice %9 {offsets = [2, 0, 0], sizes = [1, 16, 8], strides = [1, 1, 1]} : vector<4x16x8xf32> to vector<1x16x8xf32>
    %104 = vector.shape_cast %103 : vector<1x16x8xf32> to vector<16x8xf32>
    %105 = arith.truncf %104 : vector<16x8xf32> to vector<16x8xbf16>
    %cst_59 = arith.constant dense<0.000000e+00> : vector<16x8xf32>
    %106 = tpu.matmul %105, %88, %cst_59 {dimension_numbers = #tpu.dot_dimension_numbers<[1], [0], [0], [1], [0, 0, 1, 1], [], []>} : vector<16x8xbf16>, vector<8x8xbf16>, vector<16x8xf32> -> vector<16x8xf32>
    %c0_60 = arith.constant 0 : index
    %c2 = arith.constant 2 : index
    %c0_61 = arith.constant 0 : index
    %c0_62 = arith.constant 0 : index
    %107 = vector.load %arg16[%c0_60, %c2, %c0_61, %c0_62] : memref<1x4x16x8xf32, #tpu.memory_space<vmem>>, vector<1x1x16x8xf32>
    %108 = vector.shape_cast %107 : vector<1x1x16x8xf32> to vector<16x8xf32>
    %109 = vector.shape_cast %106 : vector<16x8xf32> to vector<1x1x16x8xf32>
    tpu.vector_store %arg16[%c0_60, %c2, %c0_61, %c0_62], %109 {strides = array<i32>} : memref<1x4x16x8xf32, #tpu.memory_space<vmem>>, vector<1x1x16x8xf32>,
    %110 = vector.extract_strided_slice %9 {offsets = [3, 0, 0], sizes = [1, 16, 8], strides = [1, 1, 1]} : vector<4x16x8xf32> to vector<1x16x8xf32>
    %111 = vector.shape_cast %110 : vector<1x16x8xf32> to vector<16x8xf32>
    %112 = arith.truncf %111 : vector<16x8xf32> to vector<16x8xbf16>
    %cst_63 = arith.constant dense<0.000000e+00> : vector<16x8xf32>
    %113 = tpu.matmul %112, %88, %cst_63 {dimension_numbers = #tpu.dot_dimension_numbers<[1], [0], [0], [1], [0, 0, 1, 1], [], []>} : vector<16x8xbf16>, vector<8x8xbf16>, vector<16x8xf32> -> vector<16x8xf32>
    %c0_64 = arith.constant 0 : index
    %c3 = arith.constant 3 : index
    %c0_65 = arith.constant 0 : index
    %c0_66 = arith.constant 0 : index
    %114 = vector.load %arg16[%c0_64, %c3, %c0_65, %c0_66] : memref<1x4x16x8xf32, #tpu.memory_space<vmem>>, vector<1x1x16x8xf32>
    %115 = vector.shape_cast %114 : vector<1x1x16x8xf32> to vector<16x8xf32>
    %116 = vector.shape_cast %113 : vector<16x8xf32> to vector<1x1x16x8xf32>
    tpu.vector_store %arg16[%c0_64, %c3, %c0_65, %c0_66], %116 {strides = array<i32>} : memref<1x4x16x8xf32, #tpu.memory_space<vmem>>, vector<1x1x16x8xf32>,
    return
  }
  func.func @transform_0(%arg0: i32) -> (i32, i32, i32, i32) {
    %c0_i32 = arith.constant 0 : i32
    %c0_i32_0 = arith.constant 0 : i32
    %c0_i32_1 = arith.constant 0 : i32
    %c0_i32_2 = arith.constant 0 : i32
    return %arg0, %c0_i32, %c0_i32_0, %c0_i32_1 : i32, i32, i32, i32
  }
  func.func @transform_1(%arg0: i32) -> (i32, i32) {
    %c0_i32 = arith.constant 0 : i32
    %c0_i32_0 = arith.constant 0 : i32
    %c0_i32_1 = arith.constant 0 : i32
    return %c0_i32, %c0_i32_0 : i32, i32
  }
  func.func @transform_2(%arg0: i32) -> (i32, i32) {
    %c0_i32 = arith.constant 0 : i32
    %c0_i32_0 = arith.constant 0 : i32
    %c0_i32_1 = arith.constant 0 : i32
    return %c0_i32, %c0_i32_0 : i32, i32
  }
  func.func @transform_3(%arg0: i32) -> (i32, i32) {
    %c0_i32 = arith.constant 0 : i32
    %c0_i32_0 = arith.constant 0 : i32
    %c0_i32_1 = arith.constant 0 : i32
    return %c0_i32, %c0_i32_0 : i32, i32
  }
  func.func @transform_4(%arg0: i32) -> (i32, i32) {
    %c0_i32 = arith.constant 0 : i32
    %c0_i32_0 = arith.constant 0 : i32
    %c0_i32_1 = arith.constant 0 : i32
    return %c0_i32, %c0_i32_0 : i32, i32
  }
  func.func @transform_5(%arg0: i32) -> (i32, i32) {
    %c0_i32 = arith.constant 0 : i32
    %c0_i32_0 = arith.constant 0 : i32
    %c0_i32_1 = arith.constant 0 : i32
    return %c0_i32, %c0_i32_0 : i32, i32
  }
  func.func @transform_6(%arg0: i32) -> (i32, i32) {
    %c0_i32 = arith.constant 0 : i32
    %c0_i32_0 = arith.constant 0 : i32
    %c0_i32_1 = arith.constant 0 : i32
    return %c0_i32, %c0_i32_0 : i32, i32
  }
  func.func @transform_7(%arg0: i32) -> (i32, i32) {
    %c0_i32 = arith.constant 0 : i32
    %c0_i32_0 = arith.constant 0 : i32
    %c0_i32_1 = arith.constant 0 : i32
    return %c0_i32, %c0_i32_0 : i32, i32
  }
  func.func @transform_8(%arg0: i32) -> (i32, i32) {
    %c0_i32 = arith.constant 0 : i32
    %c0_i32_0 = arith.constant 0 : i32
    %c0_i32_1 = arith.constant 0 : i32
    return %c0_i32, %c0_i32_0 : i32, i32
  }
  func.func @transform_9(%arg0: i32) -> (i32, i32) {
    %c0_i32 = arith.constant 0 : i32
    %c0_i32_0 = arith.constant 0 : i32
    %c0_i32_1 = arith.constant 0 : i32
    return %c0_i32, %c0_i32_0 : i32, i32
  }
  func.func @transform_10(%arg0: i32) -> (i32, i32) {
    %c0_i32 = arith.constant 0 : i32
    %c0_i32_0 = arith.constant 0 : i32
    %c0_i32_1 = arith.constant 0 : i32
    return %c0_i32, %c0_i32_0 : i32, i32
  }
  func.func @transform_11(%arg0: i32) -> (i32, i32) {
    %c0_i32 = arith.constant 0 : i32
    %c0_i32_0 = arith.constant 0 : i32
    %c0_i32_1 = arith.constant 0 : i32
    return %c0_i32, %c0_i32_0 : i32, i32
  }
  func.func @transform_12(%arg0: i32) -> (i32, i32) {
    %c0_i32 = arith.constant 0 : i32
    %c0_i32_0 = arith.constant 0 : i32
    %c0_i32_1 = arith.constant 0 : i32
    return %c0_i32, %c0_i32_0 : i32, i32
  }
  func.func @transform_13(%arg0: i32) -> (i32, i32, i32) {
    %c0_i32 = arith.constant 0 : i32
    %c0_i32_0 = arith.constant 0 : i32
    %c0_i32_1 = arith.constant 0 : i32
    return %arg0, %c0_i32, %c0_i32_0 : i32, i32, i32
  }
  func.func @transform_14(%arg0: i32) -> (i32, i32, i32) {
    %c0_i32 = arith.constant 0 : i32
    %c0_i32_0 = arith.constant 0 : i32
    %c0_i32_1 = arith.constant 0 : i32
    return %arg0, %c0_i32, %c0_i32_0 : i32, i32, i32
  }
  func.func @transform_15(%arg0: i32) -> (i32, i32, i32, i32) {
    %c0_i32 = arith.constant 0 : i32
    %c0_i32_0 = arith.constant 0 : i32
    %c0_i32_1 = arith.constant 0 : i32
    %c0_i32_2 = arith.constant 0 : i32
    return %arg0, %c0_i32, %c0_i32_0, %c0_i32_1 : i32, i32, i32, i32
  }
}

module attributes {stable_mosaic.version = 11 : i64} {
  func.func @kernel(%arg0: i32, %arg1: memref<1x16x32xf32, #tpu.memory_space<vmem>>, %arg2: memref<1x16x32xf32, #tpu.memory_space<vmem>>, %arg3: memref<1x16x16xf32, #tpu.memory_space<vmem>>, %arg4: memref<3x16x16xf32, #tpu.memory_space<vmem>>, %arg5: memref<3x32x64xbf16, #tpu.memory_space<vmem>>, %arg6: memref<1x64xf32, #tpu.memory_space<vmem>>, %arg7: memref<64x64xbf16, #tpu.memory_space<vmem>>, %arg8: memref<1x64xf32, #tpu.memory_space<vmem>>, %arg9: memref<32x64xbf16, #tpu.memory_space<vmem>>, %arg10: memref<1x64xf32, #tpu.memory_space<vmem>>, %arg11: memref<64x8xf32, #tpu.memory_space<vmem>>, %arg12: memref<1x16x64xf32, #tpu.memory_space<vmem>>, %arg13: memref<1x2x8xf32, #tpu.memory_space<vmem>>) attributes {dimension_semantics = [#tpu.dimension_semantics<parallel>], iteration_bounds = array<i64: 2>, scalar_prefetch = 0 : i64, scratch_operands = 0 : i64, tpu.core_type = #tpu.core_type<tc>, window_params = [{transform_indices = @transform_0, window_bounds = array<i64: 1, 16, 32>}, {transform_indices = @transform_1, window_bounds = array<i64: 1, 16, 32>}, {transform_indices = @transform_2, window_bounds = array<i64: 1, 16, 16>}, {pipeline_mode = #tpu.pipeline_mode<synchronous>, transform_indices = @transform_3, window_bounds = array<i64: 3, 16, 16>}, {pipeline_mode = #tpu.pipeline_mode<synchronous>, transform_indices = @transform_4, window_bounds = array<i64: 3, 32, 64>}, {pipeline_mode = #tpu.pipeline_mode<synchronous>, transform_indices = @transform_5, window_bounds = array<i64: 1, 64>}, {pipeline_mode = #tpu.pipeline_mode<synchronous>, transform_indices = @transform_6, window_bounds = array<i64: 64, 64>}, {pipeline_mode = #tpu.pipeline_mode<synchronous>, transform_indices = @transform_7, window_bounds = array<i64: 1, 64>}, {pipeline_mode = #tpu.pipeline_mode<synchronous>, transform_indices = @transform_8, window_bounds = array<i64: 32, 64>}, {pipeline_mode = #tpu.pipeline_mode<synchronous>, transform_indices = @transform_9, window_bounds = array<i64: 1, 64>}, {pipeline_mode = #tpu.pipeline_mode<synchronous>, transform_indices = @transform_10, window_bounds = array<i64: 64, 8>}, {transform_indices = @transform_11, window_bounds = array<i64: 1, 16, 64>}, {transform_indices = @transform_12, window_bounds = array<i64: 1, 2, 8>}]} {
    %c0 = arith.constant 0 : index
    %c0_0 = arith.constant 0 : index
    %c0_1 = arith.constant 0 : index
    %0 = vector.load %arg1[%c0, %c0_0, %c0_1] : memref<1x16x32xf32, #tpu.memory_space<vmem>>, vector<1x16x32xf32>
    %1 = vector.shape_cast %0 : vector<1x16x32xf32> to vector<16x32xf32>
    %2 = arith.truncf %1 : vector<16x32xf32> to vector<16x32xbf16>
    %c0_2 = arith.constant 0 : index
    %c0_3 = arith.constant 0 : index
    %c0_4 = arith.constant 0 : index
    %3 = vector.load %arg2[%c0_2, %c0_3, %c0_4] : memref<1x16x32xf32, #tpu.memory_space<vmem>>, vector<1x16x32xf32>
    %4 = vector.shape_cast %3 : vector<1x16x32xf32> to vector<16x32xf32>
    %5 = arith.truncf %4 : vector<16x32xf32> to vector<16x32xbf16>
    %c0_5 = arith.constant 0 : index
    %c0_6 = arith.constant 0 : index
    %c0_7 = arith.constant 0 : index
    %6 = vector.load %arg3[%c0_5, %c0_6, %c0_7] : memref<1x16x16xf32, #tpu.memory_space<vmem>>, vector<1x16x16xf32>
    %7 = vector.shape_cast %6 : vector<1x16x16xf32> to vector<16x16xf32>
    %cst = arith.constant 0.000000e+00 : f32
    %8 = vector.broadcast %cst : f32 to vector<16x64xf32>
    %c0_8 = arith.constant 0 : index
    %c0_9 = arith.constant 0 : index
    %c0_10 = arith.constant 0 : index
    %9 = vector.load %arg4[%c0_8, %c0_9, %c0_10] : memref<3x16x16xf32, #tpu.memory_space<vmem>>, vector<1x16x16xf32>
    %10 = vector.shape_cast %9 : vector<1x16x16xf32> to vector<16x16xf32>
    %11 = arith.mulf %7, %10 : vector<16x16xf32>
    %12 = arith.truncf %11 : vector<16x16xf32> to vector<16x16xbf16>
    %cst_11 = arith.constant dense<0.000000e+00> : vector<16x32xf32>
    %13 = tpu.matmul %12, %2, %cst_11 {dimension_numbers = #tpu.dot_dimension_numbers<[1], [0], [0], [1], [0, 0, 1, 1], [], []>} : vector<16x16xbf16>, vector<16x32xbf16>, vector<16x32xf32> -> vector<16x32xf32>
    %14 = arith.truncf %13 : vector<16x32xf32> to vector<16x32xbf16>
    %c0_12 = arith.constant 0 : index
    %c0_13 = arith.constant 0 : index
    %c0_14 = arith.constant 0 : index
    %15 = vector.load %arg5[%c0_12, %c0_13, %c0_14] : memref<3x32x64xbf16, #tpu.memory_space<vmem>>, vector<1x32x64xbf16>
    %16 = vector.shape_cast %15 : vector<1x32x64xbf16> to vector<32x64xbf16>
    %cst_15 = arith.constant dense<0.000000e+00> : vector<16x64xf32>
    %17 = tpu.matmul %14, %16, %cst_15 {dimension_numbers = #tpu.dot_dimension_numbers<[1], [0], [0], [1], [0, 0, 1, 1], [], []>} : vector<16x32xbf16>, vector<32x64xbf16>, vector<16x64xf32> -> vector<16x64xf32>
    %18 = arith.addf %8, %17 : vector<16x64xf32>
    %c1 = arith.constant 1 : index
    %c0_16 = arith.constant 0 : index
    %c0_17 = arith.constant 0 : index
    %19 = vector.load %arg4[%c1, %c0_16, %c0_17] : memref<3x16x16xf32, #tpu.memory_space<vmem>>, vector<1x16x16xf32>
    %20 = vector.shape_cast %19 : vector<1x16x16xf32> to vector<16x16xf32>
    %21 = arith.mulf %7, %20 : vector<16x16xf32>
    %22 = arith.truncf %21 : vector<16x16xf32> to vector<16x16xbf16>
    %cst_18 = arith.constant dense<0.000000e+00> : vector<16x32xf32>
    %23 = tpu.matmul %22, %2, %cst_18 {dimension_numbers = #tpu.dot_dimension_numbers<[1], [0], [0], [1], [0, 0, 1, 1], [], []>} : vector<16x16xbf16>, vector<16x32xbf16>, vector<16x32xf32> -> vector<16x32xf32>
    %24 = arith.truncf %23 : vector<16x32xf32> to vector<16x32xbf16>
    %c1_19 = arith.constant 1 : index
    %c0_20 = arith.constant 0 : index
    %c0_21 = arith.constant 0 : index
    %25 = vector.load %arg5[%c1_19, %c0_20, %c0_21] : memref<3x32x64xbf16, #tpu.memory_space<vmem>>, vector<1x32x64xbf16>
    %26 = vector.shape_cast %25 : vector<1x32x64xbf16> to vector<32x64xbf16>
    %cst_22 = arith.constant dense<0.000000e+00> : vector<16x64xf32>
    %27 = tpu.matmul %24, %26, %cst_22 {dimension_numbers = #tpu.dot_dimension_numbers<[1], [0], [0], [1], [0, 0, 1, 1], [], []>} : vector<16x32xbf16>, vector<32x64xbf16>, vector<16x64xf32> -> vector<16x64xf32>
    %28 = arith.addf %18, %27 : vector<16x64xf32>
    %c2 = arith.constant 2 : index
    %c0_23 = arith.constant 0 : index
    %c0_24 = arith.constant 0 : index
    %29 = vector.load %arg4[%c2, %c0_23, %c0_24] : memref<3x16x16xf32, #tpu.memory_space<vmem>>, vector<1x16x16xf32>
    %30 = vector.shape_cast %29 : vector<1x16x16xf32> to vector<16x16xf32>
    %31 = arith.mulf %7, %30 : vector<16x16xf32>
    %32 = arith.truncf %31 : vector<16x16xf32> to vector<16x16xbf16>
    %cst_25 = arith.constant dense<0.000000e+00> : vector<16x32xf32>
    %33 = tpu.matmul %32, %2, %cst_25 {dimension_numbers = #tpu.dot_dimension_numbers<[1], [0], [0], [1], [0, 0, 1, 1], [], []>} : vector<16x16xbf16>, vector<16x32xbf16>, vector<16x32xf32> -> vector<16x32xf32>
    %34 = arith.truncf %33 : vector<16x32xf32> to vector<16x32xbf16>
    %c2_26 = arith.constant 2 : index
    %c0_27 = arith.constant 0 : index
    %c0_28 = arith.constant 0 : index
    %35 = vector.load %arg5[%c2_26, %c0_27, %c0_28] : memref<3x32x64xbf16, #tpu.memory_space<vmem>>, vector<1x32x64xbf16>
    %36 = vector.shape_cast %35 : vector<1x32x64xbf16> to vector<32x64xbf16>
    %cst_29 = arith.constant dense<0.000000e+00> : vector<16x64xf32>
    %37 = tpu.matmul %34, %36, %cst_29 {dimension_numbers = #tpu.dot_dimension_numbers<[1], [0], [0], [1], [0, 0, 1, 1], [], []>} : vector<16x32xbf16>, vector<32x64xbf16>, vector<16x64xf32> -> vector<16x64xf32>
    %38 = arith.addf %28, %37 : vector<16x64xf32>
    %c0_30 = arith.constant 0 : index
    %c0_31 = arith.constant 0 : index
    %39 = vector.load %arg6[%c0_30, %c0_31] : memref<1x64xf32, #tpu.memory_space<vmem>>, vector<1x64xf32>
    %40 = vector.broadcast %39 : vector<1x64xf32> to vector<16x64xf32>
    %41 = arith.addf %38, %40 : vector<16x64xf32>
    %cst_32 = arith.constant 0.000000e+00 : f32
    %42 = vector.broadcast %cst_32 : f32 to vector<16x64xf32>
    %43 = arith.maximumf %41, %42 : vector<16x64xf32>
    %44 = arith.truncf %43 : vector<16x64xf32> to vector<16x64xbf16>
    %c0_33 = arith.constant 0 : index
    %c0_34 = arith.constant 0 : index
    %45 = vector.load %arg7[%c0_33, %c0_34] : memref<64x64xbf16, #tpu.memory_space<vmem>>, vector<64x64xbf16>
    %cst_35 = arith.constant dense<0.000000e+00> : vector<16x64xf32>
    %46 = tpu.matmul %44, %45, %cst_35 {dimension_numbers = #tpu.dot_dimension_numbers<[1], [0], [0], [1], [0, 0, 1, 1], [], []>} : vector<16x64xbf16>, vector<64x64xbf16>, vector<16x64xf32> -> vector<16x64xf32>
    %c0_36 = arith.constant 0 : index
    %c0_37 = arith.constant 0 : index
    %47 = vector.load %arg8[%c0_36, %c0_37] : memref<1x64xf32, #tpu.memory_space<vmem>>, vector<1x64xf32>
    %48 = vector.broadcast %47 : vector<1x64xf32> to vector<16x64xf32>
    %49 = arith.addf %46, %48 : vector<16x64xf32>
    %c0_38 = arith.constant 0 : index
    %c0_39 = arith.constant 0 : index
    %50 = vector.load %arg9[%c0_38, %c0_39] : memref<32x64xbf16, #tpu.memory_space<vmem>>, vector<32x64xbf16>
    %cst_40 = arith.constant dense<0.000000e+00> : vector<16x64xf32>
    %51 = tpu.matmul %5, %50, %cst_40 {dimension_numbers = #tpu.dot_dimension_numbers<[1], [0], [0], [1], [0, 0, 1, 1], [], []>} : vector<16x32xbf16>, vector<32x64xbf16>, vector<16x64xf32> -> vector<16x64xf32>
    %c0_41 = arith.constant 0 : index
    %c0_42 = arith.constant 0 : index
    %52 = vector.load %arg10[%c0_41, %c0_42] : memref<1x64xf32, #tpu.memory_space<vmem>>, vector<1x64xf32>
    %53 = vector.broadcast %52 : vector<1x64xf32> to vector<16x64xf32>
    %54 = arith.addf %51, %53 : vector<16x64xf32>
    %55 = arith.addf %49, %54 : vector<16x64xf32>
    %cst_43 = arith.constant 0.000000e+00 : f32
    %56 = vector.broadcast %cst_43 : f32 to vector<16x64xf32>
    %57 = arith.maximumf %55, %56 : vector<16x64xf32>
    %c0_44 = arith.constant 0 : index
    %c0_45 = arith.constant 0 : index
    %c0_46 = arith.constant 0 : index
    %58 = vector.load %arg12[%c0_44, %c0_45, %c0_46] : memref<1x16x64xf32, #tpu.memory_space<vmem>>, vector<1x16x64xf32>
    %59 = vector.shape_cast %58 : vector<1x16x64xf32> to vector<16x64xf32>
    %60 = vector.shape_cast %57 : vector<16x64xf32> to vector<1x16x64xf32>
    tpu.vector_store %arg12[%c0_44, %c0_45, %c0_46], %60 {strides = array<i32>} : memref<1x16x64xf32, #tpu.memory_space<vmem>>, vector<1x16x64xf32>,
    %cst_47 = arith.constant dense<0.000000e+00> : vector<64xf32>
    %61 = vector.multi_reduction <add>, %57, %cst_47 [0] : vector<16x64xf32> to vector<64xf32>
    %62 = vector.shape_cast %61 : vector<64xf32> to vector<1x64xf32>
    %63 = arith.mulf %57, %57 : vector<16x64xf32>
    %cst_48 = arith.constant dense<0.000000e+00> : vector<64xf32>
    %64 = vector.multi_reduction <add>, %63, %cst_48 [0] : vector<16x64xf32> to vector<64xf32>
    %65 = vector.shape_cast %64 : vector<64xf32> to vector<1x64xf32>
    %c0_49 = arith.constant 0 : index
    %c0_50 = arith.constant 0 : index
    %66 = vector.load %arg11[%c0_49, %c0_50] : memref<64x8xf32, #tpu.memory_space<vmem>>, vector<64x8xf32>
    %cst_51 = arith.constant dense<0.000000e+00> : vector<1x8xf32>
    %67 = tpu.matmul %62, %66, %cst_51 {dimension_numbers = #tpu.dot_dimension_numbers<[1], [0], [0], [1], [0, 0, 1, 1], [], []>} : vector<1x64xf32>, vector<64x8xf32>, vector<1x8xf32> -> vector<1x8xf32>
    %c0_52 = arith.constant 0 : index
    %c0_53 = arith.constant 0 : index
    %c0_54 = arith.constant 0 : index
    %68 = vector.load %arg13[%c0_52, %c0_53, %c0_54] : memref<1x2x8xf32, #tpu.memory_space<vmem>>, vector<1x1x8xf32>
    %69 = vector.shape_cast %68 : vector<1x1x8xf32> to vector<1x8xf32>
    %70 = vector.shape_cast %67 : vector<1x8xf32> to vector<1x1x8xf32>
    tpu.vector_store %arg13[%c0_52, %c0_53, %c0_54], %70 {strides = array<i32>} : memref<1x2x8xf32, #tpu.memory_space<vmem>>, vector<1x1x8xf32>,
    %c0_55 = arith.constant 0 : index
    %c0_56 = arith.constant 0 : index
    %71 = vector.load %arg11[%c0_55, %c0_56] : memref<64x8xf32, #tpu.memory_space<vmem>>, vector<64x8xf32>
    %cst_57 = arith.constant dense<0.000000e+00> : vector<1x8xf32>
    %72 = tpu.matmul %65, %71, %cst_57 {dimension_numbers = #tpu.dot_dimension_numbers<[1], [0], [0], [1], [0, 0, 1, 1], [], []>} : vector<1x64xf32>, vector<64x8xf32>, vector<1x8xf32> -> vector<1x8xf32>
    %c0_58 = arith.constant 0 : index
    %c1_59 = arith.constant 1 : index
    %c0_60 = arith.constant 0 : index
    %73 = vector.load %arg13[%c0_58, %c1_59, %c0_60] : memref<1x2x8xf32, #tpu.memory_space<vmem>>, vector<1x1x8xf32>
    %74 = vector.shape_cast %73 : vector<1x1x8xf32> to vector<1x8xf32>
    %75 = vector.shape_cast %72 : vector<1x8xf32> to vector<1x1x8xf32>
    tpu.vector_store %arg13[%c0_58, %c1_59, %c0_60], %75 {strides = array<i32>} : memref<1x2x8xf32, #tpu.memory_space<vmem>>, vector<1x1x8xf32>,
    return
  }
  func.func @transform_0(%arg0: i32) -> (i32, i32, i32) {
    %c0_i32 = arith.constant 0 : i32
    %c0_i32_0 = arith.constant 0 : i32
    %c0_i32_1 = arith.constant 0 : i32
    return %arg0, %c0_i32, %c0_i32_0 : i32, i32, i32
  }
  func.func @transform_1(%arg0: i32) -> (i32, i32, i32) {
    %c0_i32 = arith.constant 0 : i32
    %c0_i32_0 = arith.constant 0 : i32
    %c0_i32_1 = arith.constant 0 : i32
    return %arg0, %c0_i32, %c0_i32_0 : i32, i32, i32
  }
  func.func @transform_2(%arg0: i32) -> (i32, i32, i32) {
    %c0_i32 = arith.constant 0 : i32
    %c0_i32_0 = arith.constant 0 : i32
    %c0_i32_1 = arith.constant 0 : i32
    return %arg0, %c0_i32, %c0_i32_0 : i32, i32, i32
  }
  func.func @transform_3(%arg0: i32) -> (i32, i32, i32) {
    %c0_i32 = arith.constant 0 : i32
    %c0_i32_0 = arith.constant 0 : i32
    %c0_i32_1 = arith.constant 0 : i32
    %c0_i32_2 = arith.constant 0 : i32
    return %c0_i32, %c0_i32_0, %c0_i32_1 : i32, i32, i32
  }
  func.func @transform_4(%arg0: i32) -> (i32, i32, i32) {
    %c0_i32 = arith.constant 0 : i32
    %c0_i32_0 = arith.constant 0 : i32
    %c0_i32_1 = arith.constant 0 : i32
    %c0_i32_2 = arith.constant 0 : i32
    return %c0_i32, %c0_i32_0, %c0_i32_1 : i32, i32, i32
  }
  func.func @transform_5(%arg0: i32) -> (i32, i32) {
    %c0_i32 = arith.constant 0 : i32
    %c0_i32_0 = arith.constant 0 : i32
    %c0_i32_1 = arith.constant 0 : i32
    return %c0_i32, %c0_i32_0 : i32, i32
  }
  func.func @transform_6(%arg0: i32) -> (i32, i32) {
    %c0_i32 = arith.constant 0 : i32
    %c0_i32_0 = arith.constant 0 : i32
    %c0_i32_1 = arith.constant 0 : i32
    return %c0_i32, %c0_i32_0 : i32, i32
  }
  func.func @transform_7(%arg0: i32) -> (i32, i32) {
    %c0_i32 = arith.constant 0 : i32
    %c0_i32_0 = arith.constant 0 : i32
    %c0_i32_1 = arith.constant 0 : i32
    return %c0_i32, %c0_i32_0 : i32, i32
  }
  func.func @transform_8(%arg0: i32) -> (i32, i32) {
    %c0_i32 = arith.constant 0 : i32
    %c0_i32_0 = arith.constant 0 : i32
    %c0_i32_1 = arith.constant 0 : i32
    return %c0_i32, %c0_i32_0 : i32, i32
  }
  func.func @transform_9(%arg0: i32) -> (i32, i32) {
    %c0_i32 = arith.constant 0 : i32
    %c0_i32_0 = arith.constant 0 : i32
    %c0_i32_1 = arith.constant 0 : i32
    return %c0_i32, %c0_i32_0 : i32, i32
  }
  func.func @transform_10(%arg0: i32) -> (i32, i32) {
    %c0_i32 = arith.constant 0 : i32
    %c0_i32_0 = arith.constant 0 : i32
    %c0_i32_1 = arith.constant 0 : i32
    return %c0_i32, %c0_i32_0 : i32, i32
  }
  func.func @transform_11(%arg0: i32) -> (i32, i32, i32) {
    %c0_i32 = arith.constant 0 : i32
    %c0_i32_0 = arith.constant 0 : i32
    %c0_i32_1 = arith.constant 0 : i32
    return %arg0, %c0_i32, %c0_i32_0 : i32, i32, i32
  }
  func.func @transform_12(%arg0: i32) -> (i32, i32, i32) {
    %c0_i32 = arith.constant 0 : i32
    %c0_i32_0 = arith.constant 0 : i32
    %c0_i32_1 = arith.constant 0 : i32
    return %arg0, %c0_i32, %c0_i32_0 : i32, i32, i32
  }
}

module attributes {stable_mosaic.version = 11 : i64} {
  func.func @kernel(%arg0: i32, %arg1: memref<1x8x16x8xf32, #tpu.memory_space<vmem>>, %arg2: memref<8x1xf32, #tpu.memory_space<vmem>>, %arg3: memref<8x1xf32, #tpu.memory_space<vmem>>, %arg4: memref<8x1xf32, #tpu.memory_space<vmem>>, %arg5: memref<16x1xf32, #tpu.memory_space<vmem>>, %arg6: memref<16x8xf32, #tpu.memory_space<vmem>>, %arg7: memref<8x8xf32, #tpu.memory_space<vmem>>, %arg8: memref<8x8xf32, #tpu.memory_space<vmem>>, %arg9: memref<8x1xf32, #tpu.memory_space<vmem>>, %arg10: memref<1x8xf32, #tpu.memory_space<vmem>>, %arg11: memref<8x8xf32, #tpu.memory_space<vmem>>, %arg12: memref<16x16xf32, #tpu.memory_space<vmem>>, %arg13: memref<16x16xf32, #tpu.memory_space<vmem>>, %arg14: memref<1x8x8xf32, #tpu.memory_space<vmem>>, %arg15: memref<1x16x16xf32, #tpu.memory_space<vmem>>, %arg16: memref<1x8x16x8xf32, #tpu.memory_space<vmem>>) attributes {dimension_semantics = [#tpu.dimension_semantics<parallel>], iteration_bounds = array<i64: 2>, scalar_prefetch = 0 : i64, scratch_operands = 0 : i64, tpu.core_type = #tpu.core_type<tc>, window_params = [{transform_indices = @transform_0, window_bounds = array<i64: 1, 8, 16, 8>}, {pipeline_mode = #tpu.pipeline_mode<synchronous>, transform_indices = @transform_1, window_bounds = array<i64: 8, 1>}, {pipeline_mode = #tpu.pipeline_mode<synchronous>, transform_indices = @transform_2, window_bounds = array<i64: 8, 1>}, {pipeline_mode = #tpu.pipeline_mode<synchronous>, transform_indices = @transform_3, window_bounds = array<i64: 8, 1>}, {pipeline_mode = #tpu.pipeline_mode<synchronous>, transform_indices = @transform_4, window_bounds = array<i64: 16, 1>}, {pipeline_mode = #tpu.pipeline_mode<synchronous>, transform_indices = @transform_5, window_bounds = array<i64: 16, 8>}, {pipeline_mode = #tpu.pipeline_mode<synchronous>, transform_indices = @transform_6, window_bounds = array<i64: 8, 8>}, {pipeline_mode = #tpu.pipeline_mode<synchronous>, transform_indices = @transform_7, window_bounds = array<i64: 8, 8>}, {pipeline_mode = #tpu.pipeline_mode<synchronous>, transform_indices = @transform_8, window_bounds = array<i64: 8, 1>}, {pipeline_mode = #tpu.pipeline_mode<synchronous>, transform_indices = @transform_9, window_bounds = array<i64: 1, 8>}, {pipeline_mode = #tpu.pipeline_mode<synchronous>, transform_indices = @transform_10, window_bounds = array<i64: 8, 8>}, {pipeline_mode = #tpu.pipeline_mode<synchronous>, transform_indices = @transform_11, window_bounds = array<i64: 16, 16>}, {pipeline_mode = #tpu.pipeline_mode<synchronous>, transform_indices = @transform_12, window_bounds = array<i64: 16, 16>}, {transform_indices = @transform_13, window_bounds = array<i64: 1, 8, 8>}, {transform_indices = @transform_14, window_bounds = array<i64: 1, 16, 16>}, {transform_indices = @transform_15, window_bounds = array<i64: 1, 8, 16, 8>}]} {
    %c0 = arith.constant 0 : index
    %c0_0 = arith.constant 0 : index
    %c0_1 = arith.constant 0 : index
    %c0_2 = arith.constant 0 : index
    %0 = vector.load %arg1[%c0, %c0_0, %c0_1, %c0_2] : memref<1x8x16x8xf32, #tpu.memory_space<vmem>>, vector<1x8x16x8xf32>
    %1 = vector.shape_cast %0 : vector<1x8x16x8xf32> to vector<8x16x8xf32>
    %c0_3 = arith.constant 0 : index
    %c0_4 = arith.constant 0 : index
    %2 = vector.load %arg2[%c0_3, %c0_4] : memref<8x1xf32, #tpu.memory_space<vmem>>, vector<8x1xf32>
    %3 = vector.shape_cast %2 : vector<8x1xf32> to vector<8x1x1xf32>
    %4 = vector.broadcast %3 : vector<8x1x1xf32> to vector<8x16x8xf32>
    %5 = arith.mulf %1, %4 : vector<8x16x8xf32>
    %c0_5 = arith.constant 0 : index
    %c0_6 = arith.constant 0 : index
    %6 = vector.load %arg3[%c0_5, %c0_6] : memref<8x1xf32, #tpu.memory_space<vmem>>, vector<8x1xf32>
    %7 = vector.shape_cast %6 : vector<8x1xf32> to vector<8x1x1xf32>
    %8 = vector.broadcast %7 : vector<8x1x1xf32> to vector<8x16x8xf32>
    %9 = arith.addf %5, %8 : vector<8x16x8xf32>
    %c0_7 = arith.constant 0 : index
    %c0_8 = arith.constant 0 : index
    %10 = vector.load %arg4[%c0_7, %c0_8] : memref<8x1xf32, #tpu.memory_space<vmem>>, vector<8x1xf32>
    %11 = vector.shape_cast %10 : vector<8x1xf32> to vector<8x1x1xf32>
    %12 = vector.broadcast %11 : vector<8x1x1xf32> to vector<8x16x8xf32>
    %13 = arith.mulf %9, %12 : vector<8x16x8xf32>
    %cst = arith.constant dense<0.000000e+00> : vector<16x8xf32>
    %14 = vector.multi_reduction <add>, %13, %cst [0] : vector<8x16x8xf32> to vector<16x8xf32>
    %c0_9 = arith.constant 0 : index
    %c0_10 = arith.constant 0 : index
    %15 = vector.load %arg5[%c0_9, %c0_10] : memref<16x1xf32, #tpu.memory_space<vmem>>, vector<16x1xf32>
    %16 = vector.shape_cast %15 : vector<16x1xf32> to vector<1x16x1xf32>
    %17 = vector.broadcast %16 : vector<1x16x1xf32> to vector<8x16x8xf32>
    %18 = arith.mulf %9, %17 : vector<8x16x8xf32>
    %cst_11 = arith.constant dense<0.000000e+00> : vector<8x8xf32>
    %19 = vector.multi_reduction <add>, %18, %cst_11 [1] : vector<8x16x8xf32> to vector<8x8xf32>
    %20 = tpu.transpose %14, [1, 0] : vector<16x8xf32> -> vector<8x16xf32>
    %c0_12 = arith.constant 0 : index
    %c0_13 = arith.constant 0 : index
    %21 = vector.load %arg6[%c0_12, %c0_13] : memref<16x8xf32, #tpu.memory_space<vmem>>, vector<16x8xf32>
    %cst_14 = arith.constant dense<0.000000e+00> : vector<8x8xf32>
    %22 = tpu.matmul %20, %21, %cst_14 {dimension_numbers = #tpu.dot_dimension_numbers<[1], [0], [0], [1], [0, 0, 1, 1], [], []>} : vector<8x16xf32>, vector<16x8xf32>, vector<8x8xf32> -> vector<8x8xf32>
    %cst_15 = arith.constant dense<0.000000e+00> : vector<8x8xf32>
    %23 = tpu.matmul %22, %19, %cst_15 {dimension_numbers = #tpu.dot_dimension_numbers<[1], [0], [0], [1], [0, 0, 1, 1], [], []>} : vector<8x8xf32>, vector<8x8xf32>, vector<8x8xf32> -> vector<8x8xf32>
    %c0_16 = arith.constant 0 : index
    %c0_17 = arith.constant 0 : index
    %24 = vector.load %arg7[%c0_16, %c0_17] : memref<8x8xf32, #tpu.memory_space<vmem>>, vector<8x8xf32>
    %25 = arith.addf %23, %24 : vector<8x8xf32>
    %26 = arith.negf %25 : vector<8x8xf32>
    %27 = math.exp %26 : vector<8x8xf32>
    %cst_18 = arith.constant 1.000000e+00 : f32
    %28 = vector.broadcast %cst_18 : f32 to vector<8x8xf32>
    %29 = arith.addf %28, %27 : vector<8x8xf32>
    %30 = arith.divf %28, %29 : vector<8x8xf32>
    %c0_19 = arith.constant 0 : index
    %c0_20 = arith.constant 0 : index
    %31 = vector.load %arg8[%c0_19, %c0_20] : memref<8x8xf32, #tpu.memory_space<vmem>>, vector<8x8xf32>
    %cst_21 = arith.constant dense<0.000000e+00> : vector<8x8xf32>
    %32 = tpu.matmul %31, %30, %cst_21 {dimension_numbers = #tpu.dot_dimension_numbers<[1], [0], [0], [1], [0, 0, 1, 1], [], []>} : vector<8x8xf32>, vector<8x8xf32>, vector<8x8xf32> -> vector<8x8xf32>
    %cst_22 = arith.constant dense<0xFF800000> : vector<8xf32>
    %33 = vector.multi_reduction <maximumf>, %32, %cst_22 [0] : vector<8x8xf32> to vector<8xf32>
    %34 = vector.shape_cast %33 : vector<8xf32> to vector<1x8xf32>
    %35 = vector.broadcast %34 : vector<1x8xf32> to vector<8x8xf32>
    %36 = arith.subf %32, %35 : vector<8x8xf32>
    %cst_23 = arith.constant dense<0xFF800000> : vector<8xf32>
    %37 = vector.multi_reduction <maximumf>, %36, %cst_23 [1] : vector<8x8xf32> to vector<8xf32>
    %38 = vector.shape_cast %37 : vector<8xf32> to vector<8x1xf32>
    %39 = vector.broadcast %38 : vector<8x1xf32> to vector<8x8xf32>
    %40 = arith.subf %36, %39 : vector<8x8xf32>
    %41 = math.exp %40 : vector<8x8xf32>
    %cst_24 = arith.constant dense<0.000000e+00> : vector<8xf32>
    %42 = vector.multi_reduction <add>, %41, %cst_24 [1] : vector<8x8xf32> to vector<8xf32>
    %43 = vector.shape_cast %42 : vector<8xf32> to vector<8x1xf32>
    %44 = vector.broadcast %43 : vector<8x1xf32> to vector<8x8xf32>
    %45 = arith.divf %41, %44 : vector<8x8xf32>
    %46 = tpu.transpose %45, [1, 0] : vector<8x8xf32> -> vector<8x8xf32>
    %c0_25 = arith.constant 0 : index
    %c0_26 = arith.constant 0 : index
    %c0_27 = arith.constant 0 : index
    %47 = vector.load %arg14[%c0_25, %c0_26, %c0_27] : memref<1x8x8xf32, #tpu.memory_space<vmem>>, vector<1x8x8xf32>
    %48 = vector.shape_cast %47 : vector<1x8x8xf32> to vector<8x8xf32>
    %49 = vector.shape_cast %46 : vector<8x8xf32> to vector<1x8x8xf32>
    tpu.vector_store %arg14[%c0_25, %c0_26, %c0_27], %49 {strides = array<i32>} : memref<1x8x8xf32, #tpu.memory_space<vmem>>, vector<1x8x8xf32>,
    %c0_28 = arith.constant 0 : index
    %c0_29 = arith.constant 0 : index
    %50 = vector.load %arg9[%c0_28, %c0_29] : memref<8x1xf32, #tpu.memory_space<vmem>>, vector<8x1xf32>
    %51 = vector.shape_cast %50 : vector<8x1xf32> to vector<8x1x1xf32>
    %52 = vector.broadcast %51 : vector<8x1x1xf32> to vector<8x16x8xf32>
    %53 = arith.mulf %9, %52 : vector<8x16x8xf32>
    %cst_30 = arith.constant dense<0.000000e+00> : vector<16x8xf32>
    %54 = vector.multi_reduction <add>, %53, %cst_30 [0] : vector<8x16x8xf32> to vector<16x8xf32>
    %c0_31 = arith.constant 0 : index
    %c0_32 = arith.constant 0 : index
    %55 = vector.load %arg10[%c0_31, %c0_32] : memref<1x8xf32, #tpu.memory_space<vmem>>, vector<1x8xf32>
    %56 = vector.shape_cast %55 : vector<1x8xf32> to vector<1x1x8xf32>
    %57 = vector.broadcast %56 : vector<1x1x8xf32> to vector<8x16x8xf32>
    %58 = arith.mulf %9, %57 : vector<8x16x8xf32>
    %cst_33 = arith.constant dense<0.000000e+00> : vector<8x16xf32>
    %59 = vector.multi_reduction <add>, %58, %cst_33 [2] : vector<8x16x8xf32> to vector<8x16xf32>
    %c0_34 = arith.constant 0 : index
    %c0_35 = arith.constant 0 : index
    %60 = vector.load %arg11[%c0_34, %c0_35] : memref<8x8xf32, #tpu.memory_space<vmem>>, vector<8x8xf32>
    %cst_36 = arith.constant dense<0.000000e+00> : vector<16x8xf32>
    %61 = tpu.matmul %54, %60, %cst_36 {dimension_numbers = #tpu.dot_dimension_numbers<[1], [0], [0], [1], [0, 0, 1, 1], [], []>} : vector<16x8xf32>, vector<8x8xf32>, vector<16x8xf32> -> vector<16x8xf32>
    %cst_37 = arith.constant dense<0.000000e+00> : vector<16x16xf32>
    %62 = tpu.matmul %61, %59, %cst_37 {dimension_numbers = #tpu.dot_dimension_numbers<[1], [0], [0], [1], [0, 0, 1, 1], [], []>} : vector<16x8xf32>, vector<8x16xf32>, vector<16x16xf32> -> vector<16x16xf32>
    %c0_38 = arith.constant 0 : index
    %c0_39 = arith.constant 0 : index
    %63 = vector.load %arg12[%c0_38, %c0_39] : memref<16x16xf32, #tpu.memory_space<vmem>>, vector<16x16xf32>
    %64 = arith.addf %62, %63 : vector<16x16xf32>
    %65 = arith.negf %64 : vector<16x16xf32>
    %66 = math.exp %65 : vector<16x16xf32>
    %cst_40 = arith.constant 1.000000e+00 : f32
    %67 = vector.broadcast %cst_40 : f32 to vector<16x16xf32>
    %68 = arith.addf %67, %66 : vector<16x16xf32>
    %69 = arith.divf %67, %68 : vector<16x16xf32>
    %c0_41 = arith.constant 0 : index
    %c0_42 = arith.constant 0 : index
    %70 = vector.load %arg13[%c0_41, %c0_42] : memref<16x16xf32, #tpu.memory_space<vmem>>, vector<16x16xf32>
    %cst_43 = arith.constant dense<0.000000e+00> : vector<16x16xf32>
    %71 = tpu.matmul %70, %69, %cst_43 {dimension_numbers = #tpu.dot_dimension_numbers<[1], [0], [0], [1], [0, 0, 1, 1], [], []>} : vector<16x16xf32>, vector<16x16xf32>, vector<16x16xf32> -> vector<16x16xf32>
    %cst_44 = arith.constant dense<0xFF800000> : vector<16xf32>
    %72 = vector.multi_reduction <maximumf>, %71, %cst_44 [0] : vector<16x16xf32> to vector<16xf32>
    %73 = vector.shape_cast %72 : vector<16xf32> to vector<1x16xf32>
    %74 = vector.broadcast %73 : vector<1x16xf32> to vector<16x16xf32>
    %75 = arith.subf %71, %74 : vector<16x16xf32>
    %cst_45 = arith.constant dense<0xFF800000> : vector<16xf32>
    %76 = vector.multi_reduction <maximumf>, %75, %cst_45 [1] : vector<16x16xf32> to vector<16xf32>
    %77 = vector.shape_cast %76 : vector<16xf32> to vector<16x1xf32>
    %78 = vector.broadcast %77 : vector<16x1xf32> to vector<16x16xf32>
    %79 = arith.subf %75, %78 : vector<16x16xf32>
    %80 = math.exp %79 : vector<16x16xf32>
    %cst_46 = arith.constant dense<0.000000e+00> : vector<16xf32>
    %81 = vector.multi_reduction <add>, %80, %cst_46 [1] : vector<16x16xf32> to vector<16xf32>
    %82 = vector.shape_cast %81 : vector<16xf32> to vector<16x1xf32>
    %83 = vector.broadcast %82 : vector<16x1xf32> to vector<16x16xf32>
    %84 = arith.divf %80, %83 : vector<16x16xf32>
    %c0_47 = arith.constant 0 : index
    %c0_48 = arith.constant 0 : index
    %c0_49 = arith.constant 0 : index
    %85 = vector.load %arg15[%c0_47, %c0_48, %c0_49] : memref<1x16x16xf32, #tpu.memory_space<vmem>>, vector<1x16x16xf32>
    %86 = vector.shape_cast %85 : vector<1x16x16xf32> to vector<16x16xf32>
    %87 = vector.shape_cast %84 : vector<16x16xf32> to vector<1x16x16xf32>
    tpu.vector_store %arg15[%c0_47, %c0_48, %c0_49], %87 {strides = array<i32>} : memref<1x16x16xf32, #tpu.memory_space<vmem>>, vector<1x16x16xf32>,
    %88 = arith.truncf %46 : vector<8x8xf32> to vector<8x8xbf16>
    %89 = vector.extract_strided_slice %9 {offsets = [0, 0, 0], sizes = [1, 16, 8], strides = [1, 1, 1]} : vector<8x16x8xf32> to vector<1x16x8xf32>
    %90 = vector.shape_cast %89 : vector<1x16x8xf32> to vector<16x8xf32>
    %91 = arith.truncf %90 : vector<16x8xf32> to vector<16x8xbf16>
    %cst_50 = arith.constant dense<0.000000e+00> : vector<16x8xf32>
    %92 = tpu.matmul %91, %88, %cst_50 {dimension_numbers = #tpu.dot_dimension_numbers<[1], [0], [0], [1], [0, 0, 1, 1], [], []>} : vector<16x8xbf16>, vector<8x8xbf16>, vector<16x8xf32> -> vector<16x8xf32>
    %c0_51 = arith.constant 0 : index
    %c0_52 = arith.constant 0 : index
    %c0_53 = arith.constant 0 : index
    %c0_54 = arith.constant 0 : index
    %93 = vector.load %arg16[%c0_51, %c0_52, %c0_53, %c0_54] : memref<1x8x16x8xf32, #tpu.memory_space<vmem>>, vector<1x1x16x8xf32>
    %94 = vector.shape_cast %93 : vector<1x1x16x8xf32> to vector<16x8xf32>
    %95 = vector.shape_cast %92 : vector<16x8xf32> to vector<1x1x16x8xf32>
    tpu.vector_store %arg16[%c0_51, %c0_52, %c0_53, %c0_54], %95 {strides = array<i32>} : memref<1x8x16x8xf32, #tpu.memory_space<vmem>>, vector<1x1x16x8xf32>,
    %96 = vector.extract_strided_slice %9 {offsets = [1, 0, 0], sizes = [1, 16, 8], strides = [1, 1, 1]} : vector<8x16x8xf32> to vector<1x16x8xf32>
    %97 = vector.shape_cast %96 : vector<1x16x8xf32> to vector<16x8xf32>
    %98 = arith.truncf %97 : vector<16x8xf32> to vector<16x8xbf16>
    %cst_55 = arith.constant dense<0.000000e+00> : vector<16x8xf32>
    %99 = tpu.matmul %98, %88, %cst_55 {dimension_numbers = #tpu.dot_dimension_numbers<[1], [0], [0], [1], [0, 0, 1, 1], [], []>} : vector<16x8xbf16>, vector<8x8xbf16>, vector<16x8xf32> -> vector<16x8xf32>
    %c0_56 = arith.constant 0 : index
    %c1 = arith.constant 1 : index
    %c0_57 = arith.constant 0 : index
    %c0_58 = arith.constant 0 : index
    %100 = vector.load %arg16[%c0_56, %c1, %c0_57, %c0_58] : memref<1x8x16x8xf32, #tpu.memory_space<vmem>>, vector<1x1x16x8xf32>
    %101 = vector.shape_cast %100 : vector<1x1x16x8xf32> to vector<16x8xf32>
    %102 = vector.shape_cast %99 : vector<16x8xf32> to vector<1x1x16x8xf32>
    tpu.vector_store %arg16[%c0_56, %c1, %c0_57, %c0_58], %102 {strides = array<i32>} : memref<1x8x16x8xf32, #tpu.memory_space<vmem>>, vector<1x1x16x8xf32>,
    %103 = vector.extract_strided_slice %9 {offsets = [2, 0, 0], sizes = [1, 16, 8], strides = [1, 1, 1]} : vector<8x16x8xf32> to vector<1x16x8xf32>
    %104 = vector.shape_cast %103 : vector<1x16x8xf32> to vector<16x8xf32>
    %105 = arith.truncf %104 : vector<16x8xf32> to vector<16x8xbf16>
    %cst_59 = arith.constant dense<0.000000e+00> : vector<16x8xf32>
    %106 = tpu.matmul %105, %88, %cst_59 {dimension_numbers = #tpu.dot_dimension_numbers<[1], [0], [0], [1], [0, 0, 1, 1], [], []>} : vector<16x8xbf16>, vector<8x8xbf16>, vector<16x8xf32> -> vector<16x8xf32>
    %c0_60 = arith.constant 0 : index
    %c2 = arith.constant 2 : index
    %c0_61 = arith.constant 0 : index
    %c0_62 = arith.constant 0 : index
    %107 = vector.load %arg16[%c0_60, %c2, %c0_61, %c0_62] : memref<1x8x16x8xf32, #tpu.memory_space<vmem>>, vector<1x1x16x8xf32>
    %108 = vector.shape_cast %107 : vector<1x1x16x8xf32> to vector<16x8xf32>
    %109 = vector.shape_cast %106 : vector<16x8xf32> to vector<1x1x16x8xf32>
    tpu.vector_store %arg16[%c0_60, %c2, %c0_61, %c0_62], %109 {strides = array<i32>} : memref<1x8x16x8xf32, #tpu.memory_space<vmem>>, vector<1x1x16x8xf32>,
    %110 = vector.extract_strided_slice %9 {offsets = [3, 0, 0], sizes = [1, 16, 8], strides = [1, 1, 1]} : vector<8x16x8xf32> to vector<1x16x8xf32>
    %111 = vector.shape_cast %110 : vector<1x16x8xf32> to vector<16x8xf32>
    %112 = arith.truncf %111 : vector<16x8xf32> to vector<16x8xbf16>
    %cst_63 = arith.constant dense<0.000000e+00> : vector<16x8xf32>
    %113 = tpu.matmul %112, %88, %cst_63 {dimension_numbers = #tpu.dot_dimension_numbers<[1], [0], [0], [1], [0, 0, 1, 1], [], []>} : vector<16x8xbf16>, vector<8x8xbf16>, vector<16x8xf32> -> vector<16x8xf32>
    %c0_64 = arith.constant 0 : index
    %c3 = arith.constant 3 : index
    %c0_65 = arith.constant 0 : index
    %c0_66 = arith.constant 0 : index
    %114 = vector.load %arg16[%c0_64, %c3, %c0_65, %c0_66] : memref<1x8x16x8xf32, #tpu.memory_space<vmem>>, vector<1x1x16x8xf32>
    %115 = vector.shape_cast %114 : vector<1x1x16x8xf32> to vector<16x8xf32>
    %116 = vector.shape_cast %113 : vector<16x8xf32> to vector<1x1x16x8xf32>
    tpu.vector_store %arg16[%c0_64, %c3, %c0_65, %c0_66], %116 {strides = array<i32>} : memref<1x8x16x8xf32, #tpu.memory_space<vmem>>, vector<1x1x16x8xf32>,
    %117 = vector.extract_strided_slice %9 {offsets = [4, 0, 0], sizes = [1, 16, 8], strides = [1, 1, 1]} : vector<8x16x8xf32> to vector<1x16x8xf32>
    %118 = vector.shape_cast %117 : vector<1x16x8xf32> to vector<16x8xf32>
    %119 = arith.truncf %118 : vector<16x8xf32> to vector<16x8xbf16>
    %cst_67 = arith.constant dense<0.000000e+00> : vector<16x8xf32>
    %120 = tpu.matmul %119, %88, %cst_67 {dimension_numbers = #tpu.dot_dimension_numbers<[1], [0], [0], [1], [0, 0, 1, 1], [], []>} : vector<16x8xbf16>, vector<8x8xbf16>, vector<16x8xf32> -> vector<16x8xf32>
    %c0_68 = arith.constant 0 : index
    %c4 = arith.constant 4 : index
    %c0_69 = arith.constant 0 : index
    %c0_70 = arith.constant 0 : index
    %121 = vector.load %arg16[%c0_68, %c4, %c0_69, %c0_70] : memref<1x8x16x8xf32, #tpu.memory_space<vmem>>, vector<1x1x16x8xf32>
    %122 = vector.shape_cast %121 : vector<1x1x16x8xf32> to vector<16x8xf32>
    %123 = vector.shape_cast %120 : vector<16x8xf32> to vector<1x1x16x8xf32>
    tpu.vector_store %arg16[%c0_68, %c4, %c0_69, %c0_70], %123 {strides = array<i32>} : memref<1x8x16x8xf32, #tpu.memory_space<vmem>>, vector<1x1x16x8xf32>,
    %124 = vector.extract_strided_slice %9 {offsets = [5, 0, 0], sizes = [1, 16, 8], strides = [1, 1, 1]} : vector<8x16x8xf32> to vector<1x16x8xf32>
    %125 = vector.shape_cast %124 : vector<1x16x8xf32> to vector<16x8xf32>
    %126 = arith.truncf %125 : vector<16x8xf32> to vector<16x8xbf16>
    %cst_71 = arith.constant dense<0.000000e+00> : vector<16x8xf32>
    %127 = tpu.matmul %126, %88, %cst_71 {dimension_numbers = #tpu.dot_dimension_numbers<[1], [0], [0], [1], [0, 0, 1, 1], [], []>} : vector<16x8xbf16>, vector<8x8xbf16>, vector<16x8xf32> -> vector<16x8xf32>
    %c0_72 = arith.constant 0 : index
    %c5 = arith.constant 5 : index
    %c0_73 = arith.constant 0 : index
    %c0_74 = arith.constant 0 : index
    %128 = vector.load %arg16[%c0_72, %c5, %c0_73, %c0_74] : memref<1x8x16x8xf32, #tpu.memory_space<vmem>>, vector<1x1x16x8xf32>
    %129 = vector.shape_cast %128 : vector<1x1x16x8xf32> to vector<16x8xf32>
    %130 = vector.shape_cast %127 : vector<16x8xf32> to vector<1x1x16x8xf32>
    tpu.vector_store %arg16[%c0_72, %c5, %c0_73, %c0_74], %130 {strides = array<i32>} : memref<1x8x16x8xf32, #tpu.memory_space<vmem>>, vector<1x1x16x8xf32>,
    %131 = vector.extract_strided_slice %9 {offsets = [6, 0, 0], sizes = [1, 16, 8], strides = [1, 1, 1]} : vector<8x16x8xf32> to vector<1x16x8xf32>
    %132 = vector.shape_cast %131 : vector<1x16x8xf32> to vector<16x8xf32>
    %133 = arith.truncf %132 : vector<16x8xf32> to vector<16x8xbf16>
    %cst_75 = arith.constant dense<0.000000e+00> : vector<16x8xf32>
    %134 = tpu.matmul %133, %88, %cst_75 {dimension_numbers = #tpu.dot_dimension_numbers<[1], [0], [0], [1], [0, 0, 1, 1], [], []>} : vector<16x8xbf16>, vector<8x8xbf16>, vector<16x8xf32> -> vector<16x8xf32>
    %c0_76 = arith.constant 0 : index
    %c6 = arith.constant 6 : index
    %c0_77 = arith.constant 0 : index
    %c0_78 = arith.constant 0 : index
    %135 = vector.load %arg16[%c0_76, %c6, %c0_77, %c0_78] : memref<1x8x16x8xf32, #tpu.memory_space<vmem>>, vector<1x1x16x8xf32>
    %136 = vector.shape_cast %135 : vector<1x1x16x8xf32> to vector<16x8xf32>
    %137 = vector.shape_cast %134 : vector<16x8xf32> to vector<1x1x16x8xf32>
    tpu.vector_store %arg16[%c0_76, %c6, %c0_77, %c0_78], %137 {strides = array<i32>} : memref<1x8x16x8xf32, #tpu.memory_space<vmem>>, vector<1x1x16x8xf32>,
    %138 = vector.extract_strided_slice %9 {offsets = [7, 0, 0], sizes = [1, 16, 8], strides = [1, 1, 1]} : vector<8x16x8xf32> to vector<1x16x8xf32>
    %139 = vector.shape_cast %138 : vector<1x16x8xf32> to vector<16x8xf32>
    %140 = arith.truncf %139 : vector<16x8xf32> to vector<16x8xbf16>
    %cst_79 = arith.constant dense<0.000000e+00> : vector<16x8xf32>
    %141 = tpu.matmul %140, %88, %cst_79 {dimension_numbers = #tpu.dot_dimension_numbers<[1], [0], [0], [1], [0, 0, 1, 1], [], []>} : vector<16x8xbf16>, vector<8x8xbf16>, vector<16x8xf32> -> vector<16x8xf32>
    %c0_80 = arith.constant 0 : index
    %c7 = arith.constant 7 : index
    %c0_81 = arith.constant 0 : index
    %c0_82 = arith.constant 0 : index
    %142 = vector.load %arg16[%c0_80, %c7, %c0_81, %c0_82] : memref<1x8x16x8xf32, #tpu.memory_space<vmem>>, vector<1x1x16x8xf32>
    %143 = vector.shape_cast %142 : vector<1x1x16x8xf32> to vector<16x8xf32>
    %144 = vector.shape_cast %141 : vector<16x8xf32> to vector<1x1x16x8xf32>
    tpu.vector_store %arg16[%c0_80, %c7, %c0_81, %c0_82], %144 {strides = array<i32>} : memref<1x8x16x8xf32, #tpu.memory_space<vmem>>, vector<1x1x16x8xf32>,
    return
  }
  func.func @transform_0(%arg0: i32) -> (i32, i32, i32, i32) {
    %c0_i32 = arith.constant 0 : i32
    %c0_i32_0 = arith.constant 0 : i32
    %c0_i32_1 = arith.constant 0 : i32
    %c0_i32_2 = arith.constant 0 : i32
    return %arg0, %c0_i32, %c0_i32_0, %c0_i32_1 : i32, i32, i32, i32
  }
  func.func @transform_1(%arg0: i32) -> (i32, i32) {
    %c0_i32 = arith.constant 0 : i32
    %c0_i32_0 = arith.constant 0 : i32
    %c0_i32_1 = arith.constant 0 : i32
    return %c0_i32, %c0_i32_0 : i32, i32
  }
  func.func @transform_2(%arg0: i32) -> (i32, i32) {
    %c0_i32 = arith.constant 0 : i32
    %c0_i32_0 = arith.constant 0 : i32
    %c0_i32_1 = arith.constant 0 : i32
    return %c0_i32, %c0_i32_0 : i32, i32
  }
  func.func @transform_3(%arg0: i32) -> (i32, i32) {
    %c0_i32 = arith.constant 0 : i32
    %c0_i32_0 = arith.constant 0 : i32
    %c0_i32_1 = arith.constant 0 : i32
    return %c0_i32, %c0_i32_0 : i32, i32
  }
  func.func @transform_4(%arg0: i32) -> (i32, i32) {
    %c0_i32 = arith.constant 0 : i32
    %c0_i32_0 = arith.constant 0 : i32
    %c0_i32_1 = arith.constant 0 : i32
    return %c0_i32, %c0_i32_0 : i32, i32
  }
  func.func @transform_5(%arg0: i32) -> (i32, i32) {
    %c0_i32 = arith.constant 0 : i32
    %c0_i32_0 = arith.constant 0 : i32
    %c0_i32_1 = arith.constant 0 : i32
    return %c0_i32, %c0_i32_0 : i32, i32
  }
  func.func @transform_6(%arg0: i32) -> (i32, i32) {
    %c0_i32 = arith.constant 0 : i32
    %c0_i32_0 = arith.constant 0 : i32
    %c0_i32_1 = arith.constant 0 : i32
    return %c0_i32, %c0_i32_0 : i32, i32
  }
  func.func @transform_7(%arg0: i32) -> (i32, i32) {
    %c0_i32 = arith.constant 0 : i32
    %c0_i32_0 = arith.constant 0 : i32
    %c0_i32_1 = arith.constant 0 : i32
    return %c0_i32, %c0_i32_0 : i32, i32
  }
  func.func @transform_8(%arg0: i32) -> (i32, i32) {
    %c0_i32 = arith.constant 0 : i32
    %c0_i32_0 = arith.constant 0 : i32
    %c0_i32_1 = arith.constant 0 : i32
    return %c0_i32, %c0_i32_0 : i32, i32
  }
  func.func @transform_9(%arg0: i32) -> (i32, i32) {
    %c0_i32 = arith.constant 0 : i32
    %c0_i32_0 = arith.constant 0 : i32
    %c0_i32_1 = arith.constant 0 : i32
    return %c0_i32, %c0_i32_0 : i32, i32
  }
  func.func @transform_10(%arg0: i32) -> (i32, i32) {
    %c0_i32 = arith.constant 0 : i32
    %c0_i32_0 = arith.constant 0 : i32
    %c0_i32_1 = arith.constant 0 : i32
    return %c0_i32, %c0_i32_0 : i32, i32
  }
  func.func @transform_11(%arg0: i32) -> (i32, i32) {
    %c0_i32 = arith.constant 0 : i32
    %c0_i32_0 = arith.constant 0 : i32
    %c0_i32_1 = arith.constant 0 : i32
    return %c0_i32, %c0_i32_0 : i32, i32
  }
  func.func @transform_12(%arg0: i32) -> (i32, i32) {
    %c0_i32 = arith.constant 0 : i32
    %c0_i32_0 = arith.constant 0 : i32
    %c0_i32_1 = arith.constant 0 : i32
    return %c0_i32, %c0_i32_0 : i32, i32
  }
  func.func @transform_13(%arg0: i32) -> (i32, i32, i32) {
    %c0_i32 = arith.constant 0 : i32
    %c0_i32_0 = arith.constant 0 : i32
    %c0_i32_1 = arith.constant 0 : i32
    return %arg0, %c0_i32, %c0_i32_0 : i32, i32, i32
  }
  func.func @transform_14(%arg0: i32) -> (i32, i32, i32) {
    %c0_i32 = arith.constant 0 : i32
    %c0_i32_0 = arith.constant 0 : i32
    %c0_i32_1 = arith.constant 0 : i32
    return %arg0, %c0_i32, %c0_i32_0 : i32, i32, i32
  }
  func.func @transform_15(%arg0: i32) -> (i32, i32, i32, i32) {
    %c0_i32 = arith.constant 0 : i32
    %c0_i32_0 = arith.constant 0 : i32
    %c0_i32_1 = arith.constant 0 : i32
    %c0_i32_2 = arith.constant 0 : i32
    return %arg0, %c0_i32, %c0_i32_0, %c0_i32_1 : i32, i32, i32, i32
  }
}

module attributes {stable_mosaic.version = 11 : i64} {
  func.func @kernel(%arg0: i32, %arg1: memref<1x16x64xf32, #tpu.memory_space<vmem>>, %arg2: memref<1x16x64xf32, #tpu.memory_space<vmem>>, %arg3: memref<1x16x16xf32, #tpu.memory_space<vmem>>, %arg4: memref<3x16x16xf32, #tpu.memory_space<vmem>>, %arg5: memref<3x64x64xbf16, #tpu.memory_space<vmem>>, %arg6: memref<1x64xf32, #tpu.memory_space<vmem>>, %arg7: memref<64x64xbf16, #tpu.memory_space<vmem>>, %arg8: memref<1x64xf32, #tpu.memory_space<vmem>>, %arg9: memref<64x64xbf16, #tpu.memory_space<vmem>>, %arg10: memref<1x64xf32, #tpu.memory_space<vmem>>, %arg11: memref<64x8xf32, #tpu.memory_space<vmem>>, %arg12: memref<1x16x64xf32, #tpu.memory_space<vmem>>, %arg13: memref<1x2x8xf32, #tpu.memory_space<vmem>>) attributes {dimension_semantics = [#tpu.dimension_semantics<parallel>], iteration_bounds = array<i64: 2>, scalar_prefetch = 0 : i64, scratch_operands = 0 : i64, tpu.core_type = #tpu.core_type<tc>, window_params = [{transform_indices = @transform_0, window_bounds = array<i64: 1, 16, 64>}, {transform_indices = @transform_1, window_bounds = array<i64: 1, 16, 64>}, {transform_indices = @transform_2, window_bounds = array<i64: 1, 16, 16>}, {pipeline_mode = #tpu.pipeline_mode<synchronous>, transform_indices = @transform_3, window_bounds = array<i64: 3, 16, 16>}, {pipeline_mode = #tpu.pipeline_mode<synchronous>, transform_indices = @transform_4, window_bounds = array<i64: 3, 64, 64>}, {pipeline_mode = #tpu.pipeline_mode<synchronous>, transform_indices = @transform_5, window_bounds = array<i64: 1, 64>}, {pipeline_mode = #tpu.pipeline_mode<synchronous>, transform_indices = @transform_6, window_bounds = array<i64: 64, 64>}, {pipeline_mode = #tpu.pipeline_mode<synchronous>, transform_indices = @transform_7, window_bounds = array<i64: 1, 64>}, {pipeline_mode = #tpu.pipeline_mode<synchronous>, transform_indices = @transform_8, window_bounds = array<i64: 64, 64>}, {pipeline_mode = #tpu.pipeline_mode<synchronous>, transform_indices = @transform_9, window_bounds = array<i64: 1, 64>}, {pipeline_mode = #tpu.pipeline_mode<synchronous>, transform_indices = @transform_10, window_bounds = array<i64: 64, 8>}, {transform_indices = @transform_11, window_bounds = array<i64: 1, 16, 64>}, {transform_indices = @transform_12, window_bounds = array<i64: 1, 2, 8>}]} {
    %c0 = arith.constant 0 : index
    %c0_0 = arith.constant 0 : index
    %c0_1 = arith.constant 0 : index
    %0 = vector.load %arg1[%c0, %c0_0, %c0_1] : memref<1x16x64xf32, #tpu.memory_space<vmem>>, vector<1x16x64xf32>
    %1 = vector.shape_cast %0 : vector<1x16x64xf32> to vector<16x64xf32>
    %2 = arith.truncf %1 : vector<16x64xf32> to vector<16x64xbf16>
    %c0_2 = arith.constant 0 : index
    %c0_3 = arith.constant 0 : index
    %c0_4 = arith.constant 0 : index
    %3 = vector.load %arg2[%c0_2, %c0_3, %c0_4] : memref<1x16x64xf32, #tpu.memory_space<vmem>>, vector<1x16x64xf32>
    %4 = vector.shape_cast %3 : vector<1x16x64xf32> to vector<16x64xf32>
    %5 = arith.truncf %4 : vector<16x64xf32> to vector<16x64xbf16>
    %c0_5 = arith.constant 0 : index
    %c0_6 = arith.constant 0 : index
    %c0_7 = arith.constant 0 : index
    %6 = vector.load %arg3[%c0_5, %c0_6, %c0_7] : memref<1x16x16xf32, #tpu.memory_space<vmem>>, vector<1x16x16xf32>
    %7 = vector.shape_cast %6 : vector<1x16x16xf32> to vector<16x16xf32>
    %cst = arith.constant 0.000000e+00 : f32
    %8 = vector.broadcast %cst : f32 to vector<16x64xf32>
    %c0_8 = arith.constant 0 : index
    %c0_9 = arith.constant 0 : index
    %c0_10 = arith.constant 0 : index
    %9 = vector.load %arg4[%c0_8, %c0_9, %c0_10] : memref<3x16x16xf32, #tpu.memory_space<vmem>>, vector<1x16x16xf32>
    %10 = vector.shape_cast %9 : vector<1x16x16xf32> to vector<16x16xf32>
    %11 = arith.mulf %7, %10 : vector<16x16xf32>
    %12 = arith.truncf %11 : vector<16x16xf32> to vector<16x16xbf16>
    %cst_11 = arith.constant dense<0.000000e+00> : vector<16x64xf32>
    %13 = tpu.matmul %12, %2, %cst_11 {dimension_numbers = #tpu.dot_dimension_numbers<[1], [0], [0], [1], [0, 0, 1, 1], [], []>} : vector<16x16xbf16>, vector<16x64xbf16>, vector<16x64xf32> -> vector<16x64xf32>
    %14 = arith.truncf %13 : vector<16x64xf32> to vector<16x64xbf16>
    %c0_12 = arith.constant 0 : index
    %c0_13 = arith.constant 0 : index
    %c0_14 = arith.constant 0 : index
    %15 = vector.load %arg5[%c0_12, %c0_13, %c0_14] : memref<3x64x64xbf16, #tpu.memory_space<vmem>>, vector<1x64x64xbf16>
    %16 = vector.shape_cast %15 : vector<1x64x64xbf16> to vector<64x64xbf16>
    %cst_15 = arith.constant dense<0.000000e+00> : vector<16x64xf32>
    %17 = tpu.matmul %14, %16, %cst_15 {dimension_numbers = #tpu.dot_dimension_numbers<[1], [0], [0], [1], [0, 0, 1, 1], [], []>} : vector<16x64xbf16>, vector<64x64xbf16>, vector<16x64xf32> -> vector<16x64xf32>
    %18 = arith.addf %8, %17 : vector<16x64xf32>
    %c1 = arith.constant 1 : index
    %c0_16 = arith.constant 0 : index
    %c0_17 = arith.constant 0 : index
    %19 = vector.load %arg4[%c1, %c0_16, %c0_17] : memref<3x16x16xf32, #tpu.memory_space<vmem>>, vector<1x16x16xf32>
    %20 = vector.shape_cast %19 : vector<1x16x16xf32> to vector<16x16xf32>
    %21 = arith.mulf %7, %20 : vector<16x16xf32>
    %22 = arith.truncf %21 : vector<16x16xf32> to vector<16x16xbf16>
    %cst_18 = arith.constant dense<0.000000e+00> : vector<16x64xf32>
    %23 = tpu.matmul %22, %2, %cst_18 {dimension_numbers = #tpu.dot_dimension_numbers<[1], [0], [0], [1], [0, 0, 1, 1], [], []>} : vector<16x16xbf16>, vector<16x64xbf16>, vector<16x64xf32> -> vector<16x64xf32>
    %24 = arith.truncf %23 : vector<16x64xf32> to vector<16x64xbf16>
    %c1_19 = arith.constant 1 : index
    %c0_20 = arith.constant 0 : index
    %c0_21 = arith.constant 0 : index
    %25 = vector.load %arg5[%c1_19, %c0_20, %c0_21] : memref<3x64x64xbf16, #tpu.memory_space<vmem>>, vector<1x64x64xbf16>
    %26 = vector.shape_cast %25 : vector<1x64x64xbf16> to vector<64x64xbf16>
    %cst_22 = arith.constant dense<0.000000e+00> : vector<16x64xf32>
    %27 = tpu.matmul %24, %26, %cst_22 {dimension_numbers = #tpu.dot_dimension_numbers<[1], [0], [0], [1], [0, 0, 1, 1], [], []>} : vector<16x64xbf16>, vector<64x64xbf16>, vector<16x64xf32> -> vector<16x64xf32>
    %28 = arith.addf %18, %27 : vector<16x64xf32>
    %c2 = arith.constant 2 : index
    %c0_23 = arith.constant 0 : index
    %c0_24 = arith.constant 0 : index
    %29 = vector.load %arg4[%c2, %c0_23, %c0_24] : memref<3x16x16xf32, #tpu.memory_space<vmem>>, vector<1x16x16xf32>
    %30 = vector.shape_cast %29 : vector<1x16x16xf32> to vector<16x16xf32>
    %31 = arith.mulf %7, %30 : vector<16x16xf32>
    %32 = arith.truncf %31 : vector<16x16xf32> to vector<16x16xbf16>
    %cst_25 = arith.constant dense<0.000000e+00> : vector<16x64xf32>
    %33 = tpu.matmul %32, %2, %cst_25 {dimension_numbers = #tpu.dot_dimension_numbers<[1], [0], [0], [1], [0, 0, 1, 1], [], []>} : vector<16x16xbf16>, vector<16x64xbf16>, vector<16x64xf32> -> vector<16x64xf32>
    %34 = arith.truncf %33 : vector<16x64xf32> to vector<16x64xbf16>
    %c2_26 = arith.constant 2 : index
    %c0_27 = arith.constant 0 : index
    %c0_28 = arith.constant 0 : index
    %35 = vector.load %arg5[%c2_26, %c0_27, %c0_28] : memref<3x64x64xbf16, #tpu.memory_space<vmem>>, vector<1x64x64xbf16>
    %36 = vector.shape_cast %35 : vector<1x64x64xbf16> to vector<64x64xbf16>
    %cst_29 = arith.constant dense<0.000000e+00> : vector<16x64xf32>
    %37 = tpu.matmul %34, %36, %cst_29 {dimension_numbers = #tpu.dot_dimension_numbers<[1], [0], [0], [1], [0, 0, 1, 1], [], []>} : vector<16x64xbf16>, vector<64x64xbf16>, vector<16x64xf32> -> vector<16x64xf32>
    %38 = arith.addf %28, %37 : vector<16x64xf32>
    %c0_30 = arith.constant 0 : index
    %c0_31 = arith.constant 0 : index
    %39 = vector.load %arg6[%c0_30, %c0_31] : memref<1x64xf32, #tpu.memory_space<vmem>>, vector<1x64xf32>
    %40 = vector.broadcast %39 : vector<1x64xf32> to vector<16x64xf32>
    %41 = arith.addf %38, %40 : vector<16x64xf32>
    %cst_32 = arith.constant 0.000000e+00 : f32
    %42 = vector.broadcast %cst_32 : f32 to vector<16x64xf32>
    %43 = arith.maximumf %41, %42 : vector<16x64xf32>
    %44 = arith.truncf %43 : vector<16x64xf32> to vector<16x64xbf16>
    %c0_33 = arith.constant 0 : index
    %c0_34 = arith.constant 0 : index
    %45 = vector.load %arg7[%c0_33, %c0_34] : memref<64x64xbf16, #tpu.memory_space<vmem>>, vector<64x64xbf16>
    %cst_35 = arith.constant dense<0.000000e+00> : vector<16x64xf32>
    %46 = tpu.matmul %44, %45, %cst_35 {dimension_numbers = #tpu.dot_dimension_numbers<[1], [0], [0], [1], [0, 0, 1, 1], [], []>} : vector<16x64xbf16>, vector<64x64xbf16>, vector<16x64xf32> -> vector<16x64xf32>
    %c0_36 = arith.constant 0 : index
    %c0_37 = arith.constant 0 : index
    %47 = vector.load %arg8[%c0_36, %c0_37] : memref<1x64xf32, #tpu.memory_space<vmem>>, vector<1x64xf32>
    %48 = vector.broadcast %47 : vector<1x64xf32> to vector<16x64xf32>
    %49 = arith.addf %46, %48 : vector<16x64xf32>
    %c0_38 = arith.constant 0 : index
    %c0_39 = arith.constant 0 : index
    %50 = vector.load %arg9[%c0_38, %c0_39] : memref<64x64xbf16, #tpu.memory_space<vmem>>, vector<64x64xbf16>
    %cst_40 = arith.constant dense<0.000000e+00> : vector<16x64xf32>
    %51 = tpu.matmul %5, %50, %cst_40 {dimension_numbers = #tpu.dot_dimension_numbers<[1], [0], [0], [1], [0, 0, 1, 1], [], []>} : vector<16x64xbf16>, vector<64x64xbf16>, vector<16x64xf32> -> vector<16x64xf32>
    %c0_41 = arith.constant 0 : index
    %c0_42 = arith.constant 0 : index
    %52 = vector.load %arg10[%c0_41, %c0_42] : memref<1x64xf32, #tpu.memory_space<vmem>>, vector<1x64xf32>
    %53 = vector.broadcast %52 : vector<1x64xf32> to vector<16x64xf32>
    %54 = arith.addf %51, %53 : vector<16x64xf32>
    %55 = arith.addf %49, %54 : vector<16x64xf32>
    %cst_43 = arith.constant 0.000000e+00 : f32
    %56 = vector.broadcast %cst_43 : f32 to vector<16x64xf32>
    %57 = arith.maximumf %55, %56 : vector<16x64xf32>
    %c0_44 = arith.constant 0 : index
    %c0_45 = arith.constant 0 : index
    %c0_46 = arith.constant 0 : index
    %58 = vector.load %arg12[%c0_44, %c0_45, %c0_46] : memref<1x16x64xf32, #tpu.memory_space<vmem>>, vector<1x16x64xf32>
    %59 = vector.shape_cast %58 : vector<1x16x64xf32> to vector<16x64xf32>
    %60 = vector.shape_cast %57 : vector<16x64xf32> to vector<1x16x64xf32>
    tpu.vector_store %arg12[%c0_44, %c0_45, %c0_46], %60 {strides = array<i32>} : memref<1x16x64xf32, #tpu.memory_space<vmem>>, vector<1x16x64xf32>,
    %cst_47 = arith.constant dense<0.000000e+00> : vector<64xf32>
    %61 = vector.multi_reduction <add>, %57, %cst_47 [0] : vector<16x64xf32> to vector<64xf32>
    %62 = vector.shape_cast %61 : vector<64xf32> to vector<1x64xf32>
    %63 = arith.mulf %57, %57 : vector<16x64xf32>
    %cst_48 = arith.constant dense<0.000000e+00> : vector<64xf32>
    %64 = vector.multi_reduction <add>, %63, %cst_48 [0] : vector<16x64xf32> to vector<64xf32>
    %65 = vector.shape_cast %64 : vector<64xf32> to vector<1x64xf32>
    %c0_49 = arith.constant 0 : index
    %c0_50 = arith.constant 0 : index
    %66 = vector.load %arg11[%c0_49, %c0_50] : memref<64x8xf32, #tpu.memory_space<vmem>>, vector<64x8xf32>
    %cst_51 = arith.constant dense<0.000000e+00> : vector<1x8xf32>
    %67 = tpu.matmul %62, %66, %cst_51 {dimension_numbers = #tpu.dot_dimension_numbers<[1], [0], [0], [1], [0, 0, 1, 1], [], []>} : vector<1x64xf32>, vector<64x8xf32>, vector<1x8xf32> -> vector<1x8xf32>
    %c0_52 = arith.constant 0 : index
    %c0_53 = arith.constant 0 : index
    %c0_54 = arith.constant 0 : index
    %68 = vector.load %arg13[%c0_52, %c0_53, %c0_54] : memref<1x2x8xf32, #tpu.memory_space<vmem>>, vector<1x1x8xf32>
    %69 = vector.shape_cast %68 : vector<1x1x8xf32> to vector<1x8xf32>
    %70 = vector.shape_cast %67 : vector<1x8xf32> to vector<1x1x8xf32>
    tpu.vector_store %arg13[%c0_52, %c0_53, %c0_54], %70 {strides = array<i32>} : memref<1x2x8xf32, #tpu.memory_space<vmem>>, vector<1x1x8xf32>,
    %c0_55 = arith.constant 0 : index
    %c0_56 = arith.constant 0 : index
    %71 = vector.load %arg11[%c0_55, %c0_56] : memref<64x8xf32, #tpu.memory_space<vmem>>, vector<64x8xf32>
    %cst_57 = arith.constant dense<0.000000e+00> : vector<1x8xf32>
    %72 = tpu.matmul %65, %71, %cst_57 {dimension_numbers = #tpu.dot_dimension_numbers<[1], [0], [0], [1], [0, 0, 1, 1], [], []>} : vector<1x64xf32>, vector<64x8xf32>, vector<1x8xf32> -> vector<1x8xf32>
    %c0_58 = arith.constant 0 : index
    %c1_59 = arith.constant 1 : index
    %c0_60 = arith.constant 0 : index
    %73 = vector.load %arg13[%c0_58, %c1_59, %c0_60] : memref<1x2x8xf32, #tpu.memory_space<vmem>>, vector<1x1x8xf32>
    %74 = vector.shape_cast %73 : vector<1x1x8xf32> to vector<1x8xf32>
    %75 = vector.shape_cast %72 : vector<1x8xf32> to vector<1x1x8xf32>
    tpu.vector_store %arg13[%c0_58, %c1_59, %c0_60], %75 {strides = array<i32>} : memref<1x2x8xf32, #tpu.memory_space<vmem>>, vector<1x1x8xf32>,
    return
  }
  func.func @transform_0(%arg0: i32) -> (i32, i32, i32) {
    %c0_i32 = arith.constant 0 : i32
    %c0_i32_0 = arith.constant 0 : i32
    %c0_i32_1 = arith.constant 0 : i32
    return %arg0, %c0_i32, %c0_i32_0 : i32, i32, i32
  }
  func.func @transform_1(%arg0: i32) -> (i32, i32, i32) {
    %c0_i32 = arith.constant 0 : i32
    %c0_i32_0 = arith.constant 0 : i32
    %c0_i32_1 = arith.constant 0 : i32
    return %arg0, %c0_i32, %c0_i32_0 : i32, i32, i32
  }
  func.func @transform_2(%arg0: i32) -> (i32, i32, i32) {
    %c0_i32 = arith.constant 0 : i32
    %c0_i32_0 = arith.constant 0 : i32
    %c0_i32_1 = arith.constant 0 : i32
    return %arg0, %c0_i32, %c0_i32_0 : i32, i32, i32
  }
  func.func @transform_3(%arg0: i32) -> (i32, i32, i32) {
    %c0_i32 = arith.constant 0 : i32
    %c0_i32_0 = arith.constant 0 : i32
    %c0_i32_1 = arith.constant 0 : i32
    %c0_i32_2 = arith.constant 0 : i32
    return %c0_i32, %c0_i32_0, %c0_i32_1 : i32, i32, i32
  }
  func.func @transform_4(%arg0: i32) -> (i32, i32, i32) {
    %c0_i32 = arith.constant 0 : i32
    %c0_i32_0 = arith.constant 0 : i32
    %c0_i32_1 = arith.constant 0 : i32
    %c0_i32_2 = arith.constant 0 : i32
    return %c0_i32, %c0_i32_0, %c0_i32_1 : i32, i32, i32
  }
  func.func @transform_5(%arg0: i32) -> (i32, i32) {
    %c0_i32 = arith.constant 0 : i32
    %c0_i32_0 = arith.constant 0 : i32
    %c0_i32_1 = arith.constant 0 : i32
    return %c0_i32, %c0_i32_0 : i32, i32
  }
  func.func @transform_6(%arg0: i32) -> (i32, i32) {
    %c0_i32 = arith.constant 0 : i32
    %c0_i32_0 = arith.constant 0 : i32
    %c0_i32_1 = arith.constant 0 : i32
    return %c0_i32, %c0_i32_0 : i32, i32
  }
  func.func @transform_7(%arg0: i32) -> (i32, i32) {
    %c0_i32 = arith.constant 0 : i32
    %c0_i32_0 = arith.constant 0 : i32
    %c0_i32_1 = arith.constant 0 : i32
    return %c0_i32, %c0_i32_0 : i32, i32
  }
  func.func @transform_8(%arg0: i32) -> (i32, i32) {
    %c0_i32 = arith.constant 0 : i32
    %c0_i32_0 = arith.constant 0 : i32
    %c0_i32_1 = arith.constant 0 : i32
    return %c0_i32, %c0_i32_0 : i32, i32
  }
  func.func @transform_9(%arg0: i32) -> (i32, i32) {
    %c0_i32 = arith.constant 0 : i32
    %c0_i32_0 = arith.constant 0 : i32
    %c0_i32_1 = arith.constant 0 : i32
    return %c0_i32, %c0_i32_0 : i32, i32
  }
  func.func @transform_10(%arg0: i32) -> (i32, i32) {
    %c0_i32 = arith.constant 0 : i32
    %c0_i32_0 = arith.constant 0 : i32
    %c0_i32_1 = arith.constant 0 : i32
    return %c0_i32, %c0_i32_0 : i32, i32
  }
  func.func @transform_11(%arg0: i32) -> (i32, i32, i32) {
    %c0_i32 = arith.constant 0 : i32
    %c0_i32_0 = arith.constant 0 : i32
    %c0_i32_1 = arith.constant 0 : i32
    return %arg0, %c0_i32, %c0_i32_0 : i32, i32, i32
  }
  func.func @transform_12(%arg0: i32) -> (i32, i32, i32) {
    %c0_i32 = arith.constant 0 : i32
    %c0_i32_0 = arith.constant 0 : i32
    %c0_i32_1 = arith.constant 0 : i32
    return %arg0, %c0_i32, %c0_i32_0 : i32, i32, i32
  }
}

module attributes {stable_mosaic.version = 11 : i64} {
  func.func @_final_kernel(%arg0: i32, %arg1: memref<1x16x64xf32, #tpu.memory_space<vmem>>, %arg2: memref<1x64xf32, #tpu.memory_space<vmem>>, %arg3: memref<1x64xf32, #tpu.memory_space<vmem>>, %arg4: memref<64x12xbf16, #tpu.memory_space<vmem>>, %arg5: memref<1x12xf32, #tpu.memory_space<vmem>>, %arg6: memref<16x12xf32, #tpu.memory_space<vmem>>, %arg7: memref<1x16x12xf32, #tpu.memory_space<vmem>>) attributes {dimension_semantics = [#tpu.dimension_semantics<parallel>], iteration_bounds = array<i64: 2>, scalar_prefetch = 0 : i64, scratch_operands = 0 : i64, tpu.core_type = #tpu.core_type<tc>, window_params = [{transform_indices = @transform_0, window_bounds = array<i64: 1, 16, 64>}, {pipeline_mode = #tpu.pipeline_mode<synchronous>, transform_indices = @transform_1, window_bounds = array<i64: 1, 64>}, {pipeline_mode = #tpu.pipeline_mode<synchronous>, transform_indices = @transform_2, window_bounds = array<i64: 1, 64>}, {pipeline_mode = #tpu.pipeline_mode<synchronous>, transform_indices = @transform_3, window_bounds = array<i64: 64, 12>}, {pipeline_mode = #tpu.pipeline_mode<synchronous>, transform_indices = @transform_4, window_bounds = array<i64: 1, 12>}, {pipeline_mode = #tpu.pipeline_mode<synchronous>, transform_indices = @transform_5, window_bounds = array<i64: 16, 12>}, {transform_indices = @transform_6, window_bounds = array<i64: 1, 16, 12>}]} {
    %c0 = arith.constant 0 : index
    %c0_0 = arith.constant 0 : index
    %c0_1 = arith.constant 0 : index
    %0 = vector.load %arg1[%c0, %c0_0, %c0_1] : memref<1x16x64xf32, #tpu.memory_space<vmem>>, vector<1x16x64xf32>
    %1 = vector.shape_cast %0 : vector<1x16x64xf32> to vector<16x64xf32>
    %c0_2 = arith.constant 0 : index
    %c0_3 = arith.constant 0 : index
    %2 = vector.load %arg2[%c0_2, %c0_3] : memref<1x64xf32, #tpu.memory_space<vmem>>, vector<1x64xf32>
    %3 = vector.broadcast %2 : vector<1x64xf32> to vector<16x64xf32>
    %4 = arith.mulf %1, %3 : vector<16x64xf32>
    %c0_4 = arith.constant 0 : index
    %c0_5 = arith.constant 0 : index
    %5 = vector.load %arg3[%c0_4, %c0_5] : memref<1x64xf32, #tpu.memory_space<vmem>>, vector<1x64xf32>
    %6 = vector.broadcast %5 : vector<1x64xf32> to vector<16x64xf32>
    %7 = arith.addf %4, %6 : vector<16x64xf32>
    %8 = arith.truncf %7 : vector<16x64xf32> to vector<16x64xbf16>
    %c0_6 = arith.constant 0 : index
    %c0_7 = arith.constant 0 : index
    %9 = vector.load %arg4[%c0_6, %c0_7] : memref<64x12xbf16, #tpu.memory_space<vmem>>, vector<64x12xbf16>
    %cst = arith.constant dense<0.000000e+00> : vector<16x12xf32>
    %10 = tpu.matmul %8, %9, %cst {dimension_numbers = #tpu.dot_dimension_numbers<[1], [0], [0], [1], [0, 0, 1, 1], [], []>} : vector<16x64xbf16>, vector<64x12xbf16>, vector<16x12xf32> -> vector<16x12xf32>
    %c0_8 = arith.constant 0 : index
    %c0_9 = arith.constant 0 : index
    %11 = vector.load %arg5[%c0_8, %c0_9] : memref<1x12xf32, #tpu.memory_space<vmem>>, vector<1x12xf32>
    %12 = vector.broadcast %11 : vector<1x12xf32> to vector<16x12xf32>
    %13 = arith.addf %10, %12 : vector<16x12xf32>
    %c0_10 = arith.constant 0 : index
    %c0_11 = arith.constant 0 : index
    %14 = vector.load %arg6[%c0_10, %c0_11] : memref<16x12xf32, #tpu.memory_space<vmem>>, vector<16x12xf32>
    %15 = arith.mulf %13, %14 : vector<16x12xf32>
    %c0_12 = arith.constant 0 : index
    %c0_13 = arith.constant 0 : index
    %c0_14 = arith.constant 0 : index
    %16 = vector.load %arg7[%c0_12, %c0_13, %c0_14] : memref<1x16x12xf32, #tpu.memory_space<vmem>>, vector<1x16x12xf32>
    %17 = vector.shape_cast %16 : vector<1x16x12xf32> to vector<16x12xf32>
    %18 = vector.shape_cast %15 : vector<16x12xf32> to vector<1x16x12xf32>
    tpu.vector_store %arg7[%c0_12, %c0_13, %c0_14], %18 {strides = array<i32>} : memref<1x16x12xf32, #tpu.memory_space<vmem>>, vector<1x16x12xf32>,
    return
  }
  func.func @transform_0(%arg0: i32) -> (i32, i32, i32) {
    %c0_i32 = arith.constant 0 : i32
    %c0_i32_0 = arith.constant 0 : i32
    %c0_i32_1 = arith.constant 0 : i32
    return %arg0, %c0_i32, %c0_i32_0 : i32, i32, i32
  }
  func.func @transform_1(%arg0: i32) -> (i32, i32) {
    %c0_i32 = arith.constant 0 : i32
    %c0_i32_0 = arith.constant 0 : i32
    %c0_i32_1 = arith.constant 0 : i32
    return %c0_i32, %c0_i32_0 : i32, i32
  }
  func.func @transform_2(%arg0: i32) -> (i32, i32) {
    %c0_i32 = arith.constant 0 : i32
    %c0_i32_0 = arith.constant 0 : i32
    %c0_i32_1 = arith.constant 0 : i32
    return %c0_i32, %c0_i32_0 : i32, i32
  }
  func.func @transform_3(%arg0: i32) -> (i32, i32) {
    %c0_i32 = arith.constant 0 : i32
    %c0_i32_0 = arith.constant 0 : i32
    %c0_i32_1 = arith.constant 0 : i32
    return %c0_i32, %c0_i32_0 : i32, i32
  }
  func.func @transform_4(%arg0: i32) -> (i32, i32) {
    %c0_i32 = arith.constant 0 : i32
    %c0_i32_0 = arith.constant 0 : i32
    %c0_i32_1 = arith.constant 0 : i32
    return %c0_i32, %c0_i32_0 : i32, i32
  }
  func.func @transform_5(%arg0: i32) -> (i32, i32) {
    %c0_i32 = arith.constant 0 : i32
    %c0_i32_0 = arith.constant 0 : i32
    %c0_i32_1 = arith.constant 0 : i32
    return %c0_i32, %c0_i32_0 : i32, i32
  }
  func.func @transform_6(%arg0: i32) -> (i32, i32, i32) {
    %c0_i32 = arith.constant 0 : i32
    %c0_i32_0 = arith.constant 0 : i32
    %c0_i32_1 = arith.constant 0 : i32
    return %arg0, %c0_i32, %c0_i32_0 : i32, i32, i32
  }
}

</mosaic_0001>

<bundles_post_ra>
// kernel: mul.76
= control target key start
LH: loop header
LB: loop body
LE: loop exit
PB: predicated region body
PF: predicated region fallthrough
CT: control target
= control target key end

     0   :  { %s67_s10 = smov 56   ;;  %s68_s11 = smov 40   ;;  %vm3_vm0 = vcmask 64512   ;;  %vm9_vm1 = vcmask 523712   ;;  %vm15_vm2 = vcmask 458112   ;;  %vm21_vm3 = vcmask 392512   ;;  %s111_s0 = inlined_call_operand.vmem [shape: f32[8,8], index: 0, kind: input, shape index: {}]   ;;  %s112_s1 = inlined_call_operand.vmem [shape: f32[64], index: 1, kind: output, shape index: {}]  }
   0x1   :  { %v53_v0 = vld [vmem:[%s111_s0 + $0x7] sm:$0x1]   ;;  %v55_v1 = vld [vmem:[%s111_s0 + $0x5] sm:$0x1]   ;;  %v57_v2 = vld [vmem:[%s111_s0 + $0x3] sm:$0x1]  }
   0x2   :  { %7 = vrot.lane.b32.xlu0 %v53_v0, %s67_s10  ;;  %19 = vrot.lane.b32.xlu1 %v55_v1, %s68_s11  ;;  %s69_s14 = smov 24   ;;  %v54_v3 = vld [vmem:[%s111_s0 + $0x6] sm:$0x1]   ;;  %v56_v4 = vld [vmem:[%s111_s0 + $0x4] sm:$0x1]   ;;  %s70_s21 = smov 48  }
   0x3   :  { %31 = vrot.lane.b32.xlu2 %v57_v2, %s69_s14  ;;  %v58_v5 = vld [vmem:[%s111_s0 + $0x2] sm:$0x1]   ;;  %s71_s22 = smov 32   ;;  %s72_s23 = smov 16   ;;  %v59_v6 = vld [vmem:[%s111_s0 + $0x1] sm:$0x1]  }
   0x4   :  { %s73_s26 = smov 8   ;;  %v2_v7 = vld [vmem:[%s111_s0] sm:$0x1]   ;;  %vm27_vm4 = vcmask 326912   ;;  %vm33_vm5 = vcmask 261312   ;;  %vm39_vm6 = vcmask 195712  }
   0x5   :  { %4 = vst.msk [vmem:[#allocation0] sm:$0x1] %vm3_vm0, %v2_v7   ;;  %vm45_vm7 = vcmask 130112  }
   0xa   :  { %13 = vrot.lane.b32.xlu0 %v54_v3, %s70_s21  ;;  %25 = vrot.lane.b32.xlu1 %v56_v4, %s71_s22 }
   0xb   :  { %37 = vrot.lane.b32.xlu2 %v58_v5, %s72_s23 }
  0x12   :  { %43 = vrot.lane.b32.xlu0 %v59_v6, %s73_s26 }
  0x5d   :  { %v32_v8 = vpop.permute.xlu2 %31  }
  0x65   :  { %v38_v9 = vpop.permute.xlu2 %37  }
  0x74   :  { %v8_v10 = vpop.permute.xlu0 %7   ;;  %v20_v11 = vpop.permute.xlu1 %19  }
  0x75   :  { %10 = vst.msk [vmem:[#allocation0] sm:$0x1] %vm9_vm1, %v8_v10  }
  0x7c   :  { %v14_v12 = vpop.permute.xlu0 %13   ;;  %v26_v13 = vpop.permute.xlu1 %25  }
  0x7d   :  { %16 = vst.msk [vmem:[#allocation0] sm:$0x1] %vm15_vm2, %v14_v12  }
  0x7e   :  { %22 = vst.msk [vmem:[#allocation0] sm:$0x1] %vm21_vm3, %v20_v11  }
  0x7f   :  { %28 = vst.msk [vmem:[#allocation0] sm:$0x1] %vm27_vm4, %v26_v13  }
  0x80   :  { %34 = vst.msk [vmem:[#allocation0] sm:$0x1] %vm33_vm5, %v32_v8  }
  0x81   :  { %40 = vst.msk [vmem:[#allocation0] sm:$0x1] %vm39_vm6, %v38_v9  }
  0x84   :  { %v44_v14 = vpop.permute.xlu0 %43  }
  0x85   :  { %46 = vst.msk [vmem:[#allocation0] sm:$0x1] %vm45_vm7, %v44_v14  }
  0x8c   :  { %v49_v15 = vld [vmem:[#allocation0] sm:$0x1] }
  0x8d   :  { %52 = vst [vmem:[%s112_s1] sm:$0x1] %v49_v15 }

// kernel: astgcn_block_forward.6
= control target key start
LH: loop header
LB: loop body
LE: loop exit
PB: predicated region body
PF: predicated region fallthrough
CT: control target
= control target key end

     0   :  { %s1137_s21 = smov 0   ;;  %s1273_s0 = inlined_call_operand.vmem [shape: f32[2,16,32], index: 0, kind: input, shape index: {}]   ;;  %s1274_s1 = inlined_call_operand.vmem [shape: f32[2,16,32], index: 1, kind: input, shape index: {}]   ;;  %s1275_s2 = inlined_call_operand.vmem [shape: f32[2,16,16], index: 2, kind: input, shape index: {}]   ;;  %s1276_s3 = inlined_call_operand.vmem [shape: f32[3,16,16], index: 3, kind: input, shape index: {}]   ;;  %s1277_s4 = inlined_call_operand.vmem [shape: bf16[3,32,64], index: 4, kind: input, shape index: {}]   ;;  %s1278_s5 = inlined_call_operand.vmem [shape: f32[1,64], index: 5, kind: input, shape index: {}]   ;;  %s1279_s6 = inlined_call_operand.vmem [shape: bf16[64,64], index: 6, kind: input, shape index: {}]   ;;  %s1280_s7 = inlined_call_operand.vmem [shape: f32[1,64], index: 7, kind: input, shape index: {}]   ;;  %s1281_s8 = inlined_call_operand.vmem [shape: bf16[32,64], index: 8, kind: input, shape index: {}]   ;;  %s1282_s9 = inlined_call_operand.vmem [shape: f32[1,64], index: 9, kind: input, shape index: {}]   ;;  %s1283_s10 = inlined_call_operand.vmem [shape: f32[64,8], index: 10, kind: input, shape index: {}]   ;;  %s1284_s11 = inlined_call_operand.vmem [shape: f32[2,16,64], index: 11, kind: output, shape index: {0}]   ;;  %s1285_s12 = inlined_call_operand.vmem [shape: f32[2,2,8], index: 12, kind: output, shape index: {1}]  }
   0x1 LB: > { %s951_s22 = sadd.s32 4294967295, %s1070_s21   ;;  %p955_p0 = scmp.ge.s32.totalorder %s1070_s21, 1  ;;  %s1070_s21 = sphi %s1137_s21, %s23_s21  }
   0x2   : > { %p385_p1 = scmp.lt.s32.totalorder %s1070_s21, 3 }
   0x4   : > { %p386_p2 = pnand %p955_p0, %p385_p1 }
   0x5   : > { %p441_p3 = scmp.lt.s32.totalorder (!%p386_p2), %s951_s22, 1 }
   0x6   : > { %389 = sbr.rel (%p386_p2) target bundleno = 604 (0x25c), region = 64 }
   0xb   : > { %s1287_s22 = smov (!%p441_p3, %s951_s22), 1  ;;  %v474_v0 = vld [vmem:[%s1276_s3] sm:$0xff]  ;;  %v966_v1 = vld [vmem:[%s1276_s3 + $0x10] sm:$0xff]  ;;  %v475_v2 = vld [vmem:[%s1276_s3 + $0x8] sm:$0xff]  ;;  %vm479_vm0 = vcmask 130048   ;;  %vm543_vm1 = vcmask 261120  }
   0xc   : > { %s1148_s23 = sshll.u32 %s1287_s22, 4  ;;  %v967_v3 = vld [vmem:[%s1276_s3 + $0x18] sm:$0xff]  ;;  %v991_v15 = vld [vmem:[%s1276_s3 + $0x20] sm:$0xff]  ;;  %v992_v16 = vld [vmem:[%s1276_s3 + $0x28] sm:$0xff]  ;;  %vm695_vm2 = vcmask 523264   ;;  %vm807_vm3 = vcmask 57344  }
   0xd   : > { %s445_s30 = scalar_lea.vmem %s1273_s0, %s1148_s23  ;;  %s455_s15 = scalar_lea.vmem %s1275_s2, %s1148_s23  ;;  %v1044_v20 = vld [vmem:[%s1277_s4 + $0x18] sm:$0xff]  ;;  %v1042_v21 = vld [vmem:[%s1277_s4 + $0x8] sm:$0xff]  ;;  %v1043_v22 = vld [vmem:[%s1277_s4 + $0x10] sm:$0xff] }
   0xe   : > { %v466_v4 = vld [vmem:[%s445_s30] sm:$0xff]  ;;  %v467_v5 = vld [vmem:[%s445_s30 + $0x8] sm:$0xff]  ;;  %553 = vmatpush.bf16.msra.mxu2 %v1044_v20  ;;  %582 = vmatpush.bf16.msra.mxu3 %v1042_v21  ;;  %v1050_v35 = vld [vmem:[%s1279_s6 + $0x18] sm:$0xff]  ;;  %s450_s30 = scalar_lea.vmem %s1274_s1, %s1148_s23 }
   0xf   : > { %v472_v6 = vld [vmem:[%s455_s15] sm:$0xff]  ;;  %v468_v7 = vpack.c.bf16 %v467_v5, %v466_v4  ;;  %v473_v8 = vld [vmem:[%s455_s15 + $0x8] sm:$0xff]  ;;  %v1049_v37 = vld [vmem:[%s1279_s6 + $0x10] sm:$0xff]  ;;  %s460_s15 = scalar_lea.vmem %s1284_s11, %s1148_s23  ;;  %s964_s23 = sshll.u32 %s1287_s22, 1 }
  0x10   : > { %v476_v9 = vmul.f32 %v474_v0, %v472_v6  ;;  %v505_v10 = vmul.f32 %v966_v1, %v472_v6  ;;  %v477_v11 = vmul.f32 %v475_v2, %v473_v8  ;;  %v506_v12 = vmul.f32 %v967_v3, %v473_v8  ;;  %v1041_v23 = vld [vmem:[%s1277_s4] sm:$0xff]  ;;  %v1046_v24 = vld [vmem:[%s1277_s4 + $0x28] sm:$0xff]  ;;  %v783_v60 = vld [vmem:[%s1283_s10 + $0x38] sm:$0xff]  ;;  %s464_s18 = scalar_lea.vmem %s1285_s12, %s964_s23 }
  0x11   : > { %490 = vmatpush.bf16.msra.mxu0 %v468_v7  ;;  %518 = vmatpush.bf16.msra.mxu1 %v468_v7  ;;  %v593_v17 = vmul.f32 %v991_v15, %v472_v6  ;;  %v594_v18 = vmul.f32 %v992_v16, %v473_v8  ;;  %v1045_v25 = vld [vmem:[%s1277_s4 + $0x20] sm:$0xff]  ;;  %v1052_v36 = vld [vmem:[%s1281_s8 + $0x8] sm:$0xff]  ;;  %v782_v61 = vld [vmem:[%s1283_s10 + $0x30] sm:$0xff] }
  0x12   : > { %v478_v13 = vpack.c.bf16 %v477_v11, %v476_v9  ;;  %v507_v14 = vpack.c.bf16 %v506_v12, %v505_v10  ;;  %554 = vmatpush.bf16.msra.mxu2 %v1043_v22  ;;  %583 = vmatpush.bf16.msra.mxu3 %v1041_v23  ;;  %v1051_v38 = vld [vmem:[%s1281_s8] sm:$0xff]  ;;  %v470_v40 = vld [vmem:[%s450_s30 + $0x8] sm:$0xff]  ;;  %v779_v0 = vld [vmem:[%s1283_s10 + $0x18] sm:$0xff] }
  0x13   : > { %v595_v19 = vpack.c.bf16 %v594_v18, %v593_v17  ;;  %v469_v39 = vld [vmem:[%s450_s30] sm:$0xff]  ;;  %v1048_v42 = vld [vmem:[%s1279_s6 + $0x8] sm:$0xff]  ;;  %v778_v1 = vld [vmem:[%s1283_s10 + $0x10] sm:$0xff] }
  0x14   : > { %965 = vmatmul.msk.bf16.vlgmr.msra.gmra.mxu0 %vm479_vm0, %v478_v13  ;;  %968 = vmatmul.msk.bf16.vlgmr.msra.gmra.mxu1 %vm479_vm0, %v507_v14  ;;  %v471_v41 = vpack.c.bf16 %v470_v40, %v469_v39  ;;  %v1047_v43 = vld [vmem:[%s1279_s6] sm:$0xff]  ;;  %v781_v62 = vld [vmem:[%s1283_s10 + $0x28] sm:$0xff] }
  0x15   : > { %606 = vmatpush.bf16.msrb.mxu0 %v468_v7  ;;  %640 = vmatpush.bf16.msrb.mxu1 %v1046_v24  ;;  %v1061_v51 = vld [vmem:[%s1278_s5] ss:$0 sm:$0xff]  ;;  %v777_v2 = vld [vmem:[%s1283_s10 + $0x8] sm:$0xff] }
  0x16   : > { %703 = vmatpush.bf16.msrb.mxu2 %v1050_v35  ;;  %742 = vmatpush.bf16.msrb.mxu3 %v1052_v36  ;;  %v780_v63 = vld [vmem:[%s1283_s10 + $0x20] sm:$0xff] }
  0x17   : > { %v776_v3 = vld [vmem:[%s1283_s10] sm:$0xff] }
  0x18   : > { %v1062_v4 = vld [vmem:[%s1282_s9] ss:$0 sm:$0xff] }
  0x19   : > { %641 = vmatpush.bf16.msrb.mxu1 %v1045_v25  ;;  %795 = vmatpush.msra.mxu0 %v783_v60  ;;  %v1063_v6 = vld [vmem:[%s1280_s7] ss:$0 sm:$0xff] }
  0x1a   : > { %704 = vmatpush.bf16.msrb.mxu2 %v1049_v37  ;;  %743 = vmatpush.bf16.msrb.mxu3 %v1051_v38 }
  0x1b   : > { %796 = vmatpush.msra.mxu0 %v782_v61 }
  0x1d   : > { %828 = vmatpush.msra.mxu1 %v783_v60  ;;  %797 = vmatpush.msra.mxu0 %v781_v62 }
  0x1e   : > { %705 = vmatpush.bf16.msrb.mxu2 %v1048_v42 }
  0x1f   : > { %829 = vmatpush.msra.mxu1 %v782_v61  ;;  %798 = vmatpush.msra.mxu0 %v780_v63 }
  0x21   : > { %830 = vmatpush.msra.mxu1 %v781_v62  ;;  %799 = vmatpush.msra.mxu0 %v779_v0 }
  0x22   : > { %706 = vmatpush.bf16.msrb.mxu2 %v1047_v43 }
  0x23   : > { %831 = vmatpush.msra.mxu1 %v780_v63  ;;  %800 = vmatpush.msra.mxu0 %v778_v1 }
  0x24   : > { %993 = vmatmul.msk.bf16.vlgmr.msrb.gmra.mxu0 %vm479_vm0, %v595_v19 }
  0x25   : > { %832 = vmatpush.msra.mxu1 %v779_v0  ;;  %801 = vmatpush.msra.mxu0 %v777_v2 }
  0x27   : > { %833 = vmatpush.msra.mxu1 %v778_v1  ;;  %802 = vmatpush.msra.mxu0 %v776_v3 }
  0x29   : > { %834 = vmatpush.msra.mxu1 %v777_v2 }
  0x2b   : > { %835 = vmatpush.msra.mxu1 %v776_v3 }
  0x91   : > { %v492_v26 = vpop.f32.mrf.mxu0  ;;  %v520_v27 = vpop.f32.mrf.mxu1 }
  0x99   : > { %v494_v28 = vpop.f32.mrf.mxu0  ;;  %v522_v29 = vpop.f32.mrf.mxu1 }
  0x9a   : > { %v497_v30 = vpack.c.bf16 %v494_v28, %v492_v26  ;;  %v525_v31 = vpack.c.bf16 %v522_v29, %v520_v27 }
  0x9c   : > { %981 = vmatmul.msk.bf16.vlgmr.msra.gmra.mxu2 %vm543_vm1, %v525_v31  ;;  %990 = vmatmul.msk.bf16.vlgmr.msra.gmra.mxu3 %vm543_vm1, %v497_v30 }
  0xa1   : > { %v608_v32 = vpop.f32.mrf.mxu0 }
  0xa9   : > { %v610_v33 = vpop.f32.mrf.mxu0 }
  0xaa   : > { %v613_v34 = vpack.c.bf16 %v610_v33, %v608_v32 }
  0xac   : > { %1006 = vmatmul.msk.bf16.vlgmr.msrb.gmra.mxu1 %vm543_vm1, %v613_v34  ;;  %1032 = vmatmul.msk.bf16.vlgmr.msrb.gmra.mxu3 %vm543_vm1, %v471_v41 }
 0x11f   : > { %v556_v44 = vpop.f32.mrf.mxu2  ;;  %v585_v45 = vpop.f32.mrf.mxu3 }
 0x120   : > { %v586_v47 = vadd.f32 %v585_v45, %v556_v44 }
 0x127   : > { %v558_v48 = vpop.f32.mrf.mxu2  ;;  %v587_v49 = vpop.f32.mrf.mxu3 }
 0x128   : > { %v588_v52 = vadd.f32 %v587_v49, %v558_v48 }
 0x129   : > { %v643_v46 = vpop.f32.mrf.mxu1 }
 0x12a   : > { %v648_v50 = vadd.f32 %v643_v46, %v586_v47 }
 0x12c   : > { %v654_v54 = vadd.f32 %v1061_v51, %v648_v50 }
 0x12e   : > { %v656_v57 = vmax.f32 %v654_v54, 0.0 }
 0x12f   : > { %v745_v5 = vpop.f32.mrf.mxu3 }
 0x130   : > { %v746_v7 = vadd.f32 %v1062_v4, %v745_v5 }
 0x131   : > { %v645_v53 = vpop.f32.mrf.mxu1 }
 0x132   : > { %v649_v55 = vadd.f32 %v645_v53, %v588_v52 }
 0x134   : > { %v655_v56 = vadd.f32 %v1061_v51, %v649_v55 }
 0x136   : > { %v657_v58 = vmax.f32 %v655_v56, 0.0 }
 0x137   : > { %v747_v12 = vpop.f32.mrf.mxu3 }
 0x138   : > { %v658_v59 = vpack.c.bf16 %v657_v58, %v656_v57  ;;  %v748_v14 = vadd.f32 %v1062_v4, %v747_v12 }
 0x13a   : > { %1023 = vmatmul.msk.bf16.vlgmr.msrb.gmra.mxu2 %vm695_vm2, %v658_v59 }
 0x1bd   : > { %v708_v8 = vpop.f32.mrf.mxu2 }
 0x1be   : > { %v709_v9 = vadd.f32 %v1063_v6, %v708_v8 }
 0x1c0   : > { %v750_v10 = vadd.f32 %v746_v7, %v709_v9 }
 0x1c2   : > { %v752_v11 = vmax.f32 %v750_v10, 0.0 }
 0x1c4   : > { %754 = vst.msk [vmem:[%s460_s15] sm:$0xff] %vm695_vm2, %v752_v11  ;;  %v765_v17 = vmul.f32 %v752_v11, %v752_v11  ;;  %v756_v19 = vsel %vm695_vm2, %v752_v11, 0.0 }
 0x1c5   : > { %v710_v13 = vpop.f32.mrf.mxu2 }
 0x1c6   : > { %v711_v15 = vadd.f32 %v1063_v6, %v710_v13  ;;  %v767_v23 = vsel %vm695_vm2, %v765_v17, 0.0 }
 0x1c8   : > { %v751_v16 = vadd.f32 %v748_v14, %v711_v15 }
 0x1ca   : > { %v753_v18 = vmax.f32 %v751_v16, 0.0 }
 0x1cc   : > { %755 = vst.msk [vmem:[%s460_s15 + $0x8] sm:$0xff] %vm695_vm2, %v753_v18  ;;  %v757_v20 = vsel %vm695_vm2, %v753_v18, 0.0  ;;  %v766_v21 = vmul.f32 %v753_v18, %v753_v18 }
 0x1cd   : > { %v758_v22 = vadd.f32 %v757_v20, %v756_v19 }
 0x1ce   : > { %v768_v24 = vsel %vm695_vm2, %v766_v21, 0.0 }
 0x1cf   : > { %v759_v25 = vrot.slane %v758_v22, 4  ;;  %v769_v26 = vadd.f32 %v768_v24, %v767_v23 }
 0x1d1   : > { %v760_v27 = vadd.f32 %v759_v25, %v758_v22  ;;  %v770_v28 = vrot.slane %v769_v26, 4 }
 0x1d3   : > { %v761_v29 = vrot.slane %v760_v27, 2  ;;  %v771_v30 = vadd.f32 %v770_v28, %v769_v26 }
 0x1d5   : > { %v762_v31 = vadd.f32 %v761_v29, %v760_v27  ;;  %v772_v32 = vrot.slane %v771_v30, 2 }
 0x1d7   : > { %v763_v33 = vrot.slane %v762_v31, 1  ;;  %v773_v34 = vadd.f32 %v772_v32, %v771_v30 }
 0x1d9   : > { %v764_v35 = vadd.f32 %v763_v33, %v762_v31  ;;  %v774_v36 = vrot.slane %v773_v34, 1 }
 0x1db   : > { %1033 = vmatmul.msk.f32.vlgmr.msra.gmra.mxu0 %vm695_vm2, %v764_v35  ;;  %v775_v37 = vadd.f32 %v774_v36, %v773_v34 }
 0x1dd   : > { %1034 = vmatmul.msk.f32.vlgmr.msra.gmra.mxu1 %vm695_vm2, %v775_v37 }
 0x258   : > { %v804_v38 = vpop.f32.mrf.mxu0 }
 0x259   : > { %808 = vst.msk [vmem:[%s464_s18] sm:$0x1] %vm807_vm3, %v804_v38 }
 0x25a   : > { %v837_v39 = vpop.f32.mrf.mxu1 }
 0x25b   : > { %840 = vst.msk [vmem:[%s464_s18 + $0x1] sm:$0x1] %vm807_vm3, %v837_v39 }
 0x25c PF: > { %s23_s21 = sadd.s32 1, %s1070_s21  }
 0x25d   : > { %p20_p4 = scmp.ge.s32.totalorder %s23_s21, 4  }
 0x25f   :  { %22 = sbr.rel (!%p20_p4) target bundleno = 1 (0x1), region = 116 }

// kernel: astgcn_block_forward.5
= control target key start
LH: loop header
LB: loop body
LE: loop exit
PB: predicated region body
PF: predicated region fallthrough
CT: control target
= control target key end

     0   :  { %s2004_s0 = inlined_call_operand.vmem [shape: f32[2,4,16,8], index: 0, kind: input, shape index: {}]   ;;  %s2005_s1 = inlined_call_operand.vmem [shape: f32[4,1], index: 1, kind: input, shape index: {}]   ;;  %s2006_s2 = inlined_call_operand.vmem [shape: f32[4,1], index: 2, kind: input, shape index: {}]   ;;  %s2007_s3 = inlined_call_operand.vmem [shape: f32[4,1], index: 3, kind: input, shape index: {}]   ;;  %s2008_s4 = inlined_call_operand.vmem [shape: f32[16,1], index: 4, kind: input, shape index: {}]   ;;  %s2009_s5 = inlined_call_operand.vmem [shape: f32[16,4], index: 5, kind: input, shape index: {}]   ;;  %s2010_s6 = inlined_call_operand.vmem [shape: f32[8,8], index: 6, kind: input, shape index: {}]   ;;  %s2011_s7 = inlined_call_operand.vmem [shape: f32[8,8], index: 7, kind: input, shape index: {}]   ;;  %s2012_s8 = inlined_call_operand.vmem [shape: f32[4,1], index: 8, kind: input, shape index: {}]   ;;  %s2013_s9 = inlined_call_operand.vmem [shape: f32[1,8], index: 9, kind: input, shape index: {}]   ;;  %s2014_s10 = inlined_call_operand.vmem [shape: f32[8,4], index: 10, kind: input, shape index: {}]   ;;  %s2015_s11 = inlined_call_operand.vmem [shape: f32[16,16], index: 11, kind: input, shape index: {}]   ;;  %s2016_s12 = inlined_call_operand.vmem [shape: f32[16,16], index: 12, kind: input, shape index: {}]   ;;  %s2017_s13 = inlined_call_operand.hbm [shape: f32[2,8,8], index: 13, kind: output, shape index: {0}]   ;;  %s2018_s14 = inlined_call_operand.vmem [shape: f32[2,16,16], index: 14, kind: output, shape index: {1}]   ;;  %s2019_s15 = inlined_call_operand.vmem [shape: f32[2,4,16,8], index: 15, kind: output, shape index: {2}]  }
   0x1   :  { %2021 = sst [smem:[#allocation5_spill]] %s2004_s0 }
   0x2   :  { %2022 = sst [smem:[#allocation6_spill]] %s2005_s1 }
   0x3   :  { %2023 = sst [smem:[#allocation7_spill]] %s2006_s2 }
   0x4   :  { %2024 = sst [smem:[#allocation8_spill]] %s2007_s3 }
   0x5   :  { %2025 = sst [smem:[#allocation9_spill]] %s2008_s4 }
   0x6   :  { %2026 = sst [smem:[#allocation10_spill]] %s2009_s5 }
   0x7   :  { %2027 = sst [smem:[#allocation11_spill]] %s2010_s6 }
   0x8   :  { %2028 = sst [smem:[#allocation12_spill]] %s2011_s7 }
   0x9   :  { %2029 = sst [smem:[#allocation13_spill]] %s2012_s8 }
   0xa   :  { %2030 = sst [smem:[#allocation14_spill]] %s2013_s9 }
   0xb   :  { %21 = vsyncpa [#allocation3], 0 }
   0xc   :  { %23 = vsyncpa [#allocation3 + $0x1], 0  ;;  %s1688_s18 = smov 0   ;;  %s1690_s19 = smov 0  }
   0xd   :  { %s1692_s20 = smov 0   ;;  %s1694_s21 = smov 0  }
   0xe LB: > { %s1709_s22 = sadd.s32 4294967295, %s1605_s21   ;;  %s1432_s23 = sadd.s32 4294967294, %s1605_s21   ;;  %s1605_s21 = sphi %s1694_s21, %s2049_s21   ;;  %s1601_s20 = sphi %s1692_s20, %s2048_s20   ;;  %s1597_s19 = sphi %s1690_s19, %s2047_s19   ;;  %s1593_s18 = sphi %s1688_s18, %s2046_s18  }
   0xf   : > { %s1713_s24 = sadd.s32 1, %s1605_s21   ;;  %s314_s25 = sadd.s32 1, %s1601_s20 }
  0x10   : > { %s311_s26 = ssub.s32 %s1605_s21, %s1713_s24  ;;  %p324_p0 = scmp.ne.s32.totalorder %s1601_s20, %s1597_s19 }
  0x11   : > { %p312_p1 = scmp.eq.s32.totalorder %s311_s26, 0  ;;  %p325_p2 = scmp.eq.s32.totalorder %s1709_s22, 1 }
  0x12   : > { %p330_p3 = scmp.ne.s32.totalorder %s1597_s19, %s1593_s18  ;;  %p331_p4 = scmp.eq.s32.totalorder %s1432_s23, 1 }
  0x13   : > { %s1724_s27 = scalar_select %p312_p1, %s1601_s20, %s314_s25  }
  0x14   : > { %p1726_p5 = por %p325_p2, %p324_p0  ;;  %p1730_p6 = por %p331_p4, %p330_p3 }
  0x15   : > { %p1435_p7 = scmp.ge.s32.totalorder %s1605_s21, 1  ;;  %p445_p8 = scmp.lt.s32.totalorder %s1605_s21, 3 }
  0x17   : > { %p446_p9 = pnand %p1435_p7, %p445_p8 }
  0x18   : > { %s2033_s1 = sld [smem:[#allocation6_spill]] (!%p446_p9)  ;;  %p503_p10 = scmp.lt.s32.totalorder (!%p446_p9), %s1709_s22, 1 }
  0x19   : > { %449 = sbr.rel (%p446_p9) target bundleno = 1353 (0x549), region = 72  ;;  %s2034_s2 = sld [smem:[#allocation7_spill]] (!%p446_p9) }
  0x1a   : > { %s2035_s3 = sld [smem:[#allocation8_spill]] (!%p446_p9)  ;;  %s486_s17 = sand.u32 (!%p446_p9), 1, %s1597_s19  }
  0x1b   : > { %s2036_s4 = sld [smem:[#allocation9_spill]] (!%p446_p9) }
  0x1c   : > { %s2037_s8 = sld [smem:[#allocation13_spill]] (!%p446_p9) }
  0x1d   : > { %s2038_s0 = sld [smem:[#allocation5_spill]] (!%p446_p9) }
  0x1e   : > { %v527_v0 = vld [vmem:[%s2033_s1] sm:$0xf]  ;;  %v1607_v2 = vmov 0   ;;  %s1756_s30 = scalar_select %p503_p10, %s1709_s22, 1  ;;  %vm626_vm0 = vcmask 64512   ;;  %vm760_vm1 = vcmask 1041409  }
  0x1f   : > { %v560_v1 = vld [vmem:[%s2034_s2] sm:$0xf]  ;;  %1515 = vset.pattern.permute.xlu0 %v1607_v2  ;;  %v532_v3 = vperm.slane %v527_v0, 0  ;;  %1517 = vset.pattern.permute.xlu2 %v1607_v2  ;;  %v530_v5 = vrot.slane %v527_v0, 2  ;;  %v529_v8 = vrot.slane %v527_v0, 1  ;;  %v531_v9 = vrot.slane %v527_v0, 3 }
  0x20   : > { %v562_v4 = vrot.slane %v560_v1, 1  ;;  %1516 = vset.pattern.permute.xlu1 %v1607_v2  ;;  %v565_v12 = vperm.slane %v560_v1, 0  ;;  %v593_v13 = vld [vmem:[%s2035_s3] sm:$0xf]  ;;  %v563_v14 = vrot.slane %v560_v1, 2  ;;  %v564_v19 = vrot.slane %v560_v1, 3 }
  0x21   : > { %537 = vperm.xlu0 %1515, %v532_v3   ;;  %v534_v7 = vperm.slane %v530_v5, 0  ;;  %v533_v10 = vperm.slane %v529_v8, 0  ;;  %v535_v11 = vperm.slane %v531_v9, 0  ;;  %v595_v15 = vrot.slane %v593_v13, 1  ;;  %v642_v25 = vld [vmem:[%s2036_s4 + $0x8] sm:$0xff]  ;;  %v641_v26 = vld [vmem:[%s2036_s4] sm:$0xff] }
  0x22   : > { %v566_v6 = vperm.slane %v562_v4, 0  ;;  %v567_v16 = vperm.slane %v563_v14, 0  ;;  %v598_v18 = vperm.slane %v593_v13, 0  ;;  %v597_v20 = vrot.slane %v593_v13, 3  ;;  %v901_v27 = vld [vmem:[%s2037_s8] sm:$0xf] }
  0x23   : > { %545 = vperm.xlu1 %1516, %v534_v7   ;;  %v599_v17 = vperm.slane %v595_v15, 0  ;;  %v596_v21 = vrot.slane %v593_v13, 2  ;;  %v568_v22 = vperm.slane %v564_v19, 0  ;;  %v903_v28 = vrot.slane %v901_v27, 1  ;;  %s2020_s16 = sshll.u32 %s1756_s30, 6  ;;  %s2039_s9 = sld [smem:[#allocation14_spill]] }
  0x24   : > { %574 = vperm.xlu2 %1517, %v566_v6   ;;  %v601_v23 = vperm.slane %v597_v20, 0  ;;  %v906_v30 = vperm.slane %v901_v27, 0  ;;  %v905_v31 = vrot.slane %v901_v27, 3  ;;  %v904_v32 = vrot.slane %v901_v27, 2  ;;  %s1764_s25 = scalar_lea.vmem %s2038_s0, %s2020_s16  ;;  %s2040_s5 = sld [smem:[#allocation10_spill]]  ;;  %v984_v20 = vld [vmem:[%s2014_s10] sm:$0xff] }
  0x25   : > { %v600_v24 = vperm.slane %v596_v21, 0  ;;  %v907_v29 = vperm.slane %v903_v28, 0  ;;  %v519_v39 = vld [vmem:[%s1764_s25] sm:$0xff]  ;;  %v520_v40 = vld [vmem:[%s1764_s25 + $0x8] sm:$0xff]  ;;  %v521_v41 = vld [vmem:[%s1764_s25 + $0x10] sm:$0xff]  ;;  %1006 = vmatpush.msra.mxu3 %v984_v20  ;;  %vm762_vm2 = vcmask 1042434  }
  0x26   : > { %v909_v33 = vperm.slane %v905_v31, 0  ;;  %v908_v34 = vperm.slane %v904_v32, 0  ;;  %v522_v42 = vld [vmem:[%s1764_s25 + $0x18] sm:$0xff]  ;;  %v523_v54 = vld [vmem:[%s1764_s25 + $0x20] sm:$0xff]  ;;  %v524_v55 = vld [vmem:[%s1764_s25 + $0x28] sm:$0xff]  ;;  %vm764_vm3 = vcmask 1043459  }
  0x27   : > { %v525_v8 = vld [vmem:[%s1764_s25 + $0x30] sm:$0xff]  ;;  %vm770_vm4 = vcmask 1043456   ;;  %vm731_vm5 = vcmask 130048   ;;  %vm1029_vm6 = vcmask 130112   ;;  %vm766_vm7 = vcmask 31744   ;;  %s2041_s6 = sld [smem:[#allocation11_spill]] }
  0x28   : > { %s2044_s7 = sld [smem:[#allocation12_spill]]  ;;  %s1472_s0 = sshll.u32 %s1756_s30, 4 }
  0x29   : > { %541 = vperm.xlu0 %1515, %v533_v10   ;;  %v1773_v49 = vld [vmem:[%s2039_s9] ss:$0 sm:$0xff]  ;;  %s512_s26 = scalar_lea.vmem %s2018_s14, %s1472_s0  ;;  %s1468_s16 = sshll.u32 %s1709_s22, 3 }
  0x2a   : > { %v730_v14 = vld [vmem:[%s2040_s5 + $0x8] sm:$0xff]  ;;  %v729_v15 = vld [vmem:[%s2040_s5] sm:$0xff]  ;;  %s1292_s3 = scalar_lea.sflag [#allocation3], %s486_s17  ;;  %s1563_s22 = scalar_lea.hbm %s2017_s13, 16 }
  0x2b   : > { %570 = vperm.xlu1 %1516, %v565_v12   ;;  %v526_v12 = vld [vmem:[%s1764_s25 + $0x38] sm:$0xff]  ;;  %749 = vmatpush.msra.mxu0 %v730_v14  ;;  %s1436_s25 = sshll.u32 %s486_s17, 3 }
  0x2c   : > { %549 = vperm.xlu2 %1517, %v535_v11   ;;  %s488_s0 = scalar_lea.vmem [#allocation2], %s1436_s25  ;;  %s1312_s25 = scalar_lea.hbm %s2017_s13, %s1468_s16 }
  0x2d   : > { %750 = vmatpush.msra.mxu0 %v729_v15  ;;  %s1314_s1 = sshll.u32 %s488_s0, 4  ;;  %s1316_s2 = sshll.u32 %s1312_s25, 4  ;;  %s1315_s1 = int_to_ptr.vmem [resolvable:$true] %s1314_s1  ;;  %s1317_s2 = int_to_ptr.hbm [resolvable:$true] %s1316_s2 }
  0x2e   : > { %s1557_s4 = sshra.s32 %s1317_s2, 4  ;;  %s1558_s4 = int_to_ptr.hbm [resolvable:$true] %s1557_s4 }
  0x2f   : > { %s1559_s5 = scalar_lea.hbm %s1558_s4, 8  ;;  %p1564_p0 = scmp.lt.s32.totalorder %s1558_s4, %s2017_s13 }
  0x30   : > { %p1560_p11 = scmp.ne.s32.totalorder %s1558_s4, %s1559_s5  ;;  %p1565_p1 = scmp.lt.s32.totalorder %s1563_s22, %s1559_s5 }
  0x31   : > { %578 = vperm.xlu0 %1515, %v567_v16  }
  0x32   : > { %p1561_p12 = pnand %p1560_p11, %p1726_p5  ;;  %p1566_p2 = por %p1565_p1, %p1564_p0 }
  0x33   : > { %603 = vperm.xlu1 %1516, %v598_v18  }
  0x34   : > { %607 = vperm.xlu2 %1517, %v599_v17   ;;  %p1562_p13 = pneg %p1561_p12 }
  0x36   : > { %p1567_p3 = pnand %p1566_p2, %p1562_p13 }
  0x39   : > { %582 = vperm.xlu0 %1515, %v568_v22  }
  0x3b   : > { %611 = vperm.xlu1 %1516, %v600_v24  }
  0x3c   : > { %615 = vperm.xlu2 %1517, %v601_v23  }
  0x43   : > { %645 = vperm.xlu1 %1516, %v641_v26  }
  0x44   : > { %650 = vperm.xlu2 %1517, %v642_v25  }
  0x4b   : > { %911 = vperm.xlu1 %1516, %v906_v30  }
  0x4c   : > { %915 = vperm.xlu2 %1517, %v907_v29  }
  0x53   : > { %919 = vperm.xlu1 %1516, %v908_v34  }
  0x54   : > { %923 = vperm.xlu2 %1517, %v909_v33  }
  0x7e   : > { %v575_v35 = vpop.permute.xlu2 %574 }
  0x86   : > { %v550_v36 = vpop.permute.xlu2 %549 }
  0x87   : > { %v558_v16 = vmul.f32 %v550_v36, %v525_v8  ;;  %v559_v22 = vmul.f32 %v550_v36, %v526_v12 }
  0x8e   : > { %v608_v43 = vpop.permute.xlu2 %607 }
  0x93   : > { %v538_v37 = vpop.permute.xlu0 %537 }
  0x94   : > { %v552_v45 = vmul.f32 %v538_v37, %v519_v39  ;;  %v553_v46 = vmul.f32 %v538_v37, %v520_v40 }
  0x95   : > { %v546_v38 = vpop.permute.xlu1 %545 }
  0x96   : > { %v556_v60 = vmul.f32 %v546_v38, %v523_v54  ;;  %v557_v61 = vmul.f32 %v546_v38, %v524_v55  ;;  %v616_v5 = vpop.permute.xlu2 %615 }
  0x9b   : > { %v542_v44 = vpop.permute.xlu0 %541 }
  0x9c   : > { %v554_v47 = vmul.f32 %v542_v44, %v521_v41  ;;  %v555_v48 = vmul.f32 %v542_v44, %v522_v42 }
  0x9d   : > { %v571_v50 = vpop.permute.xlu1 %570 }
  0x9e   : > { %v1775_v51 = vadd.f32 %v575_v35, %v554_v47  ;;  %v1777_v52 = vadd.f32 %v571_v50, %v552_v45  ;;  %v1779_v53 = vadd.f32 %v571_v50, %v553_v46  ;;  %v1783_v56 = vadd.f32 %v575_v35, %v555_v48  ;;  %v651_v33 = vpop.permute.xlu2 %650 }
  0xa0   : > { %v953_v57 = vmul.f32 %v1773_v49, %v1779_v53  ;;  %v952_v58 = vmul.f32 %v1773_v49, %v1777_v52  ;;  %v1791_v59 = vmul.f32 %v1773_v49, %v1775_v51  ;;  %v1205_v3 = vpack.c.bf16 %v1779_v53, %v1777_v52 }
  0xa1   : > { %v1228_v4 = vpack.c.bf16 %v1783_v56, %v1775_v51  ;;  %v955_v7 = vmul.f32 %v1773_v49, %v1783_v56  ;;  %v620_v13 = vmul.f32 %v608_v43, %v1775_v51  ;;  %v621_v23 = vmul.f32 %v608_v43, %v1783_v56 }
  0xa2   : > { %v963_v62 = vsel %vm626_vm0, %v953_v57, 0.0  ;;  %v960_v63 = vsel %vm626_vm0, %v952_v58, 0.0  ;;  %v656_v37 = vmul.f32 %v651_v33, %v1783_v56  ;;  %v654_v40 = vmul.f32 %v651_v33, %v1779_v53 }
  0xa3   : > { %v579_v0 = vpop.permute.xlu0 %578  ;;  %964 = vadd.xlane.f32.xlu2 %v963_v62  ;;  %961 = vadd.xlane.f32.xlu1 %v960_v63  ;;  %v969_v18 = vsel %vm626_vm0, %v955_v7, 0.0  ;;  %v628_v26 = vsel %vm626_vm0, %v620_v13, 0.0  ;;  %v635_v38 = vsel %vm626_vm0, %v621_v23, 0.0 }
  0xa4   : > { %v1795_v1 = vadd.f32 %v579_v0, %v556_v60  ;;  %v1797_v2 = vadd.f32 %v579_v0, %v557_v61  ;;  %v671_v57 = vsel %vm626_vm0, %v656_v37, 0.0  ;;  %v662_v7 = vsel %vm626_vm0, %v654_v40, 0.0 }
  0xa5   : > { %v604_v6 = vpop.permute.xlu1 %603 }
  0xa6   : > { %v956_v9 = vmul.f32 %v1773_v49, %v1795_v1  ;;  %v1249_v10 = vpack.c.bf16 %v1797_v2, %v1795_v1  ;;  %v618_v11 = vmul.f32 %v604_v6, %v1777_v52  ;;  %v619_v17 = vmul.f32 %v604_v6, %v1779_v53  ;;  %v916_v14 = vpop.permute.xlu2 %915 }
  0xa7   : > { %v957_v28 = vmul.f32 %v1773_v49, %v1797_v2  ;;  %v658_v44 = vmul.f32 %v651_v33, %v1797_v2 }
  0xa8   : > { %v972_v19 = vsel %vm626_vm0, %v956_v9, 0.0  ;;  %v627_v24 = vsel %vm626_vm0, %v618_v11, 0.0  ;;  %v634_v29 = vsel %vm626_vm0, %v619_v17, 0.0 }
  0xa9   : > { %v629_v34 = vadd.f32 %v628_v26, %v627_v24  ;;  %v636_v41 = vadd.f32 %v635_v38, %v634_v29  ;;  %v975_v43 = vsel %vm626_vm0, %v957_v28, 0.0  ;;  %v680_v8 = vsel %vm626_vm0, %v658_v44, 0.0 }
  0xab   : > { %v583_v21 = vpop.permute.xlu0 %582  ;;  %970 = vadd.xlane.f32.xlu2 %v969_v18  ;;  %973 = vadd.xlane.f32.xlu1 %v972_v19 }
  0xac   : > { %v1827_v25 = vadd.f32 %v583_v21, %v558_v16  ;;  %v1833_v30 = vadd.f32 %v583_v21, %v559_v22 }
  0xad   : > { %v612_v27 = vpop.permute.xlu1 %611 }
  0xae   : > { %v622_v31 = vmul.f32 %v612_v27, %v1795_v1  ;;  %v623_v32 = vmul.f32 %v612_v27, %v1797_v2  ;;  %v958_v35 = vmul.f32 %v1773_v49, %v1827_v25  ;;  %v624_v36 = vmul.f32 %v616_v5, %v1827_v25 }
  0xaf   : > { %v1270_v48 = vpack.c.bf16 %v1833_v30, %v1827_v25  ;;  %v625_v50 = vmul.f32 %v616_v5, %v1833_v30  ;;  %v660_v54 = vmul.f32 %v651_v33, %v1833_v30  ;;  %v959_v61 = vmul.f32 %v1773_v49, %v1833_v30 }
  0xb0   : > { %v630_v39 = vsel %vm626_vm0, %v622_v31, 0.0  ;;  %v637_v45 = vsel %vm626_vm0, %v623_v32, 0.0  ;;  %v978_v46 = vsel %vm626_vm0, %v958_v35, 0.0  ;;  %v632_v47 = vsel %vm626_vm0, %v624_v36, 0.0 }
  0xb1   : > { %v631_v42 = vadd.f32 %v630_v39, %v629_v34  ;;  %v638_v58 = vadd.f32 %v637_v45, %v636_v41  ;;  %v639_v6 = vsel %vm626_vm0, %v625_v50, 0.0  ;;  %v689_v9 = vsel %vm626_vm0, %v660_v54, 0.0 }
  0xb2   : > { %v981_v20 = vsel %vm626_vm0, %v959_v61, 0.0  ;;  %v928_v32 = vmul.f32 %v916_v14, %v1775_v51 }
  0xb3   : > { %976 = vadd.xlane.f32.xlu2 %v975_v43  ;;  %979 = vadd.xlane.f32.xlu1 %v978_v46  ;;  %v633_v55 = vadd.f32 %v632_v47, %v631_v42  ;;  %v640_v19 = vadd.f32 %v639_v6, %v638_v58  ;;  %v924_v43 = vpop.permute.xlu2 %923  ;;  %v929_v6 = vmul.f32 %v916_v14, %v1783_v56 }
  0xb4   : > { %v935_v42 = vsel %vm626_vm0, %v928_v32, 0.0  ;;  %v932_v58 = vmul.f32 %v924_v43, %v1827_v25 }
  0xb5   : > { %v646_v60 = vpop.permute.xlu1 %645  ;;  %697 = vxpose.xlu0.b32.start [1/2] (short) (narrow) %v633_v55, 8 }
  0xb6   : > { %v653_v62 = vmul.f32 %v646_v60, %v1777_v52  ;;  %v655_v63 = vmul.f32 %v646_v60, %v1775_v51  ;;  %v657_v0 = vmul.f32 %v646_v60, %v1795_v1  ;;  %v659_v5 = vmul.f32 %v646_v60, %v1827_v25 }
  0xb8   : > { %v661_v11 = vsel %vm626_vm0, %v653_v62, 0.0  ;;  %v670_v49 = vsel %vm626_vm0, %v655_v63, 0.0  ;;  %v679_v12 = vsel %vm626_vm0, %v657_v0, 0.0  ;;  %v688_v13 = vsel %vm626_vm0, %v659_v5, 0.0 }
  0xb9   : > { %v663_v15 = vadd.f32 %v662_v7, %v661_v11  ;;  %v672_v16 = vadd.f32 %v671_v57, %v670_v49  ;;  %v681_v17 = vadd.f32 %v680_v8, %v679_v12  ;;  %v690_v18 = vadd.f32 %v689_v9, %v688_v13 }
  0xba   : > { %v939_v12 = vsel %vm626_vm0, %v932_v58, 0.0 }
  0xbb   : > { %v664_v21 = vrot.slane %v663_v15, 4  ;;  %v673_v22 = vrot.slane %v672_v16, 4  ;;  %v682_v23 = vrot.slane %v681_v17, 4  ;;  %v691_v24 = vrot.slane %v690_v18, 4  ;;  %982 = vadd.xlane.f32.xlu2 %v981_v20 }
  0xbd   : > { %v665_v26 = vadd.f32 %v664_v21, %v663_v15  ;;  %v674_v27 = vadd.f32 %v673_v22, %v672_v16  ;;  %v683_v28 = vadd.f32 %v682_v23, %v681_v17  ;;  %v912_v29 = vpop.permute.xlu1 %911  ;;  %698 = vxpose.xlu0.b32.end [2/2] (short) (narrow) %v640_v19, 8  ;;  %v692_v31 = vadd.f32 %v691_v24, %v690_v18 }
  0xbe   : > { %v926_v37 = vmul.f32 %v912_v29, %v1777_v52  ;;  %v927_v60 = vmul.f32 %v912_v29, %v1779_v53  ;;  %v942_v16 = vsel %vm626_vm0, %v929_v6, 0.0  ;;  %v933_v18 = vmul.f32 %v924_v43, %v1833_v30 }
  0xbf   : > { %v666_v33 = vrot.slane %v665_v26, 2  ;;  %v675_v34 = vrot.slane %v674_v27, 2  ;;  %v684_v35 = vrot.slane %v683_v28, 2  ;;  %v693_v36 = vrot.slane %v692_v31, 2 }
  0xc0   : > { %v934_v46 = vsel %vm626_vm0, %v926_v37, 0.0  ;;  %v941_v13 = vsel %vm626_vm0, %v927_v60, 0.0  ;;  %v946_v20 = vsel %vm626_vm0, %v933_v18, 0.0  ;;  %v966_v22 = vsel %vm626_vm0, %v1791_v59, 0.0 }
  0xc1   : > { %v667_v38 = vadd.f32 %v666_v33, %v665_v26  ;;  %v676_v39 = vadd.f32 %v675_v34, %v674_v27  ;;  %v685_v40 = vadd.f32 %v684_v35, %v683_v28  ;;  %v694_v41 = vadd.f32 %v693_v36, %v692_v31 }
  0xc2   : > { %v936_v63 = vadd.f32 %v935_v42, %v934_v46  ;;  %v943_v17 = vadd.f32 %v942_v16, %v941_v13  ;;  %v1024_v28 = vlaneseq }
  0xc3   : > { %v668_v44 = vrot.slane %v667_v38, 1  ;;  %v677_v45 = vrot.slane %v676_v39, 1  ;;  %v686_v47 = vrot.slane %v685_v40, 1  ;;  %v695_v50 = vrot.slane %v694_v41, 1 }
  0xc4   : > { %v1025_v32 = vand.u32 127, %v1024_v28 }
  0xc5   : > { %v920_v54 = vpop.permute.xlu1 %919  ;;  %v669_v55 = vadd.f32 %v668_v44, %v667_v38  ;;  %v678_v57 = vadd.f32 %v677_v45, %v676_v39  ;;  %v687_v62 = vadd.f32 %v686_v47, %v685_v40  ;;  %v696_v0 = vadd.f32 %v695_v50, %v694_v41 }
  0xc6   : > { %v930_v61 = vmul.f32 %v920_v54, %v1795_v1  ;;  %v931_v7 = vmul.f32 %v920_v54, %v1797_v2  ;;  %v1027_v33 = vadd.s32 4294967288, %v1025_v32 }
  0xc7   : > { %v761_v5 = vsel %vm760_vm1, %v678_v57, %v669_v55 }
  0xc8   : > { %v937_v8 = vsel %vm626_vm0, %v930_v61, 0.0  ;;  %v763_v9 = vsel %vm762_vm2, %v687_v62, %v761_v5  ;;  %v944_v14 = vsel %vm626_vm0, %v931_v7, 0.0  ;;  %v1015_v62 = vld [vmem:[%s2015_s11 + $0x8] sm:$0xff] }
  0xc9   : > { %v938_v11 = vadd.f32 %v937_v8, %v936_v63  ;;  %v765_v49 = vsel %vm764_vm3, %v696_v0, %v763_v9  ;;  %v945_v19 = vadd.f32 %v944_v14, %v943_v17  ;;  %v1014_v0 = vld [vmem:[%s2015_s11] sm:$0xff] }
  0xca   : > { %1444 = vmatpush.msk.msrb.mxu0 %vm770_vm4, %v765_v49 }
  0xcb   : > { %v940_v15 = vadd.f32 %v939_v12, %v938_v11  ;;  %v947_v21 = vadd.f32 %v946_v20, %v945_v19  ;;  %v755_v11 = vld [vmem:[%s2041_s6] sm:$0xff] }
  0xcd   : > { %1448 = vmatmul.msk.f32.vlgmr.msra.gmra.mxu3 %vm626_vm0, %v940_v15 }
  0xd5   : > { %1449 = vmatmul.msk.f32.gmra.mxu3 %vm626_vm0, %v947_v21 }
 0x116   : > { %v965_v24 = vpop.xlane.xlu2 %964  ;;  %v962_v27 = vpop.xlane.xlu1 %961 }
 0x117   : > { %v1028_v35 = vperm.slane %v965_v24, %v1027_v33  ;;  %v1026_v36 = vperm.slane %v962_v27, %v1025_v32 }
 0x119   : > { %v1030_v43 = vsel %vm1029_vm6, %v1028_v35, %v1026_v36 }
 0x11e   : > { %v971_v26 = vpop.xlane.xlu2 %970  ;;  %v974_v31 = vpop.xlane.xlu1 %973 }
 0x11f   : > { %v1032_v39 = vperm.slane %v971_v26, %v1027_v33  ;;  %v1034_v42 = vperm.slane %v974_v31, %v1025_v32 }
 0x126   : > { %v977_v29 = vpop.xlane.xlu2 %976  ;;  %v980_v38 = vpop.xlane.xlu1 %979 }
 0x127   : > { %v1035_v37 = vperm.slane %v977_v29, %v1027_v33  ;;  %v1037_v44 = vperm.slane %v980_v38, %v1025_v32 }
 0x129   : > { %v1036_v46 = vsel %vm1029_vm6, %v1035_v37, %v1034_v42 }
 0x12e   : > { %967 = vadd.xlane.f32.xlu0 %v966_v22  ;;  %v983_v34 = vpop.xlane.xlu2 %982 }
 0x12f   : > { %v1038_v40 = vperm.slane %v983_v34, %v1027_v33 }
 0x131   : > { %v1039_v54 = vsel %vm1029_vm6, %v1038_v40, %v1037_v44 }
 0x150   : > { %v1008_v50 = vpop.f32.mrf.mxu3 }
 0x158   : > { %v1011_v58 = vpop.f32.mrf.mxu3 }
 0x159   : > { %v713_v23 = vpop.trf.xlu0 }
 0x15a   : > { %1443 = vmatmul.msk.f32.vlgmr.msra.gmra.mxu0 %vm731_vm5, %v713_v23 }
 0x1a1   : > { %v968_v59 = vpop.xlane.xlu0 %967 }
 0x1a2   : > { %v1031_v41 = vperm.slane %v968_v59, %v1025_v32 }
 0x1a4   : > { %v1033_v45 = vsel %vm1029_vm6, %v1032_v39, %v1031_v41 }
 0x1a5   : > { %v1040_v47 = vsel %vm760_vm1, %v1033_v45, %v1030_v43  ;;  %v812_v43 = vld [vmem:[%s2044_s7] sm:$0xff] }
 0x1a6   : > { %v1041_v55 = vsel %vm762_vm2, %v1036_v46, %v1040_v47 }
 0x1a7   : > { %v1042_v57 = vsel %vm764_vm3, %v1039_v54, %v1041_v55 }
 0x1a8   : > { %1450 = vmatpush.msk.msra.mxu1 %vm770_vm4, %v1042_v57 }
 0x1a9   : > { %1451 = vmatmul.msk.f32.vlgmr.msra.gmra.mxu1 %vm766_vm7, %v1008_v50 }
 0x1b1   : > { %1452 = vmatmul.msk.f32.gmra.mxu1 %vm766_vm7, %v1011_v58  ;;  %v1112_v58 = vld [vmem:[%s2016_s12] sm:$0xff] }
 0x1d7   : > { %v752_v60 = vpop.f32.mrf.mxu0 }
 0x1d8   : > { %1445 = vmatmul.msk.f32.vlgmr.msrb.gmra.mxu0 %vm766_vm7, %v752_v60  ;;  %v1113_v60 = vld [vmem:[%s2016_s12 + $0x8] sm:$0xff] }
 0x226   : > { %v1068_v61 = vpop.f32.mrf.mxu1 }
 0x227   : > { %v1069_v6 = vadd.f32 %v1068_v61, %v1014_v0 }
 0x229   : > { %v1453_v8 = vmul.f32 -1.442695, %v1069_v6 }
 0x22e   : > { %v1071_v63 = vpop.f32.mrf.mxu1 }
 0x22f   : > { %v1072_v5 = vadd.f32 %v1071_v63, %v1015_v62 }
 0x231   : > { %v1454_v7 = vmul.f32 -1.442695, %v1072_v5 }
 0x233   : > { %1519 = vpow2.f32 %v1454_v7 }
 0x234   : > { %1521 = vpow2.f32 %v1453_v8 }
 0x239   : > { %v1520_v9 = vpop.eup %1519 }
 0x23a   : > { %v1522_v49 = vpop.eup %1521  ;;  %v1081_v12 = vadd.f32 1.0, %v1520_v9 }
 0x23b   : > { %v1080_v16 = vadd.f32 1.0, %v1522_v49 }
 0x23c   : > { %1523 = vrcp.f32 %v1081_v12  ;;  %vm1102_vm10 = vweird.f32 %v1081_v12  ;;  %v1108_v36 = vand.u32 2147483648, %v1081_v12  ;;  %v1106_v59 = vand.u32 2147483647, %v1081_v12 }
 0x23d   : > { %vm1087_vm15 = vweird.f32 %v1080_v16  ;;  %v1093_v41 = vand.u32 2147483648, %v1080_v16  ;;  %v1091_v45 = vand.u32 2147483647, %v1080_v16 }
 0x23e   : > { %v1109_v47 = vor.u32 1.1754944e-38, %v1108_v36  ;;  %vm1107_vm3 = vcmp.eq.f32.partialorder %v1106_v59, 8.507059e+37 }
 0x23f   : > { %v1094_v55 = vor.u32 1.1754944e-38, %v1093_v41  ;;  %vm1092_vm6 = vcmp.eq.f32.partialorder %v1091_v45, 8.507059e+37 }
 0x242   : > { %v1524_v17 = vpop.eup %1523 }
 0x243   : > { %v1098_v21 = vmul.f32 %v1524_v17, %v1081_v12  ;;  %vm1103_vm8 = vweird.f32 %v1524_v17 }
 0x244   : > { %vm1907_vm13 = vmor %vm1102_vm10, %vm1103_vm8 }
 0x245   : > { %v1099_v23 = vsub.f32 1.0, %v1098_v21 }
 0x247   : > { %v1100_v28 = vmul.f32 %v1524_v17, %v1099_v23 }
 0x249   : > { %v1101_v35 = vadd.f32 %v1524_v17, %v1100_v28 }
 0x24b   : > { %v1105_v44 = vsel %vm1907_vm13, %v1524_v17, %v1101_v35 }
 0x24c   : > { %v1110_v54 = vsel %vm1107_vm3, %v1109_v47, %v1105_v44 }
 0x255   : > { %v790_v13 = vpop.f32.mrf.mxu0 }
 0x256   : > { %v791_v15 = vadd.f32 %v790_v13, %v755_v11 }
 0x258   : > { %v1446_v14 = vmul.f32 -1.442695, %v791_v15 }
 0x25a   : > { %1525 = vpow2.f32 %v1446_v14 }
 0x25b   : > { %1527 = vrcp.f32 %v1080_v16 }
 0x260   : > { %v1526_v18 = vpop.eup %1525 }
 0x261   : > { %v1528_v19 = vpop.eup %1527  ;;  %v796_v20 = vadd.f32 1.0, %v1526_v18 }
 0x262   : > { %v1083_v22 = vmul.f32 %v1528_v19, %v1080_v16  ;;  %vm1088_vm11 = vweird.f32 %v1528_v19 }
 0x263   : > { %1529 = vrcp.f32 %v796_v20  ;;  %v808_v32 = vand.u32 2147483648, %v796_v20  ;;  %v806_v34 = vand.u32 2147483647, %v796_v20  ;;  %vm802_vm12 = vweird.f32 %v796_v20  ;;  %vm1089_vm2 = vmor %vm1087_vm15, %vm1088_vm11 }
 0x264   : > { %v1084_v24 = vsub.f32 1.0, %v1083_v22 }
 0x265   : > { %v809_v40 = vor.u32 1.1754944e-38, %v808_v32  ;;  %vm807_vm1 = vcmp.eq.f32.partialorder %v806_v34, 8.507059e+37 }
 0x266   : > { %v1085_v31 = vmul.f32 %v1528_v19, %v1084_v24 }
 0x268   : > { %v1086_v39 = vadd.f32 %v1528_v19, %v1085_v31 }
 0x269   : > { %v1530_v26 = vpop.eup %1529 }
 0x26a   : > { %v798_v27 = vmul.f32 %v1530_v26, %v796_v20  ;;  %vm803_vm9 = vweird.f32 %v1530_v26  ;;  %v1090_v50 = vsel %vm1089_vm2, %v1528_v19, %v1086_v39 }
 0x26b   : > { %vm804_vm14 = vmor %vm802_vm12, %vm803_vm9  ;;  %v1095_v57 = vsel %vm1092_vm6, %v1094_v55, %v1090_v50 }
 0x26c   : > { %v799_v29 = vsub.f32 1.0, %v798_v27 }
 0x26e   : > { %v800_v33 = vmul.f32 %v1530_v26, %v799_v29 }
 0x270   : > { %v801_v37 = vadd.f32 %v1530_v26, %v800_v33 }
 0x272   : > { %v805_v42 = vsel %vm804_vm14, %v1530_v26, %v801_v37 }
 0x273   : > { %v810_v46 = vsel %vm807_vm1, %v809_v40, %v805_v42 }
 0x274   : > { %831 = vmatpush.msra.mxu2 %v810_v46 }
 0x275   : > { %1447 = vmatmul.msk.f32.vlgmr.msra.gmra.mxu2 %vm626_vm0, %v812_v43 }
 0x276   : > { %1134 = vmatpush.msrb.mxu2 %v1110_v54 }
 0x278   : > { %1135 = vmatpush.msrb.mxu2 %v1095_v57 }
 0x27d   : > { %1455 = vmatmul.msk.f32.vlgmr.msrb.gmra.mxu2 %vm731_vm5, %v1112_v58 }
 0x285   : > { %1456 = vmatmul.msk.f32.gmra.mxu2 %vm731_vm5, %v1113_v60 }
 0x2f8   : > { %v833_v61 = vpop.f32.mrf.mxu2 }
 0x2f9   : > { %v836_v62 = vsel %vm626_vm0, %v833_v61, -inf }
 0x2fa   : > { %v837_v63 = vrot.slane %v836_v62, 4 }
 0x2fc   : > { %v838_v0 = vmax.f32 %v836_v62, %v837_v63 }
 0x2fe   : > { %v839_v5 = vrot.slane %v838_v0, 2 }
 0x300   : > { %v840_v6 = vmax.f32 %v838_v0, %v839_v5  ;;  %v1137_v49 = vpop.f32.mrf.mxu2 }
 0x301   : > { %v1143_v13 = vsel %vm731_vm5, %v1137_v49, -inf }
 0x302   : > { %v841_v7 = vrot.slane %v840_v6, 1 }
 0x304   : > { %v842_v8 = vmax.f32 %v840_v6, %v841_v7 }
 0x306   : > { %v843_v9 = vsub.f32 %v833_v61, %v842_v8 }
 0x308   : > { %v844_v11 = vsel %vm626_vm0, %v843_v9, -inf  ;;  %v1140_v12 = vpop.f32.mrf.mxu2 }
 0x309   : > { %845 = vmax.xlane.f32.xlu1 %v844_v11  ;;  %v1144_v15 = vsel %vm731_vm5, %v1140_v12, -inf }
 0x30a   : > { %v1145_v16 = vmax.f32 %v1143_v13, %v1144_v15 }
 0x30c   : > { %v1146_v14 = vrot.slane %v1145_v16, 4 }
 0x30e   : > { %v1147_v17 = vmax.f32 %v1145_v16, %v1146_v14 }
 0x310   : > { %v1148_v18 = vrot.slane %v1147_v17, 2 }
 0x312   : > { %v1149_v21 = vmax.f32 %v1147_v17, %v1148_v18 }
 0x314   : > { %v1150_v23 = vrot.slane %v1149_v21, 1 }
 0x316   : > { %v1151_v24 = vmax.f32 %v1149_v21, %v1150_v23 }
 0x318   : > { %v1152_v28 = vsub.f32 %v1137_v49, %v1151_v24  ;;  %v1153_v31 = vsub.f32 %v1140_v12, %v1151_v24 }
 0x31a   : > { %v1154_v29 = vsel %vm731_vm5, %v1152_v28, -inf  ;;  %v1157_v32 = vsel %vm731_vm5, %v1153_v31, -inf }
 0x37c   : > { %v846_v19 = vpop.xlane.xlu1 %845 }
 0x37d   : > { %v847_v20 = vsub.f32 %v843_v9, %v846_v19 }
 0x37f   : > { %v848_v22 = vmul.f32 1.442695, %v847_v20 }
 0x381   : > { %1531 = vpow2.f32 %v848_v22 }
 0x387   : > { %v1532_v26 = vpop.eup %1531 }
 0x388   : > { %v850_v27 = vsel %vm626_vm0, %v1532_v26, 0.0 }
 0x389   : > { %851 = vadd.xlane.f32.xlu2 %v850_v27 }
 0x391   : > { %1155 = vmax.xlane.f32.xlu2 %v1154_v29 }
 0x399   : > { %1158 = vmax.xlane.f32.xlu2 %v1157_v32 }
 0x3fc   : > { %v852_v33 = vpop.xlane.xlu2 %851 }
 0x3fd   : > { %1533 = vrcp.f32 %v852_v33  ;;  %v864_v59 = vand.u32 2147483648, %v852_v33  ;;  %v862_v41 = vand.u32 2147483647, %v852_v33  ;;  %vm858_vm8 = vweird.f32 %v852_v33 }
 0x3ff   : > { %v865_v43 = vor.u32 1.1754944e-38, %v864_v59  ;;  %vm863_vm10 = vcmp.eq.f32.partialorder %v862_v41, 8.507059e+37 }
 0x403   : > { %v1534_v34 = vpop.eup %1533 }
 0x404   : > { %v854_v35 = vmul.f32 %v1534_v34, %v852_v33  ;;  %v1156_v36 = vpop.xlane.xlu2 %1155  ;;  %vm859_vm7 = vweird.f32 %v1534_v34 }
 0x405   : > { %v1160_v37 = vsub.f32 %v1152_v28, %v1156_v36  ;;  %vm860_vm9 = vmor %vm858_vm8, %vm859_vm7 }
 0x406   : > { %v855_v38 = vsub.f32 1.0, %v854_v35 }
 0x407   : > { %v1162_v39 = vmul.f32 1.442695, %v1160_v37 }
 0x408   : > { %v856_v40 = vmul.f32 %v1534_v34, %v855_v38 }
 0x409   : > { %1535 = vpow2.f32 %v1162_v39 }
 0x40a   : > { %v857_v42 = vadd.f32 %v1534_v34, %v856_v40 }
 0x40c   : > { %v1159_v44 = vpop.xlane.xlu2 %1158  ;;  %v861_v45 = vsel %vm860_vm9, %v1534_v34, %v857_v42 }
 0x40d   : > { %v1161_v46 = vsub.f32 %v1153_v31, %v1159_v44  ;;  %v866_v47 = vsel %vm863_vm10, %v865_v43, %v861_v45 }
 0x40e   : > { %v867_v50 = vmul.f32 %v1532_v26, %v866_v47 }
 0x40f   : > { %v1536_v54 = vpop.eup %1535  ;;  %v1164_v55 = vmul.f32 1.442695, %v1161_v46 }
 0x410   : > { %868 = vxpose.xlu1.b32.start.end [1/1] (short) (narrow) %v867_v50, 8  ;;  %v1166_v57 = vsel %vm731_vm5, %v1536_v54, 0.0 }
 0x411   : > { %1537 = vpow2.f32 %v1164_v55  ;;  %1167 = vadd.xlane.f32.xlu2 %v1166_v57 }
 0x417   : > { %v1538_v58 = vpop.eup %1537 }
 0x418   : > { %v1169_v60 = vsel %vm731_vm5, %v1538_v58, 0.0 }
 0x419   : > { %1170 = vadd.xlane.f32.xlu2 %v1169_v60 }
 0x484   : > { %v1168_v61 = vpop.xlane.xlu2 %1167 }
 0x485   : > { %1539 = vrcp.f32 %v1168_v61  ;;  %v1183_v5 = vand.u32 2147483648, %v1168_v61  ;;  %vm1177_vm11 = vweird.f32 %v1168_v61  ;;  %v1181_v7 = vand.u32 2147483647, %v1168_v61 }
 0x487   : > { %v1184_v9 = vor.u32 1.1754944e-38, %v1183_v5  ;;  %vm1182_vm14 = vcmp.eq.f32.partialorder %v1181_v7, 8.507059e+37 }
 0x48b   : > { %v1540_v62 = vpop.eup %1539 }
 0x48c   : > { %v1173_v63 = vmul.f32 %v1540_v62, %v1168_v61  ;;  %v1171_v0 = vpop.xlane.xlu2 %1170  ;;  %vm1178_vm12 = vweird.f32 %v1540_v62 }
 0x48d   : > { %1541 = vrcp.f32 %v1171_v0  ;;  %vm1179_vm13 = vmor %vm1177_vm11, %vm1178_vm12  ;;  %vm1192_vm15 = vweird.f32 %v1171_v0  ;;  %v1198_v16 = vand.u32 2147483648, %v1171_v0  ;;  %v1196_v18 = vand.u32 2147483647, %v1171_v0 }
 0x48e   : > { %v1174_v6 = vsub.f32 1.0, %v1173_v63 }
 0x48f   : > { %v1199_v20 = vor.u32 1.1754944e-38, %v1198_v16  ;;  %vm1197_vm3 = vcmp.eq.f32.partialorder %v1196_v18, 8.507059e+37 }
 0x490   : > { %v1175_v8 = vmul.f32 %v1540_v62, %v1174_v6 }
 0x492   : > { %v1176_v11 = vadd.f32 %v1540_v62, %v1175_v8 }
 0x493   : > { %v1542_v49 = vpop.eup %1541 }
 0x494   : > { %v1180_v12 = vsel %vm1179_vm13, %v1540_v62, %v1176_v11  ;;  %v1188_v13 = vmul.f32 %v1542_v49, %v1171_v0  ;;  %vm1193_vm1 = vweird.f32 %v1542_v49 }
 0x495   : > { %v1185_v15 = vsel %vm1182_vm14, %v1184_v9, %v1180_v12  ;;  %vm1194_vm2 = vmor %vm1192_vm15, %vm1193_vm1 }
 0x496   : > { %v1186_v14 = vmul.f32 %v1536_v54, %v1185_v15  ;;  %v1189_v17 = vsub.f32 1.0, %v1188_v13 }
 0x498   : > { %1202 = vst.msk [vmem:[%s512_s26] sm:$0xff] %vm731_vm5, %v1186_v14  ;;  %v1190_v19 = vmul.f32 %v1542_v49, %v1189_v17 }
 0x49a   : > { %v1191_v21 = vadd.f32 %v1542_v49, %v1190_v19 }
 0x49c   : > { %v1195_v22 = vsel %vm1194_vm2, %v1542_v49, %v1191_v21 }
 0x49d   : > { %v1200_v23 = vsel %vm1197_vm3, %v1199_v20, %v1195_v22 }
 0x49e   : > { %v1201_v24 = vmul.f32 %v1538_v58, %v1200_v23 }
 0x4a0   : > { %1203 = vst.msk [vmem:[%s512_s26 + $0x8] sm:$0xff] %vm731_vm5, %v1201_v24 }
 0x4b4   : > { %v884_v26 = vpop.trf.xlu1 }
 0x4b5   : > { %900 = vst.msk [vmem:[%s488_s0] sm:$0xff] %vm626_vm0, %v884_v26  ;;  %v1204_v27 = vpack.c.bf16 %v884_v26, %v884_v26 }
 0x4b7   : > { %v1210_v28 = vsel %vm770_vm4, %v1204_v27, 0 }
 0x4b8   : > { %1219 = vmatpush.bf16.msra.mxu0 %v1210_v28  ;;  %1239 = vmatpush.bf16.msrb.mxu3 %v1210_v28 }
 0x4b9   : > { %1260 = vmatpush.bf16.msrb.mxu1 %v1210_v28  ;;  %1281 = vmatpush.bf16.msra.mxu2 %v1210_v28 }
 0x4bb   : > { %1457 = vmatmul.msk.bf16.vlgmr.msra.gmra.mxu0 %vm626_vm0, %v1205_v3  ;;  %1458 = vmatmul.msk.bf16.vlgmr.msrb.gmra.mxu3 %vm626_vm0, %v1228_v4 }
 0x4bc   : > { %1461 = vmatmul.msk.bf16.vlgmr.msrb.gmra.mxu1 %vm626_vm0, %v1249_v10  ;;  %1464 = vmatmul.msk.bf16.vlgmr.msra.gmra.mxu2 %vm626_vm0, %v1270_v48 }
 0x4bd   : > { %1570 = shalt.err (!%p1567_p3)
}
 0x4be   : > { %1474 = dma.vmem_to_hbm [thread:$0]  (%p1726_p5), %s1315_s1, 128, %s1317_s2, %s1292_s3  }
 0x4bf   : > { %s2045_s17 = sshll.u32 %s1756_s30, 6 }
 0x4c0   : > { %s517_s23 = scalar_lea.vmem %s2019_s15, %s2045_s17 }
 0x538   : > { %v1221_v51 = vpop.f32.mrf.mxu0 }
 0x539   : > { %1226 = vst.msk [vmem:[%s517_s23] sm:$0xff] %vm626_vm0, %v1221_v51  ;;  %v1262_v52 = vpop.f32.mrf.mxu1 }
 0x53a   : > { %1462 = vst.msk [vmem:[%s517_s23 + $0x20] sm:$0xff] %vm626_vm0, %v1262_v52 }
 0x53e   : > { %v1241_v53 = vpop.f32.mrf.mxu3 }
 0x53f   : > { %1459 = vst.msk [vmem:[%s517_s23 + $0x10] sm:$0xff] %vm626_vm0, %v1241_v53  ;;  %v1283_v56 = vpop.f32.mrf.mxu2 }
 0x540   : > { %1465 = vst.msk [vmem:[%s517_s23 + $0x30] sm:$0xff] %vm626_vm0, %v1283_v56  ;;  %v1223_v1 = vpop.f32.mrf.mxu0 }
 0x541   : > { %1227 = vst.msk [vmem:[%s517_s23 + $0x8] sm:$0xff] %vm626_vm0, %v1223_v1  ;;  %v1264_v2 = vpop.f32.mrf.mxu1 }
 0x542   : > { %1463 = vst.msk [vmem:[%s517_s23 + $0x28] sm:$0xff] %vm626_vm0, %v1264_v2 }
 0x546   : > { %v1243_v3 = vpop.f32.mrf.mxu3 }
 0x547   : > { %1460 = vst.msk [vmem:[%s517_s23 + $0x18] sm:$0xff] %vm626_vm0, %v1243_v3  ;;  %v1285_v4 = vpop.f32.mrf.mxu2 }
 0x548   : > { %1466 = vst.msk [vmem:[%s517_s23 + $0x38] sm:$0xff] %vm626_vm0, %v1285_v4 }
 0x549 PF: > { %p1480_p4 = scmp.ge.s32.totalorder %s1605_s21, 2  ;;  %s1334_s1 = sand.u32 1, %s1593_s18  }
 0x54a   : > { %s1335_s2 = scalar_lea.sflag [#allocation3], %s1334_s1 }
 0x54b   : > { %p1477_p5 = pnand %p1480_p4, %p1730_p6 }
 0x54d   : > { %p1478_p7 = pneg %p1477_p5 }
 0x54f   : > { %1588 = dma.done.wait (%p1478_p7), %s1335_s2, 128  }
 0x550   : > { %1590 = vsyncadd (%p1478_p7), %s1335_s2, 4294967168  ;;  %p26_p8 = scmp.ge.s32.totalorder %s1713_s24, 4   ;;  %s2046_s18 = smov %s1597_s19 }
 0x551   : > { %s2047_s19 = smov %s1601_s20  ;;  %s2048_s20 = smov %s1724_s27 }
 0x552   : > { %s2049_s21 = smov %s1713_s24  ;;  %28 = sbr.rel (!%p26_p8) target bundleno = 14 (0xe), region = 134 }
 0x557   :  { %1357 = vsyncpa [#allocation3], 1 }
 0x558   :  { %1359 = vsyncpa [#allocation3 + $0x1], 1 }

// kernel: astgcn_block_forward.7
= control target key start
LH: loop header
LB: loop body
LE: loop exit
PB: predicated region body
PF: predicated region fallthrough
CT: control target
= control target key end

     0   :  { %s2598_s0 = inlined_call_operand.vmem [shape: f32[2,8,16,8], index: 0, kind: input, shape index: {}]   ;;  %s2599_s1 = inlined_call_operand.vmem [shape: f32[8,1], index: 1, kind: input, shape index: {}]   ;;  %s2600_s2 = inlined_call_operand.vmem [shape: f32[8,1], index: 2, kind: input, shape index: {}]   ;;  %s2601_s3 = inlined_call_operand.vmem [shape: f32[8,1], index: 3, kind: input, shape index: {}]   ;;  %s2602_s4 = inlined_call_operand.vmem [shape: f32[16,1], index: 4, kind: input, shape index: {}]   ;;  %s2603_s5 = inlined_call_operand.vmem [shape: f32[16,8], index: 5, kind: input, shape index: {}]   ;;  %s2604_s6 = inlined_call_operand.vmem [shape: f32[8,8], index: 6, kind: input, shape index: {}]   ;;  %s2605_s7 = inlined_call_operand.vmem [shape: f32[8,8], index: 7, kind: input, shape index: {}]   ;;  %s2606_s8 = inlined_call_operand.vmem [shape: f32[8,1], index: 8, kind: input, shape index: {}]   ;;  %s2607_s9 = inlined_call_operand.vmem [shape: f32[1,8], index: 9, kind: input, shape index: {}]   ;;  %s2608_s10 = inlined_call_operand.vmem [shape: f32[8,8], index: 10, kind: input, shape index: {}]   ;;  %s2609_s11 = inlined_call_operand.vmem [shape: f32[16,16], index: 11, kind: input, shape index: {}]   ;;  %s2610_s12 = inlined_call_operand.vmem [shape: f32[16,16], index: 12, kind: input, shape index: {}]   ;;  %s2611_s13 = inlined_call_operand.hbm [shape: f32[2,8,8], index: 13, kind: output, shape index: {0}]   ;;  %s2612_s14 = inlined_call_operand.vmem [shape: f32[2,16,16], index: 14, kind: output, shape index: {1}]   ;;  %s2613_s15 = inlined_call_operand.vmem [shape: f32[2,8,16,8], index: 15, kind: output, shape index: {2}]  }
   0x1   :  { %2616 = sst [smem:[#allocation5_spill]] %s2598_s0 }
   0x2   :  { %2617 = sst [smem:[#allocation6_spill]] %s2599_s1 }
   0x3   :  { %2618 = sst [smem:[#allocation7_spill]] %s2600_s2 }
   0x4   :  { %2619 = sst [smem:[#allocation8_spill]] %s2601_s3 }
   0x5   :  { %2620 = sst [smem:[#allocation9_spill]] %s2602_s4 }
   0x6   :  { %2621 = sst [smem:[#allocation10_spill]] %s2603_s5 }
   0x7   :  { %2622 = sst [smem:[#allocation11_spill]] %s2604_s6 }
   0x8   :  { %2623 = sst [smem:[#allocation12_spill]] %s2605_s7 }
   0x9   :  { %2624 = sst [smem:[#allocation13_spill]] %s2606_s8 }
   0xa   :  { %21 = vsyncpa [#allocation3], 0 }
   0xb   :  { %23 = vsyncpa [#allocation3 + $0x1], 0  ;;  %s2059_s18 = smov 0   ;;  %s2061_s19 = smov 0  }
   0xc   :  { %s2063_s20 = smov 0   ;;  %s2065_s21 = smov 0  }
   0xd LB: > { %s2080_s22 = sadd.s32 4294967295, %s1976_s21   ;;  %s1793_s23 = sadd.s32 4294967294, %s1976_s21   ;;  %s1976_s21 = sphi %s2065_s21, %s2643_s21   ;;  %s1972_s20 = sphi %s2063_s20, %s2642_s20   ;;  %s1968_s19 = sphi %s2061_s19, %s2641_s19   ;;  %s1964_s18 = sphi %s2059_s18, %s2640_s18  }
   0xe   : > { %s2084_s24 = sadd.s32 1, %s1976_s21   ;;  %s314_s25 = sadd.s32 1, %s1972_s20 }
   0xf   : > { %s311_s26 = ssub.s32 %s1976_s21, %s2084_s24  ;;  %p324_p0 = scmp.ne.s32.totalorder %s1972_s20, %s1968_s19 }
  0x10   : > { %p312_p1 = scmp.eq.s32.totalorder %s311_s26, 0  ;;  %p325_p2 = scmp.eq.s32.totalorder %s2080_s22, 1 }
  0x11   : > { %p330_p3 = scmp.ne.s32.totalorder %s1968_s19, %s1964_s18  ;;  %p331_p4 = scmp.eq.s32.totalorder %s1793_s23, 1 }
  0x12   : > { %s2095_s27 = scalar_select %p312_p1, %s1972_s20, %s314_s25  }
  0x13   : > { %p2097_p5 = por %p325_p2, %p324_p0  ;;  %p2101_p6 = por %p331_p4, %p330_p3 }
  0x14   : > { %p1796_p7 = scmp.ge.s32.totalorder %s1976_s21, 1  ;;  %p445_p8 = scmp.lt.s32.totalorder %s1976_s21, 3 }
  0x16   : > { %p446_p9 = pnand %p1796_p7, %p445_p8 }
  0x17   : > { %s2627_s1 = sld [smem:[#allocation6_spill]] (!%p446_p9)  ;;  %p503_p10 = scmp.lt.s32.totalorder (!%p446_p9), %s2080_s22, 1 }
  0x18   : > { %449 = sbr.rel (%p446_p9) target bundleno = 1403 (0x57b), region = 72  ;;  %s2628_s2 = sld [smem:[#allocation7_spill]] (!%p446_p9) }
  0x19   : > { %s2629_s3 = sld [smem:[#allocation8_spill]] (!%p446_p9)  ;;  %s1839_s23 = sshll.u32 (!%p446_p9), %s2080_s22, 3 }
  0x1a   : > { %s2630_s4 = sld [smem:[#allocation9_spill]] (!%p446_p9) }
  0x1b   : > { %s2631_s8 = sld [smem:[#allocation13_spill]] (!%p446_p9) }
  0x1c   : > { %s2632_s0 = sld [smem:[#allocation5_spill]] (!%p446_p9) }
  0x1d   : > { %v535_v0 = vld [vmem:[%s2627_s1] sm:$0xff]  ;;  %v1978_v2 = vmov 0   ;;  %s2139_s30 = scalar_select %p503_p10, %s2080_s22, 1  ;;  %vm730_vm0 = vcmask 64512   ;;  %vm928_vm1 = vcmask 1041409   ;;  %vm930_vm2 = vcmask 1042434  }
  0x1e   : > { %v2113_v1 = vld [vmem:[%s2628_s2] sm:$0xff]  ;;  %1886 = vset.pattern.permute.xlu0 %v1978_v2  ;;  %v544_v3 = vperm.slane %v535_v0, 0  ;;  %1888 = vset.pattern.permute.xlu2 %v1978_v2  ;;  %v538_v5 = vrot.slane %v535_v0, 2  ;;  %v537_v8 = vrot.slane %v535_v0, 1  ;;  %v539_v9 = vrot.slane %v535_v0, 3  ;;  %s2633_s5 = sld [smem:[#allocation10_spill]] }
  0x1f   : > { %v602_v4 = vrot.slane %v2113_v1, 1  ;;  %1887 = vset.pattern.permute.xlu1 %v1978_v2  ;;  %v609_v12 = vperm.slane %v2113_v1, 0  ;;  %v665_v13 = vld [vmem:[%s2629_s3] sm:$0xff]  ;;  %v603_v14 = vrot.slane %v2113_v1, 2  ;;  %v540_v19 = vrot.slane %v535_v0, 4  ;;  %s2614_s16 = sshll.u32 %s2139_s30, 7 }
  0x20   : > { %553 = vperm.xlu0 %1886, %v544_v3   ;;  %v546_v7 = vperm.slane %v538_v5, 0  ;;  %v545_v10 = vperm.slane %v537_v8, 0  ;;  %v547_v11 = vperm.slane %v539_v9, 0  ;;  %v667_v15 = vrot.slane %v665_v13, 1  ;;  %v762_v49 = vld [vmem:[%s2630_s4 + $0x8] sm:$0xff]  ;;  %v761_v50 = vld [vmem:[%s2630_s4] sm:$0xff] }
  0x21   : > { %v610_v6 = vperm.slane %v602_v4, 0  ;;  %v611_v16 = vperm.slane %v603_v14, 0  ;;  %v674_v18 = vperm.slane %v665_v13, 0  ;;  %v668_v20 = vrot.slane %v665_v13, 2  ;;  %v1074_v51 = vld [vmem:[%s2631_s8] sm:$0xff]  ;;  %s2634_s6 = sld [smem:[#allocation11_spill]] }
  0x22   : > { %561 = vperm.xlu1 %1887, %v546_v7   ;;  %v675_v17 = vperm.slane %v667_v15, 0  ;;  %v604_v21 = vrot.slane %v2113_v1, 3  ;;  %v548_v22 = vperm.slane %v540_v19, 0  ;;  %v541_v25 = vrot.slane %v535_v0, 5  ;;  %s2147_s25 = scalar_lea.vmem %s2632_s0, %s2614_s16  ;;  %s2637_s7 = sld [smem:[#allocation12_spill]] }
  0x23   : > { %622 = vperm.xlu2 %1888, %v610_v6   ;;  %v676_v23 = vperm.slane %v668_v20, 0  ;;  %v669_v26 = vrot.slane %v665_v13, 3  ;;  %v605_v27 = vrot.slane %v2113_v1, 4  ;;  %v542_v31 = vrot.slane %v535_v0, 6  ;;  %v519_v9 = vld [vmem:[%s2147_s25] sm:$0xff]  ;;  %s1843_s0 = sshll.u32 %s2139_s30, 4 }
  0x24   : > { %v612_v24 = vperm.slane %v604_v21, 0  ;;  %v549_v28 = vperm.slane %v541_v25, 0  ;;  %v670_v32 = vrot.slane %v665_v13, 4  ;;  %v606_v33 = vrot.slane %v2113_v1, 5  ;;  %v2160_v20 = vld [vmem:[%s2607_s9] ss:$0 sm:$0xff]  ;;  %s512_s17 = scalar_lea.vmem %s2612_s14, %s1843_s0 }
  0x25   : > { %v677_v29 = vperm.slane %v669_v26, 0  ;;  %v613_v30 = vperm.slane %v605_v27, 0  ;;  %v550_v34 = vperm.slane %v542_v31, 0  ;;  %v543_v37 = vrot.slane %v535_v0, 7  ;;  %v523_v25 = vld [vmem:[%s2147_s25 + $0x20] sm:$0xff]  ;;  %v524_v26 = vld [vmem:[%s2147_s25 + $0x28] sm:$0xff] }
  0x26   : > { %v678_v35 = vperm.slane %v670_v32, 0  ;;  %v614_v36 = vperm.slane %v606_v33, 0  ;;  %v671_v38 = vrot.slane %v665_v13, 5  ;;  %v607_v39 = vrot.slane %v2113_v1, 6  ;;  %s2615_s16 = sand.u32 1, %s1968_s19   ;;  %s2638_s2 = sand.u32 1, %s1968_s19  }
  0x27   : > { %v551_v40 = vperm.slane %v543_v37, 0  ;;  %v608_v43 = vrot.slane %v2113_v1, 7  ;;  %v673_v44 = vrot.slane %v665_v13, 7  ;;  %v672_v45 = vrot.slane %v665_v13, 6  ;;  %s1653_s3 = scalar_lea.sflag [#allocation3], %s2638_s2  ;;  %s1934_s22 = scalar_lea.hbm %s2611_s13, 16 }
  0x28   : > { %557 = vperm.xlu0 %1886, %v545_v10   ;;  %v679_v41 = vperm.slane %v671_v38, 0  ;;  %v615_v42 = vperm.slane %v607_v39, 0  ;;  %v1076_v52 = vrot.slane %v1074_v51, 1  ;;  %v1083_v54 = vperm.slane %v1074_v51, 0  ;;  %v520_v10 = vld [vmem:[%s2147_s25 + $0x8] sm:$0xff] }
  0x29   : > { %v616_v46 = vperm.slane %v608_v43, 0  ;;  %v681_v47 = vperm.slane %v673_v44, 0  ;;  %v680_v48 = vperm.slane %v672_v45, 0  ;;  %v1078_v55 = vrot.slane %v1074_v51, 3 }
  0x2a   : > { %618 = vperm.xlu1 %1887, %v609_v12   ;;  %v1084_v53 = vperm.slane %v1076_v52, 0  ;;  %v1077_v56 = vrot.slane %v1074_v51, 2  ;;  %v1080_v59 = vrot.slane %v1074_v51, 5  ;;  %v1079_v60 = vrot.slane %v1074_v51, 4  ;;  %v522_v12 = vld [vmem:[%s2147_s25 + $0x18] sm:$0xff] }
  0x2b   : > { %565 = vperm.xlu2 %1888, %v547_v11   ;;  %v1086_v57 = vperm.slane %v1078_v55, 0  ;;  %v1082_v63 = vrot.slane %v1074_v51, 7  ;;  %v1081_v0 = vrot.slane %v1074_v51, 6  ;;  %v521_v11 = vld [vmem:[%s2147_s25 + $0x10] sm:$0xff]  ;;  %vm932_vm3 = vcmask 1043459  }
  0x2c   : > { %v1085_v58 = vperm.slane %v1077_v56, 0  ;;  %v1088_v61 = vperm.slane %v1080_v59, 0  ;;  %v1087_v62 = vperm.slane %v1079_v60, 0  ;;  %vm934_vm4 = vcmask 1044484  }
  0x2d   : > { %v1090_v2 = vperm.slane %v1082_v63, 0  ;;  %v1089_v3 = vperm.slane %v1081_v0, 0  ;;  %vm936_vm5 = vcmask 1045509   ;;  %vm938_vm6 = vcmask 1046534  }
  0x2e   : > { %vm940_vm7 = vcmask 1047559   ;;  %vm895_vm8 = vcmask 130048   ;;  %vm1290_vm9 = vcmask 130112  }
  0x30   : > { %626 = vperm.xlu0 %1886, %v611_v16  }
  0x32   : > { %683 = vperm.xlu1 %1887, %v674_v18  }
  0x33   : > { %687 = vperm.xlu2 %1888, %v675_v17  }
  0x38   : > { %569 = vperm.xlu0 %1886, %v548_v22  }
  0x3a   : > { %630 = vperm.xlu1 %1887, %v612_v24  }
  0x3b   : > { %691 = vperm.xlu2 %1888, %v676_v23  }
  0x40   : > { %573 = vperm.xlu0 %1886, %v549_v28  }
  0x42   : > { %634 = vperm.xlu1 %1887, %v613_v30  }
  0x43   : > { %695 = vperm.xlu2 %1888, %v677_v29  }
  0x48   : > { %577 = vperm.xlu0 %1886, %v550_v34  }
  0x4a   : > { %638 = vperm.xlu1 %1887, %v614_v36  }
  0x4b   : > { %699 = vperm.xlu2 %1888, %v678_v35  }
  0x50   : > { %581 = vperm.xlu0 %1886, %v551_v40   ;;  %v525_v40 = vld [vmem:[%s2147_s25 + $0x30] sm:$0xff] }
  0x52   : > { %642 = vperm.xlu1 %1887, %v615_v42  }
  0x53   : > { %703 = vperm.xlu2 %1888, %v679_v41   ;;  %v526_v41 = vld [vmem:[%s2147_s25 + $0x38] sm:$0xff] }
  0x58   : > { %646 = vperm.xlu0 %1886, %v616_v46  }
  0x5a   : > { %707 = vperm.xlu1 %1887, %v680_v48  }
  0x5b   : > { %711 = vperm.xlu2 %1888, %v681_v47  }
  0x62   : > { %765 = vperm.xlu1 %1887, %v761_v50  }
  0x63   : > { %770 = vperm.xlu2 %1888, %v762_v49  }
  0x6a   : > { %1092 = vperm.xlu1 %1887, %v1083_v54   ;;  %v528_v54 = vld [vmem:[%s2147_s25 + $0x48] sm:$0xff] }
  0x6b   : > { %1096 = vperm.xlu2 %1888, %v1084_v53   ;;  %v527_v53 = vld [vmem:[%s2147_s25 + $0x40] sm:$0xff] }
  0x72   : > { %1100 = vperm.xlu1 %1887, %v1085_v58  }
  0x73   : > { %1104 = vperm.xlu2 %1888, %v1086_v57  }
  0x7a   : > { %1108 = vperm.xlu1 %1887, %v1087_v62  }
  0x7b   : > { %1112 = vperm.xlu2 %1888, %v1088_v61  }
  0x7d   : > { %v623_v1 = vpop.permute.xlu2 %622 }
  0x82   : > { %1116 = vperm.xlu1 %1887, %v1089_v3   ;;  %v529_v3 = vld [vmem:[%s2147_s25 + $0x50] sm:$0xff] }
  0x83   : > { %1120 = vperm.xlu2 %1888, %v1090_v2  }
  0x85   : > { %v566_v4 = vpop.permute.xlu2 %565 }
  0x86   : > { %v590_v44 = vmul.f32 %v566_v4, %v525_v40  ;;  %v591_v45 = vmul.f32 %v566_v4, %v526_v41  ;;  %v530_v4 = vld [vmem:[%s2147_s25 + $0x58] sm:$0xff]  ;;  %v532_v40 = vld [vmem:[%s2147_s25 + $0x68] sm:$0xff] }
  0x8d   : > { %v2136_v5 = vpop.permute.xlu2 %687 }
  0x92   : > { %v554_v6 = vpop.permute.xlu0 %553 }
  0x93   : > { %v584_v14 = vmul.f32 %v554_v6, %v519_v9  ;;  %v585_v15 = vmul.f32 %v554_v6, %v520_v10 }
  0x94   : > { %v562_v8 = vpop.permute.xlu1 %561 }
  0x95   : > { %v2149_v7 = vpop.permute.xlu2 %691  ;;  %v588_v30 = vmul.f32 %v562_v8, %v523_v25  ;;  %v589_v31 = vmul.f32 %v562_v8, %v524_v26 }
  0x9a   : > { %v558_v13 = vpop.permute.xlu0 %557 }
  0x9b   : > { %v586_v16 = vmul.f32 %v558_v13, %v521_v11  ;;  %v587_v17 = vmul.f32 %v558_v13, %v522_v12 }
  0x9c   : > { %v619_v19 = vpop.permute.xlu1 %618 }
  0x9d   : > { %v2155_v18 = vpop.permute.xlu2 %695  ;;  %v2162_v21 = vadd.f32 %v623_v1, %v586_v16  ;;  %v2164_v22 = vadd.f32 %v623_v1, %v587_v17  ;;  %v2166_v23 = vadd.f32 %v619_v19, %v584_v14  ;;  %v2168_v24 = vadd.f32 %v619_v19, %v585_v15 }
  0x9f   : > { %v2174_v27 = vmul.f32 %v2160_v20, %v2162_v21  ;;  %v1481_v28 = vpack.c.bf16 %v2168_v24, %v2166_v23  ;;  %v1505_v29 = vpack.c.bf16 %v2164_v22, %v2162_v21  ;;  %v1174_v37 = vmul.f32 %v2160_v20, %v2168_v24 }
  0xa0   : > { %v1173_v39 = vmul.f32 %v2160_v20, %v2166_v23  ;;  %v1176_v50 = vmul.f32 %v2160_v20, %v2164_v22  ;;  %v716_v13 = vmul.f32 %v2136_v5, %v2162_v21  ;;  %v717_v17 = vmul.f32 %v2136_v5, %v2164_v22 }
  0xa1   : > { %v1192_v43 = vsel %vm730_vm0, %v1174_v37, 0.0 }
  0xa2   : > { %v627_v32 = vpop.permute.xlu0 %626  ;;  %v1189_v46 = vsel %vm730_vm0, %v1173_v39, 0.0  ;;  %v1198_v57 = vsel %vm730_vm0, %v1176_v50, 0.0  ;;  %v732_v37 = vsel %vm730_vm0, %v716_v13, 0.0  ;;  %v531_v39 = vld [vmem:[%s2147_s25 + $0x60] sm:$0xff]  ;;  %v747_v41 = vsel %vm730_vm0, %v717_v17, 0.0 }
  0xa3   : > { %v2180_v33 = vadd.f32 %v627_v32, %v588_v30  ;;  %v2182_v34 = vadd.f32 %v627_v32, %v589_v31 }
  0xa4   : > { %v684_v35 = vpop.permute.xlu1 %683 }
  0xa5   : > { %v2184_v36 = vpop.permute.xlu2 %699  ;;  %v1526_v38 = vpack.c.bf16 %v2182_v34, %v2180_v33  ;;  %v1177_v52 = vmul.f32 %v2160_v20, %v2180_v33  ;;  %v1178_v0 = vmul.f32 %v2160_v20, %v2182_v34  ;;  %v714_v10 = vmul.f32 %v684_v35, %v2166_v23 }
  0xa6   : > { %v715_v11 = vmul.f32 %v684_v35, %v2168_v24  ;;  %v718_v35 = vmul.f32 %v2149_v7, %v2180_v33  ;;  %v719_v5 = vmul.f32 %v2149_v7, %v2182_v34 }
  0xa7   : > { %v1201_v60 = vsel %vm730_vm0, %v1177_v52, 0.0  ;;  %v1204_v9 = vsel %vm730_vm0, %v1178_v0, 0.0  ;;  %v731_v30 = vsel %vm730_vm0, %v714_v10, 0.0 }
  0xa8   : > { %v746_v31 = vsel %vm730_vm0, %v715_v11, 0.0 }
  0xaa   : > { %v570_v42 = vpop.permute.xlu0 %569 }
  0xab   : > { %v592_v58 = vmul.f32 %v570_v42, %v527_v53  ;;  %v593_v59 = vmul.f32 %v570_v42, %v528_v54 }
  0xac   : > { %1193 = vadd.xlane.f32.xlu2 %v1192_v43  ;;  %v631_v47 = vpop.permute.xlu1 %630  ;;  %1190 = vadd.xlane.f32.xlu1 %v1189_v46  ;;  %v748_v46 = vadd.f32 %v747_v41, %v746_v31  ;;  %v534_v31 = vld [vmem:[%s2147_s25 + $0x78] sm:$0xff] }
  0xad   : > { %v2196_v48 = vadd.f32 %v631_v47, %v590_v44  ;;  %v2198_v49 = vadd.f32 %v631_v47, %v591_v45  ;;  %v2202_v51 = vpop.permute.xlu2 %703  ;;  %v733_v45 = vadd.f32 %v732_v37, %v731_v30 }
  0xaf   : > { %v1547_v55 = vpack.c.bf16 %v2198_v49, %v2196_v48  ;;  %v1179_v1 = vmul.f32 %v2160_v20, %v2196_v48  ;;  %v1180_v26 = vmul.f32 %v2160_v20, %v2198_v49  ;;  %v720_v42 = vmul.f32 %v2155_v18, %v2196_v48 }
  0xb0   : > { %v721_v43 = vmul.f32 %v2155_v18, %v2198_v49 }
  0xb1   : > { %v1207_v12 = vsel %vm730_vm0, %v1179_v1, 0.0  ;;  %v1210_v7 = vsel %vm730_vm0, %v1180_v26, 0.0  ;;  %v736_v0 = vsel %vm730_vm0, %v720_v42, 0.0 }
  0xb2   : > { %v574_v56 = vpop.permute.xlu0 %573  ;;  %v751_v1 = vsel %vm730_vm0, %v721_v43, 0.0 }
  0xb3   : > { %v594_v14 = vmul.f32 %v574_v56, %v529_v3  ;;  %v595_v15 = vmul.f32 %v574_v56, %v530_v4 }
  0xb4   : > { %1199 = vadd.xlane.f32.xlu2 %v1198_v57  ;;  %v635_v61 = vpop.permute.xlu1 %634  ;;  %1202 = vadd.xlane.f32.xlu1 %v1201_v60  ;;  %v734_v57 = vsel %vm730_vm0, %v718_v35, 0.0 }
  0xb5   : > { %v2212_v62 = vadd.f32 %v635_v61, %v592_v58  ;;  %v2214_v63 = vadd.f32 %v635_v61, %v593_v59  ;;  %v2224_v6 = vpop.permute.xlu2 %711  ;;  %v749_v58 = vsel %vm730_vm0, %v719_v5, 0.0  ;;  %v735_v3 = vadd.f32 %v734_v57, %v733_v45 }
  0xb6   : > { %v750_v4 = vadd.f32 %v749_v58, %v748_v46 }
  0xb7   : > { %v1568_v2 = vpack.c.bf16 %v2214_v63, %v2212_v62  ;;  %v1181_v32 = vmul.f32 %v2160_v20, %v2212_v62  ;;  %v722_v50 = vmul.f32 %v2184_v36, %v2212_v62  ;;  %v723_v18 = vmul.f32 %v2184_v36, %v2214_v63 }
  0xb8   : > { %v1182_v36 = vmul.f32 %v2160_v20, %v2214_v63  ;;  %v737_v13 = vadd.f32 %v736_v0, %v735_v3 }
  0xb9   : > { %v1213_v56 = vsel %vm730_vm0, %v1181_v32, 0.0  ;;  %v738_v10 = vsel %vm730_vm0, %v722_v50, 0.0  ;;  %v753_v11 = vsel %vm730_vm0, %v723_v18, 0.0 }
  0xba   : > { %v578_v8 = vpop.permute.xlu0 %577  ;;  %v1216_v35 = vsel %vm730_vm0, %v1182_v36, 0.0  ;;  %v739_v5 = vadd.f32 %v738_v10, %v737_v13 }
  0xbb   : > { %v596_v52 = vmul.f32 %v578_v8, %v531_v39  ;;  %v597_v53 = vmul.f32 %v578_v8, %v532_v40  ;;  %v533_v8 = vld [vmem:[%s2147_s25 + $0x70] sm:$0xff]  ;;  %s1797_s25 = sshll.u32 %s2615_s16, 3 }
  0xbc   : > { %1205 = vadd.xlane.f32.xlu2 %v1204_v9  ;;  %v639_v16 = vpop.permute.xlu1 %638  ;;  %1208 = vadd.xlane.f32.xlu1 %v1207_v12  ;;  %s488_s0 = scalar_lea.vmem [#allocation2], %s1797_s25  ;;  %s1673_s25 = scalar_lea.hbm %s2611_s13, %s1839_s23 }
  0xbd   : > { %v2234_v19 = vadd.f32 %v639_v16, %v594_v14  ;;  %v2236_v25 = vadd.f32 %v639_v16, %v595_v15  ;;  %v2261_v54 = vpop.permute.xlu2 %770  ;;  %v752_v14 = vadd.f32 %v751_v1, %v750_v4  ;;  %v894_v15 = vld [vmem:[%s2633_s5 + $0x8] sm:$0xff]  ;;  %v893_v16 = vld [vmem:[%s2633_s5] sm:$0xff]  ;;  %s1675_s16 = sshll.u32 %s488_s0, 4  ;;  %s1677_s1 = sshll.u32 %s1673_s25, 4  ;;  %s1676_s16 = int_to_ptr.vmem [resolvable:$true] %s1675_s16  ;;  %s1678_s1 = int_to_ptr.hbm [resolvable:$true] %s1677_s1 }
  0xbe   : > { %v774_v26 = vmul.f32 %v2261_v54, %v2168_v24  ;;  %913 = vmatpush.msra.mxu0 %v894_v15  ;;  %v776_v43 = vmul.f32 %v2261_v54, %v2164_v22  ;;  %v778_v45 = vmul.f32 %v2261_v54, %v2182_v34  ;;  %v780_v46 = vmul.f32 %v2261_v54, %v2198_v49  ;;  %s1928_s4 = sshra.s32 %s1678_s1, 4  ;;  %s1929_s4 = int_to_ptr.hbm [resolvable:$true] %s1928_s4 }
  0xbf   : > { %v1589_v44 = vpack.c.bf16 %v2236_v25, %v2234_v19  ;;  %v724_v9 = vmul.f32 %v2202_v51, %v2234_v19  ;;  %v1183_v12 = vmul.f32 %v2160_v20, %v2234_v19  ;;  %v754_v37 = vadd.f32 %v753_v11, %v752_v14  ;;  %s1930_s5 = scalar_lea.hbm %s1929_s4, 8  ;;  %p1935_p0 = scmp.lt.s32.totalorder %s1929_s4, %s2611_s13 }
  0xc0   : > { %v725_v40 = vmul.f32 %v2202_v51, %v2236_v25  ;;  %914 = vmatpush.msra.mxu0 %v893_v16  ;;  %v790_v51 = vsel %vm730_vm0, %v774_v26, 0.0  ;;  %v784_v57 = vmul.f32 %v2261_v54, %v2236_v25  ;;  %v808_v36 = vsel %vm730_vm0, %v778_v45, 0.0  ;;  %p1931_p11 = scmp.ne.s32.totalorder %s1929_s4, %s1930_s5  ;;  %p1936_p1 = scmp.lt.s32.totalorder %s1934_s22, %s1930_s5 }
  0xc1   : > { %v740_v41 = vsel %vm730_vm0, %v724_v9, 0.0  ;;  %v1219_v42 = vsel %vm730_vm0, %v1183_v12, 0.0  ;;  %v817_v14 = vsel %vm730_vm0, %v780_v46, 0.0 }
  0xc2   : > { %v582_v47 = vpop.permute.xlu0 %581  ;;  %v741_v58 = vadd.f32 %v740_v41, %v739_v5  ;;  %p1932_p12 = pnand %p1931_p11, %p2097_p5  ;;  %p1937_p2 = por %p1936_p1, %p1935_p0 }
  0xc3   : > { %v598_v30 = vmul.f32 %v582_v47, %v533_v8  ;;  %v799_v8 = vsel %vm730_vm0, %v776_v43, 0.0 }
  0xc4   : > { %1211 = vadd.xlane.f32.xlu2 %v1210_v7  ;;  %v643_v59 = vpop.permute.xlu1 %642  ;;  %1214 = vadd.xlane.f32.xlu1 %v1213_v56  ;;  %v782_v7 = vmul.f32 %v2261_v54, %v2214_v63  ;;  %p1933_p13 = pneg %p1932_p12 }
  0xc5   : > { %v2268_v60 = vadd.f32 %v643_v59, %v596_v52  ;;  %v2270_v61 = vadd.f32 %v643_v59, %v597_v53  ;;  %v599_v52 = vmul.f32 %v582_v47, %v534_v31  ;;  %v1097_v53 = vpop.permute.xlu2 %1096  ;;  %v1184_v59 = vmul.f32 %v2160_v20, %v2236_v25 }
  0xc6   : > { %v755_v47 = vsel %vm730_vm0, %v725_v40, 0.0  ;;  %v1126_v9 = vmul.f32 %v1097_v53, %v2164_v22  ;;  %v2335_v31 = vsel %vm730_vm0, %v784_v57, 0.0  ;;  %v2343_v40 = vmul.f32 %v1097_v53, %v2162_v21  ;;  %p1938_p3 = pnand %p1937_p2, %p1933_p13 }
  0xc7   : > { %v1610_v17 = vpack.c.bf16 %v2270_v61, %v2268_v60  ;;  %v1185_v4 = vmul.f32 %v2160_v20, %v2268_v60  ;;  %v1186_v13 = vmul.f32 %v2160_v20, %v2270_v61  ;;  %v756_v15 = vadd.f32 %v755_v47, %v754_v37 }
  0xc8   : > { %v1222_v16 = vsel %vm730_vm0, %v1184_v59, 0.0  ;;  %v1155_v37 = vsel %vm730_vm0, %v1126_v9, 0.0  ;;  %v1237_v9 = vld [vmem:[%s2608_s10] sm:$0xff] }
  0xc9   : > { %1259 = vmatpush.msra.mxu3 %v1237_v9 }
  0xca   : > { %v647_v32 = vpop.permute.xlu0 %646 }
  0xcb   : > { %v2295_v39 = vadd.f32 %v647_v32, %v598_v30  ;;  %v2318_v1 = vadd.f32 %v647_v32, %v599_v52  ;;  %v826_v30 = vsel %vm730_vm0, %v782_v7, 0.0  ;;  %v1228_v7 = vsel %vm730_vm0, %v1186_v13, 0.0 }
  0xcc   : > { %1217 = vadd.xlane.f32.xlu2 %v1216_v35  ;;  %v708_v50 = vpop.permute.xlu1 %707  ;;  %1220 = vadd.xlane.f32.xlu1 %v1219_v42  ;;  %v1225_v35 = vsel %vm730_vm0, %v1185_v4, 0.0 }
  0xcd   : > { %v726_v56 = vmul.f32 %v708_v50, %v2268_v60  ;;  %v727_v18 = vmul.f32 %v708_v50, %v2270_v61  ;;  %v728_v0 = vmul.f32 %v2224_v6, %v2295_v39  ;;  %v729_v32 = vmul.f32 %v2224_v6, %v2318_v1 }
  0xce   : > { %v1187_v5 = vmul.f32 %v2160_v20, %v2295_v39  ;;  %v1631_v43 = vpack.c.bf16 %v2318_v1, %v2295_v39  ;;  %v786_v6 = vmul.f32 %v2261_v54, %v2270_v61 }
  0xcf   : > { %v742_v3 = vsel %vm730_vm0, %v726_v56, 0.0  ;;  %v757_v11 = vsel %vm730_vm0, %v727_v18, 0.0  ;;  %v744_v12 = vsel %vm730_vm0, %v728_v0, 0.0  ;;  %v1188_v56 = vmul.f32 %v2160_v20, %v2318_v1 }
  0xd0   : > { %v743_v10 = vadd.f32 %v742_v3, %v741_v58  ;;  %v758_v41 = vadd.f32 %v757_v11, %v756_v15  ;;  %v759_v18 = vsel %vm730_vm0, %v729_v32, 0.0  ;;  %v1231_v59 = vsel %vm730_vm0, %v1187_v5, 0.0 }
  0xd1   : > { %v788_v32 = vmul.f32 %v2261_v54, %v2318_v1 }
  0xd2   : > { %v745_v26 = vadd.f32 %v744_v12, %v743_v10  ;;  %v760_v0 = vadd.f32 %v759_v18, %v758_v41 }
  0xd4   : > { %1223 = vadd.xlane.f32.xlu2 %v1222_v16  ;;  %v766_v42 = vpop.permute.xlu1 %765  ;;  %1226 = vadd.xlane.f32.xlu1 %v1225_v35 }
  0xd5   : > { %861 = vxpose.xlu0.b32.start [1/2] (short) (narrow) %v745_v26, 8  ;;  %v773_v45 = vmul.f32 %v766_v42, %v2166_v23  ;;  %v775_v46 = vmul.f32 %v766_v42, %v2162_v21  ;;  %v777_v50 = vmul.f32 %v766_v42, %v2180_v33  ;;  %v779_v52 = vmul.f32 %v766_v42, %v2196_v48 }
  0xd6   : > { %v781_v53 = vmul.f32 %v766_v42, %v2212_v62  ;;  %v783_v10 = vmul.f32 %v766_v42, %v2234_v19 }
  0xd7   : > { %v789_v57 = vsel %vm730_vm0, %v773_v45, 0.0  ;;  %v798_v58 = vsel %vm730_vm0, %v775_v46, 0.0  ;;  %v807_v4 = vsel %vm730_vm0, %v777_v50, 0.0  ;;  %v816_v11 = vsel %vm730_vm0, %v779_v52, 0.0 }
  0xd8   : > { %v791_v3 = vadd.f32 %v790_v51, %v789_v57  ;;  %v800_v47 = vadd.f32 %v799_v8, %v798_v58  ;;  %v809_v20 = vadd.f32 %v808_v36, %v807_v4  ;;  %v825_v12 = vsel %vm730_vm0, %v781_v53, 0.0 }
  0xd9   : > { %v818_v16 = vadd.f32 %v817_v14, %v816_v11  ;;  %v827_v26 = vadd.f32 %v826_v30, %v825_v12  ;;  %v785_v51 = vmul.f32 %v766_v42, %v2268_v60  ;;  %v787_v8 = vmul.f32 %v766_v42, %v2295_v39  ;;  %v2377_v42 = vpop.permute.xlu2 %1104 }
  0xda   : > { %v792_v13 = vrot.slane %v791_v3, 4  ;;  %v801_v15 = vrot.slane %v800_v47, 4  ;;  %v810_v35 = vrot.slane %v809_v20, 4  ;;  %v844_v46 = vsel %vm730_vm0, %v786_v6, 0.0 }
  0xdb   : > { %v819_v45 = vrot.slane %v818_v16, 4  ;;  %v1234_v30 = vsel %vm730_vm0, %v1188_v56, 0.0  ;;  %v834_v50 = vsel %vm730_vm0, %v783_v10, 0.0  ;;  %v843_v58 = vsel %vm730_vm0, %v785_v51, 0.0 }
  0xdc   : > { %1229 = vadd.xlane.f32.xlu2 %v1228_v7  ;;  %v1093_v5 = vpop.permute.xlu1 %1092  ;;  %1232 = vadd.xlane.f32.xlu1 %v1231_v59  ;;  %v793_v36 = vadd.f32 %v792_v13, %v791_v3  ;;  %v802_v41 = vadd.f32 %v801_v15, %v800_v47  ;;  %v828_v7 = vrot.slane %v827_v26, 4  ;;  %v811_v53 = vadd.f32 %v810_v35, %v809_v20 }
  0xdd   : > { %862 = vxpose.xlu0.b32.end [2/2] (short) (narrow) %v760_v0, 8  ;;  %v1124_v14 = vmul.f32 %v1093_v5, %v2168_v24  ;;  %v820_v18 = vadd.f32 %v819_v45, %v818_v16  ;;  %v852_v59 = vsel %vm730_vm0, %v787_v8, 0.0  ;;  %v853_v6 = vsel %vm730_vm0, %v788_v32, 0.0 }
  0xde   : > { %v794_v52 = vrot.slane %v793_v36, 2  ;;  %v803_v54 = vrot.slane %v802_v41, 2  ;;  %v1123_v0 = vmul.f32 %v1093_v5, %v2166_v23  ;;  %v812_v4 = vrot.slane %v811_v53, 2 }
  0xdf   : > { %v1154_v57 = vsel %vm730_vm0, %v1124_v14, 0.0  ;;  %v821_v9 = vrot.slane %v820_v18, 2  ;;  %v829_v10 = vadd.f32 %v828_v7, %v827_v26  ;;  %v836_v20 = vadd.f32 %v2335_v31, %v834_v50 }
  0xe0   : > { %v2384_v56 = vadd.f32 %v1155_v37, %v1154_v57  ;;  %v795_v3 = vadd.f32 %v794_v52, %v793_v36  ;;  %v804_v47 = vadd.f32 %v803_v54, %v802_v41  ;;  %v845_v13 = vadd.f32 %v844_v46, %v843_v58 }
  0xe1   : > { %v854_v15 = vadd.f32 %v853_v6, %v852_v59  ;;  %v813_v16 = vadd.f32 %v812_v4, %v811_v53  ;;  %v822_v51 = vadd.f32 %v821_v9, %v820_v18  ;;  %v830_v8 = vrot.slane %v829_v10, 2  ;;  %v1113_v18 = vpop.permute.xlu2 %1112 }
  0xe2   : > { %v796_v11 = vrot.slane %v795_v3, 1  ;;  %v805_v12 = vrot.slane %v804_v47, 1  ;;  %v837_v32 = vrot.slane %v836_v20, 4  ;;  %v846_v37 = vrot.slane %v845_v13, 4 }
  0xe3   : > { %v855_v45 = vrot.slane %v854_v15, 4  ;;  %v814_v26 = vrot.slane %v813_v16, 1  ;;  %v823_v14 = vrot.slane %v822_v51, 1  ;;  %v831_v31 = vadd.f32 %v830_v8, %v829_v10 }
  0xe4   : > { %1235 = vadd.xlane.f32.xlu2 %v1234_v30  ;;  %v1101_v35 = vpop.permute.xlu1 %1100  ;;  %v797_v5 = vadd.f32 %v796_v11, %v795_v3  ;;  %v806_v41 = vadd.f32 %v805_v12, %v804_v47  ;;  %v838_v7 = vadd.f32 %v837_v32, %v836_v20  ;;  %v847_v50 = vadd.f32 %v846_v37, %v845_v13 }
  0xe5   : > { %v1127_v36 = vmul.f32 %v1101_v35, %v2180_v33  ;;  %v856_v46 = vadd.f32 %v855_v45, %v854_v15  ;;  %v1140_v30 = vsel %vm730_vm0, %v2343_v40, 0.0  ;;  %v1129_v52 = vmul.f32 %v2377_v42, %v2196_v48 }
  0xe6   : > { %v1139_v54 = vsel %vm730_vm0, %v1123_v0, 0.0  ;;  %v815_v53 = vadd.f32 %v814_v26, %v813_v16  ;;  %v832_v57 = vrot.slane %v831_v31, 1  ;;  %v839_v58 = vrot.slane %v838_v7, 2 }
  0xe7   : > { %v1142_v59 = vsel %vm730_vm0, %v1127_v36, 0.0  ;;  %v848_v6 = vrot.slane %v847_v50, 2  ;;  %v857_v3 = vrot.slane %v856_v46, 2  ;;  %v929_v47 = vsel %vm928_vm1, %v806_v41, %v797_v5 }
  0xe8   : > { %v1141_v4 = vadd.f32 %v1140_v30, %v1139_v54  ;;  %v824_v9 = vadd.f32 %v823_v14, %v822_v51  ;;  %v840_v40 = vadd.f32 %v839_v58, %v838_v7  ;;  %v1128_v10 = vmul.f32 %v1101_v35, %v2182_v34 }
  0xe9   : > { %v849_v20 = vadd.f32 %v848_v6, %v847_v50  ;;  %v858_v0 = vadd.f32 %v857_v3, %v856_v46  ;;  %v931_v11 = vsel %vm930_vm2, %v815_v53, %v929_v47  ;;  %v833_v15 = vadd.f32 %v832_v57, %v831_v31  ;;  %v1121_v54 = vpop.permute.xlu2 %1120 }
  0xea   : > { %v1143_v12 = vadd.f32 %v1142_v59, %v1141_v4  ;;  %v841_v16 = vrot.slane %v840_v40, 1  ;;  %v933_v8 = vsel %vm932_vm3, %v824_v9, %v931_v11  ;;  %v1144_v51 = vsel %vm730_vm0, %v1129_v52, 0.0 }
  0xeb   : > { %v850_v37 = vrot.slane %v849_v20, 1  ;;  %v859_v5 = vrot.slane %v858_v0, 1  ;;  %v935_v35 = vsel %vm934_vm4, %v833_v15, %v933_v8  ;;  %v1157_v36 = vsel %vm730_vm0, %v1128_v10, 0.0 }
  0xec   : > { %v1109_v13 = vpop.permute.xlu1 %1108  ;;  %v842_v45 = vadd.f32 %v841_v16, %v840_v40  ;;  %v1130_v14 = vmul.f32 %v2377_v42, %v2198_v49  ;;  %v1145_v31 = vadd.f32 %v1144_v51, %v1143_v12  ;;  %v1133_v46 = vmul.f32 %v1113_v18, %v2234_v19 }
  0xed   : > { %v1131_v32 = vmul.f32 %v1109_v13, %v2212_v62  ;;  %v851_v26 = vadd.f32 %v850_v37, %v849_v20  ;;  %v860_v7 = vadd.f32 %v859_v5, %v858_v0  ;;  %v1132_v30 = vmul.f32 %v1109_v13, %v2214_v63 }
  0xee   : > { %v937_v50 = vsel %vm936_vm5, %v842_v45, %v935_v35  ;;  %v1158_v53 = vadd.f32 %v1157_v36, %v2384_v56  ;;  %v1159_v59 = vsel %vm730_vm0, %v1130_v14, 0.0  ;;  %v1148_v6 = vsel %vm730_vm0, %v1133_v46, 0.0 }
  0xef   : > { %v1146_v41 = vsel %vm730_vm0, %v1131_v32, 0.0  ;;  %v939_v52 = vsel %vm938_vm6, %v851_v26, %v937_v50  ;;  %v1137_v3 = vmul.f32 %v1121_v54, %v2295_v39  ;;  %v1161_v47 = vsel %vm730_vm0, %v1132_v30, 0.0 }
  0xf0   : > { %v1147_v57 = vadd.f32 %v1146_v41, %v1145_v31  ;;  %v941_v58 = vsel %vm940_vm7, %v860_v7, %v939_v52  ;;  %v1160_v9 = vadd.f32 %v1159_v59, %v1158_v53  ;;  %v1134_v10 = vmul.f32 %v1113_v18, %v2236_v25 }
  0xf1   : > { %961 = vmatpush.msrb.mxu0 %v941_v58  ;;  %v1152_v12 = vsel %vm730_vm0, %v1137_v3, 0.0  ;;  %v1138_v32 = vmul.f32 %v1121_v54, %v2318_v1  ;;  %v1195_v51 = vsel %vm730_vm0, %v2174_v27, 0.0  ;;  %v1285_v54 = vlaneseq }
  0xf2   : > { %v1149_v40 = vadd.f32 %v1148_v6, %v1147_v57  ;;  %v1162_v0 = vadd.f32 %v1161_v47, %v1160_v9  ;;  %v1163_v15 = vsel %vm730_vm0, %v1134_v10, 0.0 }
  0xf3   : > { %v1167_v18 = vsel %vm730_vm0, %v1138_v32, 0.0  ;;  %v1286_v53 = vand.u32 127, %v1285_v54 }
  0xf4   : > { %v1117_v42 = vpop.permute.xlu1 %1116  ;;  %v1164_v8 = vadd.f32 %v1163_v15, %v1162_v0 }
  0xf5   : > { %v1135_v4 = vmul.f32 %v1117_v42, %v2268_v60  ;;  %v1136_v56 = vmul.f32 %v1117_v42, %v2270_v61  ;;  %v1288_v58 = vadd.s32 4294967288, %v1286_v53 }
  0xf7   : > { %v1150_v20 = vsel %vm730_vm0, %v1135_v4, 0.0  ;;  %v1165_v16 = vsel %vm730_vm0, %v1136_v56, 0.0 }
  0xf8   : > { %v1151_v11 = vadd.f32 %v1150_v20, %v1149_v40  ;;  %v1166_v37 = vadd.f32 %v1165_v16, %v1164_v8 }
  0xfa   : > { %v1153_v13 = vadd.f32 %v1152_v12, %v1151_v11  ;;  %v1168_v5 = vadd.f32 %v1167_v18, %v1166_v37 }
  0xfc   : > { %1808 = vmatmul.msk.f32.vlgmr.msra.gmra.mxu3 %vm730_vm0, %v1153_v13 }
 0x104   : > { %1809 = vmatmul.msk.f32.gmra.mxu3 %vm730_vm0, %v1168_v5 }
 0x11f   : > { %v1194_v35 = vpop.xlane.xlu2 %1193  ;;  %v1191_v41 = vpop.xlane.xlu1 %1190 }
 0x120   : > { %v1289_v59 = vperm.slane %v1194_v35, %v1288_v58  ;;  %v1287_v42 = vperm.slane %v1191_v41, %v1286_v53 }
 0x122   : > { %v1291_v20 = vsel %vm1290_vm9, %v1289_v59, %v1287_v42  ;;  %v1267_v59 = vld [vmem:[%s2609_s11] sm:$0xff] }
 0x127   : > { %v1200_v36 = vpop.xlane.xlu2 %1199  ;;  %v1203_v14 = vpop.xlane.xlu1 %1202 }
 0x128   : > { %v1293_v47 = vperm.slane %v1200_v36, %v1288_v58  ;;  %v1295_v40 = vperm.slane %v1203_v14, %v1286_v53 }
 0x12f   : > { %v1206_v26 = vpop.xlane.xlu2 %1205  ;;  %v1209_v7 = vpop.xlane.xlu1 %1208 }
 0x130   : > { %v1296_v6 = vperm.slane %v1206_v26, %v1288_v58  ;;  %v1298_v0 = vperm.slane %v1209_v7, %v1286_v53 }
 0x132   : > { %v1297_v13 = vsel %vm1290_vm9, %v1296_v6, %v1295_v40 }
 0x137   : > { %v1212_v31 = vpop.xlane.xlu2 %1211  ;;  %v1215_v46 = vpop.xlane.xlu1 %1214 }
 0x138   : > { %v1299_v4 = vperm.slane %v1212_v31, %v1288_v58  ;;  %v1301_v15 = vperm.slane %v1215_v46, %v1286_v53 }
 0x13a   : > { %v1300_v37 = vsel %vm1290_vm9, %v1299_v4, %v1298_v0 }
 0x13f   : > { %v1218_v50 = vpop.xlane.xlu2 %1217  ;;  %v1221_v52 = vpop.xlane.xlu1 %1220 }
 0x140   : > { %v1302_v10 = vperm.slane %v1218_v50, %v1288_v58  ;;  %v1304_v18 = vperm.slane %v1221_v52, %v1286_v53 }
 0x147   : > { %v1224_v30 = vpop.xlane.xlu2 %1223  ;;  %v1227_v27 = vpop.xlane.xlu1 %1226 }
 0x148   : > { %v1305_v11 = vperm.slane %v1224_v30, %v1288_v58  ;;  %v1307_v35 = vperm.slane %v1227_v27, %v1286_v53  ;;  %v1268_v27 = vld [vmem:[%s2609_s11 + $0x8] sm:$0xff] }
 0x14a   : > { %v1306_v41 = vsel %vm1290_vm9, %v1305_v11, %v1304_v18 }
 0x14e   : > { %1196 = vadd.xlane.f32.xlu0 %v1195_v51 }
 0x14f   : > { %v1230_v57 = vpop.xlane.xlu2 %1229  ;;  %v1233_v8 = vpop.xlane.xlu1 %1232 }
 0x150   : > { %v1308_v16 = vperm.slane %v1230_v57, %v1288_v58  ;;  %v1310_v26 = vperm.slane %v1233_v8, %v1286_v53 }
 0x152   : > { %v1309_v31 = vsel %vm1290_vm9, %v1308_v16, %v1307_v35 }
 0x157   : > { %v1236_v56 = vpop.xlane.xlu2 %1235 }
 0x158   : > { %v1311_v5 = vperm.slane %v1236_v56, %v1288_v58 }
 0x15a   : > { %v1312_v46 = vsel %vm1290_vm9, %v1311_v5, %v1310_v26 }
 0x179   : > { %v877_v45 = vpop.trf.xlu0 }
 0x17a   : > { %1804 = vmatmul.msk.f32.vlgmr.msra.gmra.mxu0 %vm895_vm8, %v877_v45  ;;  %v1303_v45 = vsel %vm1290_vm9, %v1302_v10, %v1301_v15 }
 0x17f   : > { %v1261_v50 = vpop.f32.mrf.mxu3 }
 0x187   : > { %v1264_v54 = vpop.f32.mrf.mxu3 }
 0x1c1   : > { %v1197_v3 = vpop.xlane.xlu0 %1196 }
 0x1c2   : > { %v1292_v9 = vperm.slane %v1197_v3, %v1286_v53 }
 0x1c4   : > { %v1294_v12 = vsel %vm1290_vm9, %v1293_v47, %v1292_v9  ;;  %v919_v9 = vld [vmem:[%s2634_s6] sm:$0xff] }
 0x1c5   : > { %v1313_v32 = vsel %vm928_vm1, %v1294_v12, %v1291_v20 }
 0x1c6   : > { %v1314_v51 = vsel %vm930_vm2, %v1297_v13, %v1313_v32 }
 0x1c7   : > { %v1315_v36 = vsel %vm932_vm3, %v1300_v37, %v1314_v51 }
 0x1c8   : > { %v1316_v14 = vsel %vm934_vm4, %v1303_v45, %v1315_v36 }
 0x1c9   : > { %v1317_v7 = vsel %vm936_vm5, %v1306_v41, %v1316_v14 }
 0x1ca   : > { %v1318_v30 = vsel %vm938_vm6, %v1309_v31, %v1317_v7 }
 0x1cb   : > { %v1319_v52 = vsel %vm940_vm7, %v1312_v46, %v1318_v30 }
 0x1cc   : > { %1342 = vmatpush.msra.mxu1 %v1319_v52 }
 0x1cd   : > { %1810 = vmatmul.msk.f32.vlgmr.msra.gmra.mxu1 %vm730_vm0, %v1261_v50 }
 0x1d5   : > { %1811 = vmatmul.msk.f32.gmra.mxu1 %vm730_vm0, %v1264_v54 }
 0x1f7   : > { %v916_v53 = vpop.f32.mrf.mxu0 }
 0x1f8   : > { %1805 = vmatmul.msk.f32.vlgmr.msrb.gmra.mxu0 %vm730_vm0, %v916_v53 }
 0x24a   : > { %v1344_v57 = vpop.f32.mrf.mxu1 }
 0x24b   : > { %v1345_v6 = vadd.f32 %v1344_v57, %v1267_v59 }
 0x24d   : > { %v1812_v47 = vmul.f32 -1.442695, %v1345_v6 }
 0x252   : > { %v1347_v58 = vpop.f32.mrf.mxu1 }
 0x253   : > { %v1348_v42 = vadd.f32 %v1347_v58, %v1268_v27  ;;  %v985_v27 = vld [vmem:[%s2637_s7] sm:$0xff] }
 0x255   : > { %v1813_v3 = vmul.f32 -1.442695, %v1348_v42 }
 0x257   : > { %1890 = vpow2.f32 %v1813_v3 }
 0x258   : > { %1892 = vpow2.f32 %v1812_v47 }
 0x25d   : > { %v1891_v4 = vpop.eup %1890 }
 0x25e   : > { %v1893_v40 = vpop.eup %1892  ;;  %v1357_v10 = vadd.f32 1.0, %v1891_v4 }
 0x25f   : > { %v1356_v0 = vadd.f32 1.0, %v1893_v40  ;;  %v1388_v40 = vld [vmem:[%s2610_s12] sm:$0xff] }
 0x260   : > { %1894 = vrcp.f32 %v1357_v10  ;;  %vm1378_vm12 = vweird.f32 %v1357_v10  ;;  %v1384_v7 = vand.u32 2147483648, %v1357_v10  ;;  %v1382_v30 = vand.u32 2147483647, %v1357_v10 }
 0x261   : > { %vm1363_vm2 = vweird.f32 %v1356_v0  ;;  %v1369_v53 = vand.u32 2147483648, %v1356_v0  ;;  %v1367_v59 = vand.u32 2147483647, %v1356_v0 }
 0x262   : > { %v1385_v6 = vor.u32 1.1754944e-38, %v1384_v7  ;;  %vm1383_vm5 = vcmp.eq.f32.partialorder %v1382_v30, 8.507059e+37 }
 0x263   : > { %v1370_v4 = vor.u32 1.1754944e-38, %v1369_v53  ;;  %vm1368_vm6 = vcmp.eq.f32.partialorder %v1367_v59, 8.507059e+37 }
 0x266   : > { %v1895_v12 = vpop.eup %1894 }
 0x267   : > { %v1374_v8 = vmul.f32 %v1895_v12, %v1357_v10  ;;  %vm1379_vm10 = vweird.f32 %v1895_v12  ;;  %v1389_v10 = vld [vmem:[%s2610_s12 + $0x8] sm:$0xff] }
 0x268   : > { %vm2456_vm15 = vmor %vm1378_vm12, %vm1379_vm10 }
 0x269   : > { %v1375_v37 = vsub.f32 1.0, %v1374_v8 }
 0x26b   : > { %v1376_v45 = vmul.f32 %v1895_v12, %v1375_v37 }
 0x26d   : > { %v1377_v31 = vadd.f32 %v1895_v12, %v1376_v45 }
 0x26f   : > { %v1381_v58 = vsel %vm2456_vm15, %v1895_v12, %v1377_v31 }
 0x270   : > { %v1386_v47 = vsel %vm1383_vm5, %v1385_v6, %v1381_v58  ;;  %vm1485_vm5 = vcmask 1043456  }
 0x275   : > { %v963_v56 = vpop.f32.mrf.mxu0 }
 0x276   : > { %v964_v20 = vadd.f32 %v963_v56, %v919_v9 }
 0x278   : > { %v1806_v11 = vmul.f32 -1.442695, %v964_v20 }
 0x27a   : > { %1896 = vpow2.f32 %v1806_v11 }
 0x27b   : > { %1898 = vrcp.f32 %v1356_v0 }
 0x280   : > { %v1897_v13 = vpop.eup %1896 }
 0x281   : > { %v1899_v15 = vpop.eup %1898  ;;  %v969_v16 = vadd.f32 1.0, %v1897_v13 }
 0x282   : > { %v1359_v32 = vmul.f32 %v1899_v15, %v1356_v0  ;;  %vm1364_vm13 = vweird.f32 %v1899_v15 }
 0x283   : > { %1900 = vrcp.f32 %v969_v16  ;;  %v981_v41 = vand.u32 2147483648, %v969_v16  ;;  %v979_v14 = vand.u32 2147483647, %v969_v16  ;;  %vm975_vm14 = vweird.f32 %v969_v16  ;;  %vm1365_vm4 = vmor %vm1363_vm2, %vm1364_vm13 }
 0x284   : > { %v1360_v18 = vsub.f32 1.0, %v1359_v32 }
 0x285   : > { %v982_v54 = vor.u32 1.1754944e-38, %v981_v41  ;;  %vm980_vm3 = vcmp.eq.f32.partialorder %v979_v14, 8.507059e+37 }
 0x286   : > { %v1361_v36 = vmul.f32 %v1899_v15, %v1360_v18 }
 0x288   : > { %v1362_v52 = vadd.f32 %v1899_v15, %v1361_v36 }
 0x289   : > { %v1901_v5 = vpop.eup %1900 }
 0x28a   : > { %v971_v51 = vmul.f32 %v1901_v5, %v969_v16  ;;  %vm976_vm11 = vweird.f32 %v1901_v5  ;;  %v1366_v3 = vsel %vm1365_vm4, %v1899_v15, %v1362_v52 }
 0x28b   : > { %vm977_vm1 = vmor %vm975_vm14, %vm976_vm11  ;;  %v1371_v9 = vsel %vm1368_vm6, %v1370_v4, %v1366_v3 }
 0x28c   : > { %v972_v35 = vsub.f32 1.0, %v971_v51 }
 0x28e   : > { %v973_v26 = vmul.f32 %v1901_v5, %v972_v35 }
 0x290   : > { %v974_v50 = vadd.f32 %v1901_v5, %v973_v26 }
 0x292   : > { %v978_v57 = vsel %vm977_vm1, %v1901_v5, %v974_v50 }
 0x293   : > { %v983_v42 = vsel %vm980_vm3, %v982_v54, %v978_v57 }
 0x294   : > { %1004 = vmatpush.msra.mxu2 %v983_v42 }
 0x295   : > { %1807 = vmatmul.msk.f32.vlgmr.msra.gmra.mxu2 %vm730_vm0, %v985_v27 }
 0x296   : > { %1410 = vmatpush.msrb.mxu2 %v1386_v47 }
 0x298   : > { %1411 = vmatpush.msrb.mxu2 %v1371_v9 }
 0x29d   : > { %1814 = vmatmul.msk.f32.vlgmr.msrb.gmra.mxu2 %vm895_vm8, %v1388_v40 }
 0x2a5   : > { %1815 = vmatmul.msk.f32.gmra.mxu2 %vm895_vm8, %v1389_v10 }
 0x318   : > { %v1006_v56 = vpop.f32.mrf.mxu2 }
 0x319   : > { %v1009_v20 = vsel %vm730_vm0, %v1006_v56, -inf }
 0x31a   : > { %v1010_v0 = vrot.slane %v1009_v20, 4 }
 0x31c   : > { %v1011_v11 = vmax.f32 %v1009_v20, %v1010_v0 }
 0x31e   : > { %v1012_v12 = vrot.slane %v1011_v11, 2 }
 0x320   : > { %v1013_v13 = vmax.f32 %v1011_v11, %v1012_v12  ;;  %v1413_v37 = vpop.f32.mrf.mxu2 }
 0x321   : > { %v1419_v5 = vsel %vm895_vm8, %v1413_v37, -inf }
 0x322   : > { %v1014_v15 = vrot.slane %v1013_v13, 1 }
 0x324   : > { %v1015_v16 = vmax.f32 %v1013_v13, %v1014_v15 }
 0x326   : > { %v1016_v8 = vsub.f32 %v1006_v56, %v1015_v16 }
 0x328   : > { %v1017_v32 = vsel %vm730_vm0, %v1016_v8, -inf  ;;  %v1416_v18 = vpop.f32.mrf.mxu2 }
 0x329   : > { %1018 = vmax.xlane.f32.xlu1 %v1017_v32  ;;  %v1420_v51 = vsel %vm895_vm8, %v1416_v18, -inf }
 0x32a   : > { %v1421_v45 = vmax.f32 %v1419_v5, %v1420_v51 }
 0x32c   : > { %v1422_v35 = vrot.slane %v1421_v45, 4 }
 0x32e   : > { %v1423_v36 = vmax.f32 %v1421_v45, %v1422_v35 }
 0x330   : > { %v1424_v41 = vrot.slane %v1423_v36, 2 }
 0x332   : > { %v1425_v31 = vmax.f32 %v1423_v36, %v1424_v41 }
 0x334   : > { %v1426_v50 = vrot.slane %v1425_v31, 1 }
 0x336   : > { %v1427_v46 = vmax.f32 %v1425_v31, %v1426_v50 }
 0x338   : > { %v1428_v54 = vsub.f32 %v1413_v37, %v1427_v46  ;;  %v1429_v57 = vsub.f32 %v1416_v18, %v1427_v46 }
 0x33a   : > { %v1430_v53 = vsel %vm895_vm8, %v1428_v54, -inf  ;;  %v1433_v27 = vsel %vm895_vm8, %v1429_v57, -inf }
 0x39c   : > { %v1019_v26 = vpop.xlane.xlu1 %1018 }
 0x39d   : > { %v1020_v14 = vsub.f32 %v1016_v8, %v1019_v26 }
 0x39f   : > { %v1021_v7 = vmul.f32 1.442695, %v1020_v14 }
 0x3a1   : > { %1902 = vpow2.f32 %v1021_v7 }
 0x3a7   : > { %v1903_v30 = vpop.eup %1902 }
 0x3a8   : > { %v1023_v52 = vsel %vm730_vm0, %v1903_v30, 0.0 }
 0x3a9   : > { %1024 = vadd.xlane.f32.xlu2 %v1023_v52 }
 0x3b1   : > { %1431 = vmax.xlane.f32.xlu2 %v1430_v53 }
 0x3b9   : > { %1434 = vmax.xlane.f32.xlu2 %v1433_v27 }
 0x41c   : > { %v1025_v58 = vpop.xlane.xlu2 %1024 }
 0x41d   : > { %1904 = vrcp.f32 %v1025_v58  ;;  %v1037_v4 = vand.u32 2147483648, %v1025_v58  ;;  %v1035_v10 = vand.u32 2147483647, %v1025_v58  ;;  %vm1031_vm9 = vweird.f32 %v1025_v58 }
 0x41f   : > { %v1038_v20 = vor.u32 1.1754944e-38, %v1037_v4  ;;  %vm1036_vm11 = vcmp.eq.f32.partialorder %v1035_v10, 8.507059e+37 }
 0x423   : > { %v1905_v59 = vpop.eup %1904 }
 0x424   : > { %v1027_v42 = vmul.f32 %v1905_v59, %v1025_v58  ;;  %v1432_v6 = vpop.xlane.xlu2 %1431  ;;  %vm1032_vm7 = vweird.f32 %v1905_v59 }
 0x425   : > { %v1436_v3 = vsub.f32 %v1428_v54, %v1432_v6  ;;  %vm1033_vm10 = vmor %vm1031_vm9, %vm1032_vm7 }
 0x426   : > { %v1028_v47 = vsub.f32 1.0, %v1027_v42 }
 0x427   : > { %v1438_v9 = vmul.f32 1.442695, %v1436_v3 }
 0x428   : > { %v1029_v40 = vmul.f32 %v1905_v59, %v1028_v47 }
 0x429   : > { %1906 = vpow2.f32 %v1438_v9 }
 0x42a   : > { %v1030_v56 = vadd.f32 %v1905_v59, %v1029_v40 }
 0x42c   : > { %v1435_v0 = vpop.xlane.xlu2 %1434  ;;  %v1034_v11 = vsel %vm1033_vm10, %v1905_v59, %v1030_v56 }
 0x42d   : > { %v1437_v12 = vsub.f32 %v1429_v57, %v1435_v0  ;;  %v1039_v13 = vsel %vm1036_vm11, %v1038_v20, %v1034_v11 }
 0x42e   : > { %v1040_v15 = vmul.f32 %v1903_v30, %v1039_v13 }
 0x42f   : > { %v1907_v16 = vpop.eup %1906  ;;  %v1440_v8 = vmul.f32 1.442695, %v1437_v12 }
 0x430   : > { %1041 = vxpose.xlu1.b32.start.end [1/1] (short) (narrow) %v1040_v15, 8  ;;  %v1442_v32 = vsel %vm895_vm8, %v1907_v16, 0.0 }
 0x431   : > { %1908 = vpow2.f32 %v1440_v8  ;;  %1443 = vadd.xlane.f32.xlu0 %v1442_v32 }
 0x437   : > { %v1909_v37 = vpop.eup %1908 }
 0x438   : > { %v1445_v18 = vsel %vm895_vm8, %v1909_v37, 0.0 }
 0x439   : > { %1446 = vadd.xlane.f32.xlu2 %v1445_v18 }
 0x4a4   : > { %v1444_v5 = vpop.xlane.xlu0 %1443 }
 0x4a5   : > { %1910 = vrcp.f32 %v1444_v5  ;;  %v1459_v36 = vand.u32 2147483648, %v1444_v5  ;;  %vm1453_vm12 = vweird.f32 %v1444_v5  ;;  %v1457_v26 = vand.u32 2147483647, %v1444_v5 }
 0x4a7   : > { %v1460_v31 = vor.u32 1.1754944e-38, %v1459_v36  ;;  %vm1458_vm15 = vcmp.eq.f32.partialorder %v1457_v26, 8.507059e+37 }
 0x4ab   : > { %v1911_v51 = vpop.eup %1910 }
 0x4ac   : > { %v1449_v45 = vmul.f32 %v1911_v51, %v1444_v5  ;;  %v1447_v35 = vpop.xlane.xlu2 %1446  ;;  %vm1454_vm13 = vweird.f32 %v1911_v51 }
 0x4ad   : > { %1912 = vrcp.f32 %v1447_v35  ;;  %vm1455_vm14 = vmor %vm1453_vm12, %vm1454_vm13  ;;  %vm1468_vm1 = vweird.f32 %v1447_v35  ;;  %v1474_v54 = vand.u32 2147483648, %v1447_v35  ;;  %v1472_v27 = vand.u32 2147483647, %v1447_v35 }
 0x4ae   : > { %v1450_v41 = vsub.f32 1.0, %v1449_v45 }
 0x4af   : > { %v1475_v59 = vor.u32 1.1754944e-38, %v1474_v54  ;;  %vm1473_vm4 = vcmp.eq.f32.partialorder %v1472_v27, 8.507059e+37 }
 0x4b0   : > { %v1451_v14 = vmul.f32 %v1911_v51, %v1450_v41 }
 0x4b2   : > { %v1452_v7 = vadd.f32 %v1911_v51, %v1451_v14 }
 0x4b3   : > { %v1913_v50 = vpop.eup %1912 }
 0x4b4   : > { %v1456_v46 = vsel %vm1455_vm14, %v1911_v51, %v1452_v7  ;;  %v1464_v30 = vmul.f32 %v1913_v50, %v1447_v35  ;;  %vm1469_vm2 = vweird.f32 %v1913_v50 }
 0x4b5   : > { %v1461_v52 = vsel %vm1458_vm15, %v1460_v31, %v1456_v46  ;;  %vm1470_vm3 = vmor %vm1468_vm1, %vm1469_vm2 }
 0x4b6   : > { %v1462_v53 = vmul.f32 %v1907_v16, %v1461_v52  ;;  %v1465_v57 = vsub.f32 1.0, %v1464_v30 }
 0x4b8   : > { %1478 = vst.msk [vmem:[%s512_s17] sm:$0xff] %vm895_vm8, %v1462_v53  ;;  %v1466_v58 = vmul.f32 %v1913_v50, %v1465_v57 }
 0x4ba   : > { %v1467_v42 = vadd.f32 %v1913_v50, %v1466_v58 }
 0x4bc   : > { %v1471_v6 = vsel %vm1470_vm3, %v1913_v50, %v1467_v42 }
 0x4bd   : > { %v1476_v3 = vsel %vm1473_vm4, %v1475_v59, %v1471_v6 }
 0x4be   : > { %v1477_v47 = vmul.f32 %v1909_v37, %v1476_v3 }
 0x4c0   : > { %1479 = vst.msk [vmem:[%s512_s17 + $0x8] sm:$0xff] %vm895_vm8, %v1477_v47 }
 0x4d4   : > { %v1057_v4 = vpop.trf.xlu1 }
 0x4d5   : > { %1073 = vst.msk [vmem:[%s488_s0] sm:$0xff] %vm730_vm0, %v1057_v4  ;;  %v1480_v9 = vpack.c.bf16 %v1057_v4, %v1057_v4 }
 0x4d7   : > { %v1487_v40 = vsel %vm1485_vm5, %v1480_v9, 0 }
 0x4d8   : > { %1496 = vmatpush.bf16.msra.mxu0 %v1487_v40  ;;  %1516 = vmatpush.bf16.msrb.mxu3 %v1487_v40 }
 0x4d9   : > { %1537 = vmatpush.bf16.msrb.mxu1 %v1487_v40  ;;  %1558 = vmatpush.bf16.msra.mxu2 %v1487_v40 }
 0x4db   : > { %1816 = vmatmul.msk.bf16.vlgmr.msra.gmra.mxu0 %vm730_vm0, %v1481_v28  ;;  %1817 = vmatmul.msk.bf16.vlgmr.msrb.gmra.mxu3 %vm730_vm0, %v1505_v29 }
 0x4dc   : > { %1579 = vmatpush.bf16.msrb.mxu0 %v1487_v40  ;;  %1600 = vmatpush.bf16.msra.mxu3 %v1487_v40 }
 0x4dd   : > { %1621 = vmatpush.bf16.msra.mxu1 %v1487_v40  ;;  %1642 = vmatpush.bf16.msrb.mxu2 %v1487_v40 }
 0x4de   : > { %1820 = vmatmul.msk.bf16.vlgmr.msrb.gmra.mxu1 %vm730_vm0, %v1526_v38  ;;  %1823 = vmatmul.msk.bf16.vlgmr.msra.gmra.mxu2 %vm730_vm0, %v1547_v55 }
 0x4eb   : > { %1826 = vmatmul.msk.bf16.vlgmr.msrb.gmra.mxu0 %vm730_vm0, %v1568_v2  ;;  %1829 = vmatmul.msk.bf16.vlgmr.msra.gmra.mxu3 %vm730_vm0, %v1589_v44 }
 0x4ee   : > { %1832 = vmatmul.msk.bf16.vlgmr.msra.gmra.mxu1 %vm730_vm0, %v1610_v17  ;;  %1835 = vmatmul.msk.bf16.vlgmr.msrb.gmra.mxu2 %vm730_vm0, %v1631_v43 }
 0x4ef   : > { %1941 = shalt.err (!%p1938_p3)
}
 0x4f0   : > { %1845 = dma.vmem_to_hbm [thread:$0]  (%p2097_p5), %s1676_s16, 128, %s1678_s1, %s1653_s3  }
 0x4f1   : > { %s2639_s2 = sshll.u32 %s2139_s30, 7 }
 0x4f2   : > { %s2547_s17 = scalar_lea.vmem %s2613_s15, %s2639_s2 }
 0x558   : > { %v1498_v21 = vpop.f32.mrf.mxu0 }
 0x559   : > { %1503 = vst.msk [vmem:[%s2547_s17] sm:$0xff] %vm730_vm0, %v1498_v21 }
 0x55b   : > { %v1539_v22 = vpop.f32.mrf.mxu1 }
 0x55c   : > { %1821 = vst.msk [vmem:[%s2547_s17 + $0x20] sm:$0xff] %vm730_vm0, %v1539_v22 }
 0x55e   : > { %v1518_v23 = vpop.f32.mrf.mxu3 }
 0x55f   : > { %1818 = vst.msk [vmem:[%s2547_s17 + $0x10] sm:$0xff] %vm730_vm0, %v1518_v23 }
 0x560   : > { %v1500_v28 = vpop.f32.mrf.mxu0 }
 0x561   : > { %v1560_v24 = vpop.f32.mrf.mxu2  ;;  %1504 = vst.msk [vmem:[%s2547_s17 + $0x8] sm:$0xff] %vm730_vm0, %v1500_v28 }
 0x562   : > { %1824 = vst.msk [vmem:[%s2547_s17 + $0x30] sm:$0xff] %vm730_vm0, %v1560_v24 }
 0x563   : > { %v1541_v29 = vpop.f32.mrf.mxu1 }
 0x564   : > { %1822 = vst.msk [vmem:[%s2547_s17 + $0x28] sm:$0xff] %vm730_vm0, %v1541_v29 }
 0x566   : > { %v1520_v33 = vpop.f32.mrf.mxu3 }
 0x567   : > { %1819 = vst.msk [vmem:[%s2547_s17 + $0x18] sm:$0xff] %vm730_vm0, %v1520_v33 }
 0x568   : > { %v1581_v38 = vpop.f32.mrf.mxu0 }
 0x569   : > { %v1562_v34 = vpop.f32.mrf.mxu2  ;;  %1827 = vst.msk [vmem:[%s2547_s17 + $0x40] sm:$0xff] %vm730_vm0, %v1581_v38 }
 0x56a   : > { %1825 = vst.msk [vmem:[%s2547_s17 + $0x38] sm:$0xff] %vm730_vm0, %v1562_v34 }
 0x56b   : > { %v1623_v48 = vpop.f32.mrf.mxu1 }
 0x56c   : > { %1833 = vst.msk [vmem:[%s2547_s17 + $0x60] sm:$0xff] %vm730_vm0, %v1623_v48 }
 0x56e   : > { %v1602_v49 = vpop.f32.mrf.mxu3 }
 0x56f   : > { %1830 = vst.msk [vmem:[%s2547_s17 + $0x50] sm:$0xff] %vm730_vm0, %v1602_v49 }
 0x570   : > { %v1583_v62 = vpop.f32.mrf.mxu0 }
 0x571   : > { %v1644_v55 = vpop.f32.mrf.mxu2  ;;  %1828 = vst.msk [vmem:[%s2547_s17 + $0x48] sm:$0xff] %vm730_vm0, %v1583_v62 }
 0x572   : > { %1836 = vst.msk [vmem:[%s2547_s17 + $0x70] sm:$0xff] %vm730_vm0, %v1644_v55 }
 0x573   : > { %v1625_v63 = vpop.f32.mrf.mxu1 }
 0x574   : > { %1834 = vst.msk [vmem:[%s2547_s17 + $0x68] sm:$0xff] %vm730_vm0, %v1625_v63 }
 0x576   : > { %v1604_v2 = vpop.f32.mrf.mxu3 }
 0x577   : > { %1831 = vst.msk [vmem:[%s2547_s17 + $0x58] sm:$0xff] %vm730_vm0, %v1604_v2 }
 0x579   : > { %v1646_v19 = vpop.f32.mrf.mxu2 }
 0x57a   : > { %1837 = vst.msk [vmem:[%s2547_s17 + $0x78] sm:$0xff] %vm730_vm0, %v1646_v19 }
 0x57b PF: > { %p1851_p4 = scmp.ge.s32.totalorder %s1976_s21, 2  ;;  %s1695_s1 = sand.u32 1, %s1964_s18  }
 0x57c   : > { %s1696_s3 = scalar_lea.sflag [#allocation3], %s1695_s1 }
 0x57d   : > { %p1848_p5 = pnand %p1851_p4, %p2101_p6 }
 0x57f   : > { %p1849_p7 = pneg %p1848_p5 }
 0x581   : > { %1959 = dma.done.wait (%p1849_p7), %s1696_s3, 128  }
 0x582   : > { %1961 = vsyncadd (%p1849_p7), %s1696_s3, 4294967168  ;;  %p26_p8 = scmp.ge.s32.totalorder %s2084_s24, 4   ;;  %s2640_s18 = smov %s1968_s19 }
 0x583   : > { %s2641_s19 = smov %s1972_s20  ;;  %s2642_s20 = smov %s2095_s27 }
 0x584   : > { %s2643_s21 = smov %s2084_s24  ;;  %28 = sbr.rel (!%p26_p8) target bundleno = 13 (0xd), region = 138 }
 0x589   :  { %1718 = vsyncpa [#allocation3], 1 }
 0x58a   :  { %1720 = vsyncpa [#allocation3 + $0x1], 1 }

// kernel: astgcn_block_forward.9
= control target key start
LH: loop header
LB: loop body
LE: loop exit
PB: predicated region body
PF: predicated region fallthrough
CT: control target
= control target key end

     0   :  { %s472_s21 = smov 0   ;;  %s516_s0 = inlined_call_operand.vmem [shape: f32[2,16,64], index: 0, kind: input, shape index: {}]   ;;  %s517_s1 = inlined_call_operand.vmem [shape: f32[1,64], index: 1, kind: input, shape index: {}]   ;;  %s518_s2 = inlined_call_operand.vmem [shape: f32[1,64], index: 2, kind: input, shape index: {}]   ;;  %s519_s3 = inlined_call_operand.vmem [shape: bf16[64,12], index: 3, kind: input, shape index: {}]   ;;  %s520_s4 = inlined_call_operand.vmem [shape: f32[1,12], index: 4, kind: input, shape index: {}]   ;;  %s521_s5 = inlined_call_operand.vmem [shape: f32[16,12], index: 5, kind: input, shape index: {}]   ;;  %s522_s6 = inlined_call_operand.vmem [shape: f32[2,16,12], index: 6, kind: output, shape index: {}]  }
   0x1 LB: > { %s384_s22 = sadd.s32 4294967295, %s435_s21   ;;  %p388_p0 = scmp.ge.s32.totalorder %s435_s21, 1  ;;  %s435_s21 = sphi %s472_s21, %s16_s21  }
   0x2   : > { %p212_p1 = scmp.lt.s32.totalorder %s435_s21, 3 }
   0x4   : > { %p213_p2 = pnand %p388_p0, %p212_p1 }
   0x5   : > { %p242_p3 = scmp.lt.s32.totalorder (!%p213_p2), %s384_s22, 1 }
   0x6   : > { %216 = sbr.rel (%p213_p2) target bundleno = 166 (0xa6), region = 44 }
   0xb   : > { %v417_v0 = vld [vmem:[%s519_s3 + $0x18] sm:$0xff]  ;;  %v416_v1 = vld [vmem:[%s519_s3 + $0x10] sm:$0xff]  ;;  %s524_s22 = smov (!%p242_p3, %s384_s22), 1  ;;  %v426_v2 = vld [vmem:[%s517_s1] ss:$0 sm:$0xff]  ;;  %vm304_vm0 = vcmask 523264  }
   0xc   : > { %312 = vmatpush.bf16.msra.mxu0 %v417_v0  ;;  %s412_s29 = sshll.u32 %s524_s22, 4  ;;  %v427_v3 = vld [vmem:[%s518_s2] ss:$0 sm:$0xff]  ;;  %v415_v4 = vld [vmem:[%s519_s3 + $0x8] sm:$0xff]  ;;  %vm326_vm1 = vcmask 97280  }
   0xd   : > { %s246_s8 = scalar_lea.vmem %s516_s0, %s412_s29  ;;  %v414_v11 = vld [vmem:[%s519_s3] sm:$0xff]  ;;  %s251_s22 = scalar_lea.vmem %s522_s6, %s412_s29  ;;  %v323_v19 = vld [vmem:[%s521_s5 + $0x8] sm:$0xff] }
   0xe   : > { %v253_v5 = vld [vmem:[%s246_s8] sm:$0xff]  ;;  %v254_v6 = vld [vmem:[%s246_s8 + $0x8] sm:$0xff] }
   0xf   : > { %v259_v7 = vmul.f32 %v426_v2, %v253_v5  ;;  %v260_v8 = vmul.f32 %v426_v2, %v254_v6  ;;  %v428_v13 = vld [vmem:[%s520_s4] ss:$0 sm:$0xff] }
  0x10   : > { %313 = vmatpush.bf16.msra.mxu0 %v416_v1  ;;  %v322_v15 = vld [vmem:[%s521_s5] sm:$0xff] }
  0x11   : > { %v265_v9 = vadd.f32 %v427_v3, %v259_v7  ;;  %v266_v10 = vadd.f32 %v427_v3, %v260_v8 }
  0x13   : > { %v267_v12 = vpack.c.bf16 %v266_v10, %v265_v9 }
  0x14   : > { %314 = vmatpush.bf16.msra.mxu0 %v415_v4 }
  0x18   : > { %315 = vmatpush.bf16.msra.mxu0 %v414_v11 }
  0x1b   : > { %409 = vmatmul.msk.bf16.vlgmr.msra.gmra.mxu0 %vm304_vm0, %v267_v12 }
  0x98   : > { %v317_v14 = vpop.f32.mrf.mxu0 }
  0x99   : > { %v318_v16 = vadd.f32 %v428_v13, %v317_v14 }
  0x9b   : > { %v324_v17 = vmul.f32 %v322_v15, %v318_v16 }
  0x9d   : > { %327 = vst.msk [vmem:[%s251_s22] sm:$0xff] %vm326_vm1, %v324_v17 }
  0xa0   : > { %v319_v18 = vpop.f32.mrf.mxu0 }
  0xa1   : > { %v320_v20 = vadd.f32 %v428_v13, %v319_v18 }
  0xa3   : > { %v325_v21 = vmul.f32 %v323_v19, %v320_v20 }
  0xa5   : > { %328 = vst.msk [vmem:[%s251_s22 + $0x8] sm:$0xff] %vm326_vm1, %v325_v21 }
  0xa6 PF: > { %s16_s21 = sadd.s32 1, %s435_s21  }
  0xa7   : > { %p13_p4 = scmp.ge.s32.totalorder %s16_s21, 4  }
  0xa9   :  { %15 = sbr.rel (!%p13_p4) target bundleno = 1 (0x1), region = 74 }

// kernel: astgcn_block_forward.8
= control target key start
LH: loop header
LB: loop body
LE: loop exit
PB: predicated region body
PF: predicated region fallthrough
CT: control target
= control target key end

     0   :  { %s1248_s21 = smov 0   ;;  %s1408_s0 = inlined_call_operand.vmem [shape: f32[2,16,64], index: 0, kind: input, shape index: {}]   ;;  %s1409_s1 = inlined_call_operand.vmem [shape: f32[2,16,64], index: 1, kind: input, shape index: {}]   ;;  %s1410_s2 = inlined_call_operand.vmem [shape: f32[2,16,16], index: 2, kind: input, shape index: {}]   ;;  %s1411_s3 = inlined_call_operand.vmem [shape: f32[3,16,16], index: 3, kind: input, shape index: {}]   ;;  %s1412_s4 = inlined_call_operand.vmem [shape: bf16[3,64,64], index: 4, kind: input, shape index: {}]   ;;  %s1413_s5 = inlined_call_operand.vmem [shape: f32[1,64], index: 5, kind: input, shape index: {}]   ;;  %s1414_s6 = inlined_call_operand.vmem [shape: bf16[64,64], index: 6, kind: input, shape index: {}]   ;;  %s1415_s7 = inlined_call_operand.vmem [shape: f32[1,64], index: 7, kind: input, shape index: {}]   ;;  %s1416_s8 = inlined_call_operand.vmem [shape: bf16[64,64], index: 8, kind: input, shape index: {}]   ;;  %s1417_s9 = inlined_call_operand.vmem [shape: f32[1,64], index: 9, kind: input, shape index: {}]   ;;  %s1418_s10 = inlined_call_operand.vmem [shape: f32[64,8], index: 10, kind: input, shape index: {}]   ;;  %s1419_s11 = inlined_call_operand.vmem [shape: f32[2,16,64], index: 11, kind: output, shape index: {0}]   ;;  %s1420_s12 = inlined_call_operand.vmem [shape: f32[2,2,8], index: 12, kind: output, shape index: {1}]  }
   0x1 LB: > { %s1014_s22 = sadd.s32 4294967295, %s1181_s21   ;;  %p1018_p0 = scmp.ge.s32.totalorder %s1181_s21, 1  ;;  %s1181_s21 = sphi %s1248_s21, %s23_s21  }
   0x2   : > { %p385_p1 = scmp.lt.s32.totalorder %s1181_s21, 3 }
   0x4   : > { %p386_p2 = pnand %p1018_p0, %p385_p1 }
   0x5   : > { %p441_p3 = scmp.lt.s32.totalorder (!%p386_p2), %s1014_s22, 1 }
   0x6   : > { %389 = sbr.rel (%p386_p2) target bundleno = 604 (0x25c), region = 64 }
   0xb   : > { %s1422_s22 = smov (!%p441_p3, %s1014_s22), 1  ;;  %v1151_v0 = vld [vmem:[%s1412_s4 + $0x38] sm:$0xff]  ;;  %v474_v2 = vld [vmem:[%s1411_s3] sm:$0xff]  ;;  %v1029_v3 = vld [vmem:[%s1411_s3 + $0x10] sm:$0xff]  ;;  %vm479_vm0 = vcmask 130048   ;;  %vm563_vm1 = vcmask 523264  }
   0xc   : > { %v1147_v1 = vld [vmem:[%s1412_s4 + $0x18] sm:$0xff]  ;;  %s1265_s27 = sshll.u32 %s1422_s22, 4  ;;  %571 = vmatpush.bf16.msra.mxu2 %v1151_v0  ;;  %v475_v4 = vld [vmem:[%s1411_s3 + $0x8] sm:$0xff]  ;;  %v1074_v17 = vld [vmem:[%s1411_s3 + $0x20] sm:$0xff]  ;;  %vm870_vm2 = vcmask 57344  }
   0xd   : > { %612 = vmatpush.bf16.msra.mxu3 %v1147_v1  ;;  %s445_s16 = scalar_lea.vmem %s1408_s0, %s1265_s27  ;;  %s455_s19 = scalar_lea.vmem %s1410_s2, %s1265_s27  ;;  %v1030_v5 = vld [vmem:[%s1411_s3 + $0x18] sm:$0xff]  ;;  %v1075_v18 = vld [vmem:[%s1411_s3 + $0x28] sm:$0xff]  ;;  %v1150_v22 = vld [vmem:[%s1412_s4 + $0x30] sm:$0xff] }
   0xe   : > { %v466_v6 = vld [vmem:[%s445_s16] sm:$0xff]  ;;  %v467_v7 = vld [vmem:[%s445_s16 + $0x8] sm:$0xff]  ;;  %v1146_v23 = vld [vmem:[%s1412_s4 + $0x10] sm:$0xff]  ;;  %s450_s13 = scalar_lea.vmem %s1409_s1, %s1265_s27  ;;  %s460_s16 = scalar_lea.vmem %s1419_s11, %s1265_s27 }
   0xf   : > { %v472_v8 = vld [vmem:[%s455_s19] sm:$0xff]  ;;  %v468_v9 = vpack.c.bf16 %v467_v7, %v466_v6  ;;  %v473_v10 = vld [vmem:[%s455_s19 + $0x8] sm:$0xff]  ;;  %v1155_v28 = vld [vmem:[%s1412_s4 + $0x58] sm:$0xff]  ;;  %s1027_s27 = sshll.u32 %s1422_s22, 1 }
  0x10   : > { %v476_v11 = vmul.f32 %v474_v2, %v472_v8  ;;  %v509_v12 = vmul.f32 %v1029_v3, %v472_v8  ;;  %v477_v13 = vmul.f32 %v475_v4, %v473_v10  ;;  %v510_v14 = vmul.f32 %v1030_v5, %v473_v10  ;;  %572 = vmatpush.bf16.msra.mxu2 %v1150_v22  ;;  %v1149_v24 = vld [vmem:[%s1412_s4 + $0x28] sm:$0xff]  ;;  %v1148_v26 = vld [vmem:[%s1412_s4 + $0x20] sm:$0xff]  ;;  %v1154_v29 = vld [vmem:[%s1412_s4 + $0x50] sm:$0xff]  ;;  %s464_s19 = scalar_lea.vmem %s1420_s12, %s1027_s27 }
  0x11   : > { %490 = vmatpush.bf16.msra.mxu0 %v468_v9  ;;  %522 = vmatpush.bf16.msra.mxu1 %v468_v9  ;;  %v625_v19 = vmul.f32 %v1074_v17, %v472_v8  ;;  %v626_v20 = vmul.f32 %v1075_v18, %v473_v10  ;;  %v1145_v25 = vld [vmem:[%s1412_s4 + $0x8] sm:$0xff]  ;;  %v1144_v27 = vld [vmem:[%s1412_s4] sm:$0xff]  ;;  %v1163_v41 = vld [vmem:[%s1416_s8 + $0x18] sm:$0xff] }
  0x12   : > { %v478_v15 = vpack.c.bf16 %v477_v13, %v476_v11  ;;  %v511_v16 = vpack.c.bf16 %v510_v14, %v509_v12  ;;  %613 = vmatpush.bf16.msra.mxu3 %v1146_v23  ;;  %v1153_v30 = vld [vmem:[%s1412_s4 + $0x48] sm:$0xff]  ;;  %v1152_v31 = vld [vmem:[%s1412_s4 + $0x40] sm:$0xff]  ;;  %v1162_v42 = vld [vmem:[%s1416_s8 + $0x10] sm:$0xff] }
  0x13   : > { %v627_v21 = vpack.c.bf16 %v626_v20, %v625_v19  ;;  %v1159_v43 = vld [vmem:[%s1414_s6 + $0x18] sm:$0xff]  ;;  %v1161_v44 = vld [vmem:[%s1416_s8 + $0x8] sm:$0xff]  ;;  %v1158_v45 = vld [vmem:[%s1414_s6 + $0x10] sm:$0xff] }
  0x14   : > { %1028 = vmatmul.msk.bf16.vlgmr.msra.gmra.mxu0 %vm479_vm0, %v478_v15  ;;  %1031 = vmatmul.msk.bf16.vlgmr.msra.gmra.mxu1 %vm479_vm0, %v511_v16  ;;  %v1160_v46 = vld [vmem:[%s1416_s8] sm:$0xff]  ;;  %v470_v48 = vld [vmem:[%s450_s13 + $0x8] sm:$0xff]  ;;  %v846_v4 = vld [vmem:[%s1418_s10 + $0x38] sm:$0xff] }
  0x15   : > { %638 = vmatpush.bf16.msrb.mxu0 %v468_v9  ;;  %573 = vmatpush.bf16.msra.mxu2 %v1149_v24  ;;  %v469_v47 = vld [vmem:[%s450_s13] sm:$0xff]  ;;  %v1157_v50 = vld [vmem:[%s1414_s6 + $0x8] sm:$0xff]  ;;  %v845_v5 = vld [vmem:[%s1418_s10 + $0x30] sm:$0xff] }
  0x16   : > { %614 = vmatpush.bf16.msra.mxu3 %v1145_v25  ;;  %686 = vmatpush.bf16.msrb.mxu1 %v1155_v28  ;;  %v471_v49 = vpack.c.bf16 %v470_v48, %v469_v47  ;;  %v1156_v51 = vld [vmem:[%s1414_s6] sm:$0xff]  ;;  %v844_v6 = vld [vmem:[%s1418_s10 + $0x28] sm:$0xff]  ;;  %v842_v8 = vld [vmem:[%s1418_s10 + $0x18] sm:$0xff] }
  0x17   : > { %v1172_v59 = vld [vmem:[%s1413_s5] ss:$0 sm:$0xff]  ;;  %v841_v9 = vld [vmem:[%s1418_s10 + $0x10] sm:$0xff]  ;;  %v840_v10 = vld [vmem:[%s1418_s10 + $0x8] sm:$0xff] }
  0x18   : > { %v843_v7 = vld [vmem:[%s1418_s10 + $0x20] sm:$0xff] }
  0x19   : > { %574 = vmatpush.bf16.msra.mxu2 %v1148_v26  ;;  %858 = vmatpush.msra.mxu0 %v846_v4  ;;  %v839_v11 = vld [vmem:[%s1418_s10] sm:$0xff] }
  0x1a   : > { %615 = vmatpush.bf16.msra.mxu3 %v1144_v27  ;;  %687 = vmatpush.bf16.msrb.mxu1 %v1154_v29  ;;  %v1173_v12 = vld [vmem:[%s1417_s9] ss:$0 sm:$0xff] }
  0x1b   : > { %859 = vmatpush.msra.mxu0 %v845_v5  ;;  %v1174_v14 = vld [vmem:[%s1415_s7] ss:$0 sm:$0xff] }
  0x1d   : > { %750 = vmatpush.bf16.msrb.mxu2 %v1159_v43  ;;  %860 = vmatpush.msra.mxu0 %v844_v6 }
  0x1e   : > { %688 = vmatpush.bf16.msrb.mxu1 %v1153_v30  ;;  %803 = vmatpush.bf16.msrb.mxu3 %v1163_v41 }
  0x1f   : > { %861 = vmatpush.msra.mxu0 %v843_v7 }
  0x21   : > { %751 = vmatpush.bf16.msrb.mxu2 %v1158_v45  ;;  %862 = vmatpush.msra.mxu0 %v842_v8 }
  0x22   : > { %689 = vmatpush.bf16.msrb.mxu1 %v1152_v31  ;;  %804 = vmatpush.bf16.msrb.mxu3 %v1162_v42 }
  0x23   : > { %863 = vmatpush.msra.mxu0 %v841_v9 }
  0x24   : > { %1076 = vmatmul.msk.bf16.vlgmr.msrb.gmra.mxu0 %vm479_vm0, %v627_v21 }
  0x25   : > { %752 = vmatpush.bf16.msrb.mxu2 %v1157_v50  ;;  %864 = vmatpush.msra.mxu0 %v840_v10 }
  0x26   : > { %805 = vmatpush.bf16.msrb.mxu3 %v1161_v44  ;;  %891 = vmatpush.msra.mxu1 %v846_v4 }
  0x27   : > { %865 = vmatpush.msra.mxu0 %v839_v11 }
  0x28   : > { %892 = vmatpush.msra.mxu1 %v845_v5 }
  0x29   : > { %753 = vmatpush.bf16.msrb.mxu2 %v1156_v51 }
  0x2a   : > { %806 = vmatpush.bf16.msrb.mxu3 %v1160_v46  ;;  %893 = vmatpush.msra.mxu1 %v844_v6 }
  0x2c   : > { %894 = vmatpush.msra.mxu1 %v843_v7 }
  0x2e   : > { %895 = vmatpush.msra.mxu1 %v842_v8 }
  0x30   : > { %896 = vmatpush.msra.mxu1 %v841_v9 }
  0x32   : > { %897 = vmatpush.msra.mxu1 %v840_v10 }
  0x34   : > { %898 = vmatpush.msra.mxu1 %v839_v11 }
  0x91   : > { %v492_v32 = vpop.f32.mrf.mxu0  ;;  %v524_v33 = vpop.f32.mrf.mxu1 }
  0x99   : > { %v494_v34 = vpop.f32.mrf.mxu0  ;;  %v526_v35 = vpop.f32.mrf.mxu1 }
  0x9a   : > { %v497_v36 = vpack.c.bf16 %v494_v34, %v492_v32  ;;  %v529_v37 = vpack.c.bf16 %v526_v35, %v524_v33 }
  0x9c   : > { %1056 = vmatmul.msk.bf16.vlgmr.msra.gmra.mxu2 %vm563_vm1, %v529_v37  ;;  %1073 = vmatmul.msk.bf16.vlgmr.msra.gmra.mxu3 %vm563_vm1, %v497_v36 }
  0xa1   : > { %v640_v38 = vpop.f32.mrf.mxu0 }
  0xa9   : > { %v642_v39 = vpop.f32.mrf.mxu0 }
  0xaa   : > { %v645_v40 = vpack.c.bf16 %v642_v39, %v640_v38 }
  0xac   : > { %1101 = vmatmul.msk.bf16.vlgmr.msrb.gmra.mxu1 %vm563_vm1, %v645_v40  ;;  %1135 = vmatmul.msk.bf16.vlgmr.msrb.gmra.mxu3 %vm563_vm1, %v471_v49 }
 0x11f   : > { %v576_v52 = vpop.f32.mrf.mxu2  ;;  %v617_v53 = vpop.f32.mrf.mxu3 }
 0x120   : > { %v618_v55 = vadd.f32 %v617_v53, %v576_v52 }
 0x127   : > { %v578_v56 = vpop.f32.mrf.mxu2  ;;  %v619_v57 = vpop.f32.mrf.mxu3 }
 0x128   : > { %v620_v60 = vadd.f32 %v619_v57, %v578_v56 }
 0x129   : > { %v691_v54 = vpop.f32.mrf.mxu1 }
 0x12a   : > { %v696_v58 = vadd.f32 %v691_v54, %v618_v55 }
 0x12c   : > { %v702_v62 = vadd.f32 %v1172_v59, %v696_v58 }
 0x12e   : > { %v704_v1 = vmax.f32 %v702_v62, 0.0 }
 0x12f   : > { %v808_v13 = vpop.f32.mrf.mxu3 }
 0x130   : > { %v809_v15 = vadd.f32 %v1173_v12, %v808_v13 }
 0x131   : > { %v693_v61 = vpop.f32.mrf.mxu1 }
 0x132   : > { %v697_v63 = vadd.f32 %v693_v61, %v620_v60 }
 0x134   : > { %v703_v0 = vadd.f32 %v1172_v59, %v697_v63 }
 0x136   : > { %v705_v2 = vmax.f32 %v703_v0, 0.0 }
 0x137   : > { %v810_v20 = vpop.f32.mrf.mxu3 }
 0x138   : > { %v706_v3 = vpack.c.bf16 %v705_v2, %v704_v1  ;;  %v811_v22 = vadd.f32 %v1173_v12, %v810_v20 }
 0x13a   : > { %1118 = vmatmul.msk.bf16.vlgmr.msrb.gmra.mxu2 %vm563_vm1, %v706_v3 }
 0x1bd   : > { %v755_v16 = vpop.f32.mrf.mxu2 }
 0x1be   : > { %v756_v17 = vadd.f32 %v1174_v14, %v755_v16 }
 0x1c0   : > { %v813_v18 = vadd.f32 %v809_v15, %v756_v17 }
 0x1c2   : > { %v815_v19 = vmax.f32 %v813_v18, 0.0 }
 0x1c4   : > { %817 = vst.msk [vmem:[%s460_s16] sm:$0xff] %vm563_vm1, %v815_v19  ;;  %v828_v25 = vmul.f32 %v815_v19, %v815_v19  ;;  %v819_v27 = vsel %vm563_vm1, %v815_v19, 0.0 }
 0x1c5   : > { %v757_v21 = vpop.f32.mrf.mxu2 }
 0x1c6   : > { %v758_v23 = vadd.f32 %v1174_v14, %v757_v21  ;;  %v830_v31 = vsel %vm563_vm1, %v828_v25, 0.0 }
 0x1c8   : > { %v814_v24 = vadd.f32 %v811_v22, %v758_v23 }
 0x1ca   : > { %v816_v26 = vmax.f32 %v814_v24, 0.0 }
 0x1cc   : > { %818 = vst.msk [vmem:[%s460_s16 + $0x8] sm:$0xff] %vm563_vm1, %v816_v26  ;;  %v820_v28 = vsel %vm563_vm1, %v816_v26, 0.0  ;;  %v829_v29 = vmul.f32 %v816_v26, %v816_v26 }
 0x1cd   : > { %v821_v30 = vadd.f32 %v820_v28, %v819_v27 }
 0x1ce   : > { %v831_v32 = vsel %vm563_vm1, %v829_v29, 0.0 }
 0x1cf   : > { %v822_v33 = vrot.slane %v821_v30, 4  ;;  %v832_v34 = vadd.f32 %v831_v32, %v830_v31 }
 0x1d1   : > { %v823_v35 = vadd.f32 %v822_v33, %v821_v30  ;;  %v833_v36 = vrot.slane %v832_v34, 4 }
 0x1d3   : > { %v824_v37 = vrot.slane %v823_v35, 2  ;;  %v834_v38 = vadd.f32 %v833_v36, %v832_v34 }
 0x1d5   : > { %v825_v39 = vadd.f32 %v824_v37, %v823_v35  ;;  %v835_v40 = vrot.slane %v834_v38, 2 }
 0x1d7   : > { %v826_v41 = vrot.slane %v825_v39, 1  ;;  %v836_v42 = vadd.f32 %v835_v40, %v834_v38 }
 0x1d9   : > { %v827_v43 = vadd.f32 %v826_v41, %v825_v39  ;;  %v837_v44 = vrot.slane %v836_v42, 1 }
 0x1db   : > { %1136 = vmatmul.msk.f32.vlgmr.msra.gmra.mxu0 %vm563_vm1, %v827_v43  ;;  %v838_v45 = vadd.f32 %v837_v44, %v836_v42 }
 0x1dd   : > { %1137 = vmatmul.msk.f32.vlgmr.msra.gmra.mxu1 %vm563_vm1, %v838_v45 }
 0x258   : > { %v867_v46 = vpop.f32.mrf.mxu0 }
 0x259   : > { %871 = vst.msk [vmem:[%s464_s19] sm:$0x1] %vm870_vm2, %v867_v46 }
 0x25a   : > { %v900_v47 = vpop.f32.mrf.mxu1 }
 0x25b   : > { %903 = vst.msk [vmem:[%s464_s19 + $0x1] sm:$0x1] %vm870_vm2, %v900_v47 }
 0x25c PF: > { %s23_s21 = sadd.s32 1, %s1181_s21  }
 0x25d   : > { %p20_p4 = scmp.ge.s32.totalorder %s23_s21, 4  }
 0x25f   :  { %22 = sbr.rel (!%p20_p4) target bundleno = 1 (0x1), region = 116 }

</bundles_post_ra>
